<compile_context>
chip_gen: v6e
topology: v6e:2x2x1
jax: 0.10.0
libtpu: 0.0.40
codegen_flags: <defaults>
</compile_context>

<pallas_src>
import functools

import jax
import jax.numpy as jnp
from jax import lax
from jax.experimental import pallas as pl
from jax.experimental.pallas import tpu as pltpu


def _resblock_kernel(x_ref, w1_ref, b1_ref, w2_ref, b2_ref, o_ref, xp_ref,
                     *, K, dil, H, W, Cin, Cout):
    """Fused ResBlock for one batch element (stride=1, size-preserving convs).

    x_ref  : (1, H, W, Cin)        bf16 input tile
    w1_ref : (K*K*Cin, Cin)        bf16 conv1 weights (BN1 folded), im2col order
    b1_ref : (1, Cin)              f32 folded BN1 bias
    w2_ref : (K*K*Cin + Cin, Cout) bf16 conv2 weights (BN2 folded) with the
                                   1x1-downsample / identity skip weights
                                   stacked underneath
    b2_ref : (1, Cout)             f32 folded BN2 (+BNd) bias
    o_ref  : (1, H, W, Cout)       f32 output tile
    xp_ref : (H+2p, W+2p, Cin)     f32 zero-halo scratch, reused for x and y1
    """
    p = K // 2

    # Re-zero only the thin halo border each step (a few tiny masked stores);
    # the interior is fully rewritten below.  Doing it per step keeps the
    # kernel correct even if the batch grid axis is split across TensorCores
    # (each core owns its own scratch instance).
    if p > 0:
        xp_ref[:p, :, :] = jnp.zeros((p, W + 2 * p, Cin), jnp.float32)
        xp_ref[H + p:, :, :] = jnp.zeros((p, W + 2 * p, Cin), jnp.float32)
        xp_ref[:, :p, :] = jnp.zeros((H + 2 * p, p, Cin), jnp.float32)
        xp_ref[:, W + p:, :] = jnp.zeros((H + 2 * p, p, Cin), jnp.float32)

    x = x_ref[0].astype(jnp.float32)                   # (H, W, Cin)
    x_flat = x.reshape(H * W, Cin)

    def im2col():
        # Gather the K*K shifted taps from the padded scratch and pack them
        # along the contraction axis -> (H*W, K*K*Cin).  The lane-packing is
        # XLU work (otherwise idle slot); the reshape (H,W,Cin)->(H*W,Cin) is
        # a free leading-dim merge.
        cols = []
        for kh in range(K):
            for kw in range(K):
                patch = xp_ref[kh * dil:kh * dil + H, kw * dil:kw * dil + W, :]
                cols.append(patch.reshape(H * W, Cin))
        return cols[0] if len(cols) == 1 else jnp.concatenate(cols, axis=1)

    # ---- conv1 (BN1 scale pre-folded) + bias + ReLU: one MXU matmul ---------
    xp_ref[p:p + H, p:p + W, :] = x
    y1 = jnp.dot(im2col().astype(jnp.bfloat16), w1_ref[...],
                 preferred_element_type=jnp.float32)           # (H*W, Cin)
    y1 = jnp.maximum(y1 + b1_ref[...], 0.0)

    # ---- conv2 (BN2 folded) with the skip branch fused in -------------------
    # The 1x1 downsample (or identity) skip is expressed as Cin extra
    # contraction rows, so conv2 + skip is a single MXU matmul as well.
    xp_ref[p:p + H, p:p + W, :] = y1.reshape(H, W, Cin)        # scratch reuse
    cols2 = jnp.concatenate([im2col(), x_flat], axis=1)        # (H*W, K*K*Cin+Cin)
    y2 = jnp.dot(cols2.astype(jnp.bfloat16), w2_ref[...],
                 preferred_element_type=jnp.float32)           # (H*W, Cout)
    out = jnp.maximum(y2 + b2_ref[...], 0.0)

    # TODO(synk): for Cout < 128 this store is lane-masked; emitting a
    # lane-dense (1, H, W*Cout) block requires a sublane->lane relayout of
    # `out` (follow-up once that reshape path is validated on all targets).
    o_ref[...] = out.reshape(1, H, W, Cout).astype(o_ref.dtype)


def _fold_bn(gamma, beta, mean, var, eps=1e-5):
    scale = gamma / jnp.sqrt(var + eps)
    bias = beta - mean * scale
    return scale.astype(jnp.float32), bias.astype(jnp.float32)


def resblock_pallas(x_nchw, params, *, kernel_size, stride=1, dilation=1):
    # TODO(synk): stride > 1 (strided conv + strided 1x1 downsample) not implemented.
    assert stride == 1, "stride > 1 not supported by this Pallas implementation"
    K, dil = kernel_size, dilation
    p = K // 2
    # padding=K//2 only preserves the spatial size (and hence makes the
    # residual add well-formed, also in PyTorch) when dil*(K-1) == 2*(K//2).
    assert 2 * p == dil * (K - 1), "residual add would be shape-mismatched"

    x = jnp.transpose(x_nchw, (0, 2, 3, 1))            # NCHW -> NHWC
    N, H, W, Cin = x.shape
    Cout = params["w2"].shape[3]
    has_down = params["wd"] is not None
    if not has_down:
        assert Cin == Cout

    # Fold BN scales into the conv weights (inference mode), reshape to im2col
    # row order ((kh, kw, ci) -> rows), and stack the skip weights under w2.
    s1, b1 = _fold_bn(*params["bn1"])
    s2, b2 = _fold_bn(*params["bn2"])
    w1 = (params["w1"] * s1).reshape(K * K * Cin, Cin)
    w2 = (params["w2"] * s2).reshape(K * K * Cin, Cout)
    if has_down:
        sd, bd = _fold_bn(*params["bnd"])
        w_skip = params["wd"] * sd                     # (Cin, Cout)
        b_skip = bd
    else:
        w_skip = jnp.eye(Cin, dtype=jnp.float32)       # identity skip (Cin==Cout)
        b_skip = jnp.zeros((Cout,), jnp.float32)
    w2c = jnp.concatenate([w2, w_skip], axis=0)        # (K*K*Cin + Cin, Cout)

    # bf16 MXU operands, f32 accumulation / biases.
    xb = x.astype(jnp.bfloat16)
    w1 = w1.astype(jnp.bfloat16)
    w2c = w2c.astype(jnp.bfloat16)
    b1 = b1.reshape(1, Cin)
    b2c = (b2 + b_skip).reshape(1, Cout)

    CK2 = K * K * Cin + Cin

    # TODO(synk): for ResNet-scale H/W/C add a spatial row-tile grid axis with
    # a K//2-row halo so blocks stay inside the VMEM budget (mandatory on v7x,
    # 64 MiB/TC) and the pipeline has >1 step per core to overlap DMA.
    out = pl.pallas_call(
        functools.partial(_resblock_kernel, K=K, dil=dil, H=H, W=W,
                          Cin=Cin, Cout=Cout),
        out_shape=jax.ShapeDtypeStruct((N, H, W, Cout), jnp.float32),
        grid=(N,),
        in_specs=[
            pl.BlockSpec((1, H, W, Cin), lambda n: (n, 0, 0, 0)),
            pl.BlockSpec((K * K * Cin, Cin), lambda n: (0, 0)),
            pl.BlockSpec((1, Cin), lambda n: (0, 0)),
            pl.BlockSpec((CK2, Cout), lambda n: (0, 0)),
            pl.BlockSpec((1, Cout), lambda n: (0, 0)),
        ],
        out_specs=pl.BlockSpec((1, H, W, Cout), lambda n: (n, 0, 0, 0)),
        scratch_shapes=[pltpu.VMEM((H + 2 * p, W + 2 * p, Cin), jnp.float32)],
        compiler_params=pltpu.CompilerParams(
            dimension_semantics=("parallel",),
            # Tiny footprint at these shapes; when row-tiles grow, raise toward
            # 64-96 MiB on v5e/v6e (128 MiB physical) and keep <= ~48 MiB on
            # v7x (64 MiB physical per TensorCore).
            vmem_limit_bytes=32 * 1024 * 1024),
    )(xb, w1, b1, w2c, b2c)

    return jnp.transpose(out, (0, 3, 1, 2))            # NHWC -> NCHW


# ----------------------------- pure-JAX reference -----------------------------
def resblock_ref(x_nchw, params, *, kernel_size, stride=1, dilation=1):
    K, dil = kernel_size, dilation
    p = K // 2
    x = jnp.transpose(x_nchw, (0, 2, 3, 1)).astype(jnp.float32)

    def conv(inp, w, pad, d, s=1):
        return lax.conv_general_dilated(
            inp, w, (s, s), [(pad, pad), (pad, pad)], rhs_dilation=(d, d),
            dimension_numbers=("NHWC", "HWIO", "NHWC"),
            precision=lax.Precision.HIGHEST)

    def bn(inp, prm, eps=1e-5):
        g, b, m, v = prm
        return (inp - m) / jnp.sqrt(v + eps) * g + b

    h = jnp.maximum(bn(conv(x, params["w1"], p, dil), params["bn1"]), 0.0)
    h = bn(conv(h, params["w2"], p, dil), params["bn2"])
    if params["wd"] is not None:
        Cin, Cout = params["wd"].shape
        skip = bn(conv(x, params["wd"].reshape(1, 1, Cin, Cout), 0, 1, stride),
                  params["bnd"])
    else:
        skip = x
    out = jnp.maximum(h + skip, 0.0)
    return jnp.transpose(out, (0, 3, 1, 2))


# ----------------------------- deterministic params ---------------------------
def init_params(key, Cin, Cout, K, stride=1):
    keys = jax.random.split(key, 6)
    fan_in = Cin * K * K
    w1 = jax.random.normal(keys[0], (K, K, Cin, Cin), jnp.float32) / jnp.sqrt(fan_in)
    w2 = jax.random.normal(keys[1], (K, K, Cin, Cout), jnp.float32) / jnp.sqrt(fan_in)

    def bn_params(k, C):
        k1, k2, k3, k4 = jax.random.split(k, 4)
        gamma = 1.0 + 0.1 * jax.random.normal(k1, (C,), jnp.float32)
        beta = 0.1 * jax.random.normal(k2, (C,), jnp.float32)
        mean = 0.1 * jax.random.normal(k3, (C,), jnp.float32)
        var = 1.0 + 0.1 * jax.random.uniform(k4, (C,), jnp.float32)
        return (gamma, beta, mean, var)

    bn1 = bn_params(keys[2], Cin)
    bn2 = bn_params(keys[3], Cout)

    if (Cin != Cout) or (stride > 1):
        wd = jax.random.normal(keys[4], (Cin, Cout), jnp.float32) / jnp.sqrt(Cin)
        bnd = bn_params(keys[5], Cout)
    else:
        wd, bnd = None, None
    return {"w1": w1, "w2": w2, "wd": wd, "bn1": bn1, "bn2": bn2, "bnd": bnd}


if __name__ == "__main__":
    key = jax.random.PRNGKey(0)

    configs = [
        (2, 4, 8, 16, 16, 3),   # Cin != Cout -> 1x1 downsample branch active
        (2, 8, 8, 16, 16, 3),   # Cin == Cout -> identity skip branch
    ]
    for (N, Cin, Cout, H, W, K) in configs:
        key, kx, kp = jax.random.split(key, 3)
        x = jax.random.normal(kx, (N, Cin, H, W), jnp.float32)  # NCHW (PyTorch)
        params = init_params(kp, Cin, Cout, K)

        out = jax.block_until_ready(resblock_pallas(x, params, kernel_size=K))
        ref = resblock_ref(x, params, kernel_size=K)

        assert out.shape == (N, Cout, H, W), out.shape
        # bf16 MXU operands (f32 accumulation) vs an f32 HIGHEST-precision
        # reference: tolerance reflects operand-rounding, not a kernel bug.
        if not jnp.allclose(out, ref, atol=1e-1, rtol=5e-2):
            raise AssertionError(
                f"mismatch vs reference (Cin={Cin}, Cout={Cout}), "
                f"max abs err = {float(jnp.max(jnp.abs(out - ref)))}")

    print("KERNEL_OK")
</pallas_src>

<mosaic_0001>
module attributes {stable_mosaic.version = 11 : i64} {
  func.func @_resblock_kernel(%arg0: i32, %arg1: memref<1x16x16x4xbf16, #tpu.memory_space<vmem>>, %arg2: memref<36x4xbf16, #tpu.memory_space<vmem>>, %arg3: memref<1x4xf32, #tpu.memory_space<vmem>>, %arg4: memref<40x8xbf16, #tpu.memory_space<vmem>>, %arg5: memref<1x8xf32, #tpu.memory_space<vmem>>, %arg6: memref<1x16x16x8xf32, #tpu.memory_space<vmem>>, %arg7: memref<18x18x4xf32, #tpu.memory_space<vmem>>) attributes {dimension_semantics = [#tpu.dimension_semantics<parallel>], iteration_bounds = array<i64: 2>, scalar_prefetch = 0 : i64, scratch_operands = 1 : i64, tpu.core_type = #tpu.core_type<tc>, window_params = [{transform_indices = @transform_0, window_bounds = array<i64: 1, 16, 16, 4>}, {pipeline_mode = #tpu.pipeline_mode<synchronous>, transform_indices = @transform_1, window_bounds = array<i64: 36, 4>}, {pipeline_mode = #tpu.pipeline_mode<synchronous>, transform_indices = @transform_2, window_bounds = array<i64: 1, 4>}, {pipeline_mode = #tpu.pipeline_mode<synchronous>, transform_indices = @transform_3, window_bounds = array<i64: 40, 8>}, {pipeline_mode = #tpu.pipeline_mode<synchronous>, transform_indices = @transform_4, window_bounds = array<i64: 1, 8>}, {transform_indices = @transform_5, window_bounds = array<i64: 1, 16, 16, 8>}]} {
    %cst = arith.constant 0.000000e+00 : f32
    %0 = vector.broadcast %cst : f32 to vector<1x18x4xf32>
    %c0 = arith.constant 0 : index
    %c0_0 = arith.constant 0 : index
    %c0_1 = arith.constant 0 : index
    %1 = vector.load %arg7[%c0, %c0_0, %c0_1] : memref<18x18x4xf32, #tpu.memory_space<vmem>>, vector<1x18x4xf32>
    tpu.vector_store %arg7[%c0, %c0_0, %c0_1], %0 {strides = array<i32>} : memref<18x18x4xf32, #tpu.memory_space<vmem>>, vector<1x18x4xf32>,
    %cst_2 = arith.constant 0.000000e+00 : f32
    %2 = vector.broadcast %cst_2 : f32 to vector<1x18x4xf32>
    %c17 = arith.constant 17 : index
    %c0_3 = arith.constant 0 : index
    %c0_4 = arith.constant 0 : index
    %3 = vector.load %arg7[%c17, %c0_3, %c0_4] : memref<18x18x4xf32, #tpu.memory_space<vmem>>, vector<1x18x4xf32>
    tpu.vector_store %arg7[%c17, %c0_3, %c0_4], %2 {strides = array<i32>} : memref<18x18x4xf32, #tpu.memory_space<vmem>>, vector<1x18x4xf32>,
    %cst_5 = arith.constant 0.000000e+00 : f32
    %4 = vector.broadcast %cst_5 : f32 to vector<18x1x4xf32>
    %c0_6 = arith.constant 0 : index
    %c0_7 = arith.constant 0 : index
    %c0_8 = arith.constant 0 : index
    %5 = vector.load %arg7[%c0_6, %c0_7, %c0_8] : memref<18x18x4xf32, #tpu.memory_space<vmem>>, vector<18x1x4xf32>
    tpu.vector_store %arg7[%c0_6, %c0_7, %c0_8], %4 {strides = array<i32>} : memref<18x18x4xf32, #tpu.memory_space<vmem>>, vector<18x1x4xf32>,
    %cst_9 = arith.constant 0.000000e+00 : f32
    %6 = vector.broadcast %cst_9 : f32 to vector<18x1x4xf32>
    %c0_10 = arith.constant 0 : index
    %c17_11 = arith.constant 17 : index
    %c0_12 = arith.constant 0 : index
    %7 = vector.load %arg7[%c0_10, %c17_11, %c0_12] : memref<18x18x4xf32, #tpu.memory_space<vmem>>, vector<18x1x4xf32>
    tpu.vector_store %arg7[%c0_10, %c17_11, %c0_12], %6 {strides = array<i32>} : memref<18x18x4xf32, #tpu.memory_space<vmem>>, vector<18x1x4xf32>,
    %c0_13 = arith.constant 0 : index
    %c0_14 = arith.constant 0 : index
    %c0_15 = arith.constant 0 : index
    %c0_16 = arith.constant 0 : index
    %8 = vector.load %arg1[%c0_13, %c0_14, %c0_15, %c0_16] : memref<1x16x16x4xbf16, #tpu.memory_space<vmem>>, vector<1x16x16x4xbf16>
    %9 = vector.shape_cast %8 : vector<1x16x16x4xbf16> to vector<16x16x4xbf16>
    %10 = arith.extf %9 : vector<16x16x4xbf16> to vector<16x16x4xf32>
    %11 = vector.shape_cast %10 : vector<16x16x4xf32> to vector<256x4xf32>
    %c1 = arith.constant 1 : index
    %c1_17 = arith.constant 1 : index
    %c0_18 = arith.constant 0 : index
    %12 = vector.load %arg7[%c1, %c1_17, %c0_18] : memref<18x18x4xf32, #tpu.memory_space<vmem>>, vector<16x16x4xf32>
    tpu.vector_store %arg7[%c1, %c1_17, %c0_18], %10 {strides = array<i32>} : memref<18x18x4xf32, #tpu.memory_space<vmem>>, vector<16x16x4xf32>,
    %c0_19 = arith.constant 0 : index
    %c0_20 = arith.constant 0 : index
    %c0_21 = arith.constant 0 : index
    %13 = vector.load %arg7[%c0_19, %c0_20, %c0_21] : memref<18x18x4xf32, #tpu.memory_space<vmem>>, vector<16x16x4xf32>
    %14 = vector.shape_cast %13 : vector<16x16x4xf32> to vector<256x4xf32>
    %c0_22 = arith.constant 0 : index
    %c1_23 = arith.constant 1 : index
    %c0_24 = arith.constant 0 : index
    %15 = vector.load %arg7[%c0_22, %c1_23, %c0_24] : memref<18x18x4xf32, #tpu.memory_space<vmem>>, vector<16x16x4xf32>
    %16 = vector.shape_cast %15 : vector<16x16x4xf32> to vector<256x4xf32>
    %c0_25 = arith.constant 0 : index
    %c2 = arith.constant 2 : index
    %c0_26 = arith.constant 0 : index
    %17 = vector.load %arg7[%c0_25, %c2, %c0_26] : memref<18x18x4xf32, #tpu.memory_space<vmem>>, vector<16x16x4xf32>
    %18 = vector.shape_cast %17 : vector<16x16x4xf32> to vector<256x4xf32>
    %c1_27 = arith.constant 1 : index
    %c0_28 = arith.constant 0 : index
    %c0_29 = arith.constant 0 : index
    %19 = vector.load %arg7[%c1_27, %c0_28, %c0_29] : memref<18x18x4xf32, #tpu.memory_space<vmem>>, vector<16x16x4xf32>
    %20 = vector.shape_cast %19 : vector<16x16x4xf32> to vector<256x4xf32>
    %c1_30 = arith.constant 1 : index
    %c1_31 = arith.constant 1 : index
    %c0_32 = arith.constant 0 : index
    %21 = vector.load %arg7[%c1_30, %c1_31, %c0_32] : memref<18x18x4xf32, #tpu.memory_space<vmem>>, vector<16x16x4xf32>
    %22 = vector.shape_cast %21 : vector<16x16x4xf32> to vector<256x4xf32>
    %c1_33 = arith.constant 1 : index
    %c2_34 = arith.constant 2 : index
    %c0_35 = arith.constant 0 : index
    %23 = vector.load %arg7[%c1_33, %c2_34, %c0_35] : memref<18x18x4xf32, #tpu.memory_space<vmem>>, vector<16x16x4xf32>
    %24 = vector.shape_cast %23 : vector<16x16x4xf32> to vector<256x4xf32>
    %c2_36 = arith.constant 2 : index
    %c0_37 = arith.constant 0 : index
    %c0_38 = arith.constant 0 : index
    %25 = vector.load %arg7[%c2_36, %c0_37, %c0_38] : memref<18x18x4xf32, #tpu.memory_space<vmem>>, vector<16x16x4xf32>
    %26 = vector.shape_cast %25 : vector<16x16x4xf32> to vector<256x4xf32>
    %c2_39 = arith.constant 2 : index
    %c1_40 = arith.constant 1 : index
    %c0_41 = arith.constant 0 : index
    %27 = vector.load %arg7[%c2_39, %c1_40, %c0_41] : memref<18x18x4xf32, #tpu.memory_space<vmem>>, vector<16x16x4xf32>
    %28 = vector.shape_cast %27 : vector<16x16x4xf32> to vector<256x4xf32>
    %c2_42 = arith.constant 2 : index
    %c2_43 = arith.constant 2 : index
    %c0_44 = arith.constant 0 : index
    %29 = vector.load %arg7[%c2_42, %c2_43, %c0_44] : memref<18x18x4xf32, #tpu.memory_space<vmem>>, vector<16x16x4xf32>
    %30 = vector.shape_cast %29 : vector<16x16x4xf32> to vector<256x4xf32>
    %31 = tpu.concatenate %14, %16, %18, %20, %22, %24, %26, %28, %30 in 1 : vector<256x4xf32>, vector<256x4xf32>, vector<256x4xf32>, vector<256x4xf32>, vector<256x4xf32>, vector<256x4xf32>, vector<256x4xf32>, vector<256x4xf32>, vector<256x4xf32> -> vector<256x36xf32>
    %32 = arith.truncf %31 : vector<256x36xf32> to vector<256x36xbf16>
    %c0_45 = arith.constant 0 : index
    %c0_46 = arith.constant 0 : index
    %33 = vector.load %arg2[%c0_45, %c0_46] : memref<36x4xbf16, #tpu.memory_space<vmem>>, vector<36x4xbf16>
    %cst_47 = arith.constant dense<0.000000e+00> : vector<256x4xf32>
    %34 = tpu.matmul %32, %33, %cst_47 {dimension_numbers = #tpu.dot_dimension_numbers<[1], [0], [0], [1], [0, 0, 1, 1], [], []>} : vector<256x36xbf16>, vector<36x4xbf16>, vector<256x4xf32> -> vector<256x4xf32>
    %c0_48 = arith.constant 0 : index
    %c0_49 = arith.constant 0 : index
    %35 = vector.load %arg3[%c0_48, %c0_49] : memref<1x4xf32, #tpu.memory_space<vmem>>, vector<1x4xf32>
    %36 = vector.broadcast %35 : vector<1x4xf32> to vector<256x4xf32>
    %37 = arith.addf %34, %36 : vector<256x4xf32>
    %cst_50 = arith.constant 0.000000e+00 : f32
    %38 = vector.broadcast %cst_50 : f32 to vector<256x4xf32>
    %39 = arith.maximumf %37, %38 : vector<256x4xf32>
    %40 = vector.shape_cast %39 : vector<256x4xf32> to vector<16x16x4xf32>
    %c1_51 = arith.constant 1 : index
    %c1_52 = arith.constant 1 : index
    %c0_53 = arith.constant 0 : index
    %41 = vector.load %arg7[%c1_51, %c1_52, %c0_53] : memref<18x18x4xf32, #tpu.memory_space<vmem>>, vector<16x16x4xf32>
    tpu.vector_store %arg7[%c1_51, %c1_52, %c0_53], %40 {strides = array<i32>} : memref<18x18x4xf32, #tpu.memory_space<vmem>>, vector<16x16x4xf32>,
    %c0_54 = arith.constant 0 : index
    %c0_55 = arith.constant 0 : index
    %c0_56 = arith.constant 0 : index
    %42 = vector.load %arg7[%c0_54, %c0_55, %c0_56] : memref<18x18x4xf32, #tpu.memory_space<vmem>>, vector<16x16x4xf32>
    %43 = vector.shape_cast %42 : vector<16x16x4xf32> to vector<256x4xf32>
    %c0_57 = arith.constant 0 : index
    %c1_58 = arith.constant 1 : index
    %c0_59 = arith.constant 0 : index
    %44 = vector.load %arg7[%c0_57, %c1_58, %c0_59] : memref<18x18x4xf32, #tpu.memory_space<vmem>>, vector<16x16x4xf32>
    %45 = vector.shape_cast %44 : vector<16x16x4xf32> to vector<256x4xf32>
    %c0_60 = arith.constant 0 : index
    %c2_61 = arith.constant 2 : index
    %c0_62 = arith.constant 0 : index
    %46 = vector.load %arg7[%c0_60, %c2_61, %c0_62] : memref<18x18x4xf32, #tpu.memory_space<vmem>>, vector<16x16x4xf32>
    %47 = vector.shape_cast %46 : vector<16x16x4xf32> to vector<256x4xf32>
    %c1_63 = arith.constant 1 : index
    %c0_64 = arith.constant 0 : index
    %c0_65 = arith.constant 0 : index
    %48 = vector.load %arg7[%c1_63, %c0_64, %c0_65] : memref<18x18x4xf32, #tpu.memory_space<vmem>>, vector<16x16x4xf32>
    %49 = vector.shape_cast %48 : vector<16x16x4xf32> to vector<256x4xf32>
    %c1_66 = arith.constant 1 : index
    %c1_67 = arith.constant 1 : index
    %c0_68 = arith.constant 0 : index
    %50 = vector.load %arg7[%c1_66, %c1_67, %c0_68] : memref<18x18x4xf32, #tpu.memory_space<vmem>>, vector<16x16x4xf32>
    %51 = vector.shape_cast %50 : vector<16x16x4xf32> to vector<256x4xf32>
    %c1_69 = arith.constant 1 : index
    %c2_70 = arith.constant 2 : index
    %c0_71 = arith.constant 0 : index
    %52 = vector.load %arg7[%c1_69, %c2_70, %c0_71] : memref<18x18x4xf32, #tpu.memory_space<vmem>>, vector<16x16x4xf32>
    %53 = vector.shape_cast %52 : vector<16x16x4xf32> to vector<256x4xf32>
    %c2_72 = arith.constant 2 : index
    %c0_73 = arith.constant 0 : index
    %c0_74 = arith.constant 0 : index
    %54 = vector.load %arg7[%c2_72, %c0_73, %c0_74] : memref<18x18x4xf32, #tpu.memory_space<vmem>>, vector<16x16x4xf32>
    %55 = vector.shape_cast %54 : vector<16x16x4xf32> to vector<256x4xf32>
    %c2_75 = arith.constant 2 : index
    %c1_76 = arith.constant 1 : index
    %c0_77 = arith.constant 0 : index
    %56 = vector.load %arg7[%c2_75, %c1_76, %c0_77] : memref<18x18x4xf32, #tpu.memory_space<vmem>>, vector<16x16x4xf32>
    %57 = vector.shape_cast %56 : vector<16x16x4xf32> to vector<256x4xf32>
    %c2_78 = arith.constant 2 : index
    %c2_79 = arith.constant 2 : index
    %c0_80 = arith.constant 0 : index
    %58 = vector.load %arg7[%c2_78, %c2_79, %c0_80] : memref<18x18x4xf32, #tpu.memory_space<vmem>>, vector<16x16x4xf32>
    %59 = vector.shape_cast %58 : vector<16x16x4xf32> to vector<256x4xf32>
    %60 = tpu.concatenate %43, %45, %47, %49, %51, %53, %55, %57, %59 in 1 : vector<256x4xf32>, vector<256x4xf32>, vector<256x4xf32>, vector<256x4xf32>, vector<256x4xf32>, vector<256x4xf32>, vector<256x4xf32>, vector<256x4xf32>, vector<256x4xf32> -> vector<256x36xf32>
    %61 = tpu.concatenate %60, %11 in 1 : vector<256x36xf32>, vector<256x4xf32> -> vector<256x40xf32>
    %62 = arith.truncf %61 : vector<256x40xf32> to vector<256x40xbf16>
    %c0_81 = arith.constant 0 : index
    %c0_82 = arith.constant 0 : index
    %63 = vector.load %arg4[%c0_81, %c0_82] : memref<40x8xbf16, #tpu.memory_space<vmem>>, vector<40x8xbf16>
    %cst_83 = arith.constant dense<0.000000e+00> : vector<256x8xf32>
    %64 = tpu.matmul %62, %63, %cst_83 {dimension_numbers = #tpu.dot_dimension_numbers<[1], [0], [0], [1], [0, 0, 1, 1], [], []>} : vector<256x40xbf16>, vector<40x8xbf16>, vector<256x8xf32> -> vector<256x8xf32>
    %c0_84 = arith.constant 0 : index
    %c0_85 = arith.constant 0 : index
    %65 = vector.load %arg5[%c0_84, %c0_85] : memref<1x8xf32, #tpu.memory_space<vmem>>, vector<1x8xf32>
    %66 = vector.broadcast %65 : vector<1x8xf32> to vector<256x8xf32>
    %67 = arith.addf %64, %66 : vector<256x8xf32>
    %cst_86 = arith.constant 0.000000e+00 : f32
    %68 = vector.broadcast %cst_86 : f32 to vector<256x8xf32>
    %69 = arith.maximumf %67, %68 : vector<256x8xf32>
    %70 = vector.shape_cast %69 : vector<256x8xf32> to vector<1x16x16x8xf32>
    %c0_87 = arith.constant 0 : index
    %c0_88 = arith.constant 0 : index
    %c0_89 = arith.constant 0 : index
    %c0_90 = arith.constant 0 : index
    %71 = vector.load %arg6[%c0_87, %c0_88, %c0_89, %c0_90] : memref<1x16x16x8xf32, #tpu.memory_space<vmem>>, vector<1x16x16x8xf32>
    tpu.vector_store %arg6[%c0_87, %c0_88, %c0_89, %c0_90], %70 {strides = array<i32>} : memref<1x16x16x8xf32, #tpu.memory_space<vmem>>, vector<1x16x16x8xf32>,
    return
  }
  func.func @transform_0(%arg0: i32) -> (i32, i32, i32, i32) {
    %c0_i32 = arith.constant 0 : i32
    %c0_i32_0 = arith.constant 0 : i32
    %c0_i32_1 = arith.constant 0 : i32
    %c0_i32_2 = arith.constant 0 : i32
    return %arg0, %c0_i32, %c0_i32_0, %c0_i32_1 : i32, i32, i32, i32
  }
  func.func @transform_1(%arg0: i32) -> (i32, i32) {
    %c0_i32 = arith.constant 0 : i32
    %c0_i32_0 = arith.constant 0 : i32
    %c0_i32_1 = arith.constant 0 : i32
    return %c0_i32, %c0_i32_0 : i32, i32
  }
  func.func @transform_2(%arg0: i32) -> (i32, i32) {
    %c0_i32 = arith.constant 0 : i32
    %c0_i32_0 = arith.constant 0 : i32
    %c0_i32_1 = arith.constant 0 : i32
    return %c0_i32, %c0_i32_0 : i32, i32
  }
  func.func @transform_3(%arg0: i32) -> (i32, i32) {
    %c0_i32 = arith.constant 0 : i32
    %c0_i32_0 = arith.constant 0 : i32
    %c0_i32_1 = arith.constant 0 : i32
    return %c0_i32, %c0_i32_0 : i32, i32
  }
  func.func @transform_4(%arg0: i32) -> (i32, i32) {
    %c0_i32 = arith.constant 0 : i32
    %c0_i32_0 = arith.constant 0 : i32
    %c0_i32_1 = arith.constant 0 : i32
    return %c0_i32, %c0_i32_0 : i32, i32
  }
  func.func @transform_5(%arg0: i32) -> (i32, i32, i32, i32) {
    %c0_i32 = arith.constant 0 : i32
    %c0_i32_0 = arith.constant 0 : i32
    %c0_i32_1 = arith.constant 0 : i32
    %c0_i32_2 = arith.constant 0 : i32
    return %arg0, %c0_i32, %c0_i32_0, %c0_i32_1 : i32, i32, i32, i32
  }
}

</mosaic_0001>

<bundles_post_ra>
// kernel: tpu_custom_call.1
= control target key start
LH: loop header
LB: loop body
LE: loop exit
PB: predicated region body
PF: predicated region fallthrough
CT: control target
= control target key end

     0   :  { %s6060_s18 = smov 0   ;;  %s9054_s0 = inlined_call_operand.vmem [shape: bf16[2,16,16,4], index: 0, kind: input, shape index: {}]   ;;  %s9055_s1 = inlined_call_operand.vmem [shape: bf16[36,4], index: 1, kind: input, shape index: {}]   ;;  %s9056_s2 = inlined_call_operand.vmem [shape: f32[1,4], index: 2, kind: input, shape index: {}]   ;;  %s9057_s3 = inlined_call_operand.vmem [shape: bf16[40,8], index: 3, kind: input, shape index: {}]   ;;  %s9058_s4 = inlined_call_operand.vmem [shape: f32[1,8], index: 4, kind: input, shape index: {}]   ;;  %s9059_s5 = inlined_call_operand.vmem [shape: f32[2,16,16,8], index: 5, kind: output, shape index: {}]  }
   0x1 LB: > { %s4370_s19 = sadd.s32 4294967295, %s6018_s18   ;;  %p4374_p0 = scmp.ge.s32.totalorder %s6018_s18, 1  ;;  %s6018_s18 = sphi %s6060_s18, %s15_s18  }
   0x2   : > { %p187_p1 = scmp.lt.s32.totalorder %s6018_s18, 3 }
   0x4   : > { %p188_p2 = pnand %p4374_p0, %p187_p1 }
   0x6   : > { %191 = sbr.rel (%p188_p2) target bundleno = 1208 (0x4b8), region = 40 }
   0xb   : > { %vm226_vm0 = vcmask 31744   ;;  %vm229_vm1 = vcmask 25600   ;;  %p6070_p3 = scmp.lt.s32.totalorder %s4370_s19, 1  ;;  %vm235_vm2 = vcmask 24576   ;;  %v6020_v0 = vmov 0.0   ;;  %s6021_s25 = smov 4  }
   0xc   : > { %227 = vst.msk [vmem:[#allocation2] sm:$0xff] %vm226_vm0, %v6020_v0  ;;  %228 = vst.msk [vmem:[#allocation2 + $0x8] sm:$0xff] %vm226_vm0, %v6020_v0  ;;  %s6022_s26 = smov 8   ;;  %s6023_s27 = smov 12   ;;  %vm2037_vm3 = vcmask 1041408   ;;  %vm1714_vm4 = vcmask 64512  }
   0xd   : > { %230 = vst.msk [vmem:[#allocation2 + $0x10] sm:$0x3] %vm229_vm1, %v6020_v0  ;;  %234 = vst.msk [vmem:[#allocation2 + $0x1a8] sm:$0x3] %vm229_vm1, %v6020_v0  ;;  %s9483_s19 = smov (!%p6070_p3, %s4370_s19), 1  ;;  %s6024_s28 = smov 16  }
   0xe   : > { %232 = vst.msk [vmem:[#allocation2 + $0x198] sm:$0xff] %vm226_vm0, %v6020_v0  ;;  %233 = vst.msk [vmem:[#allocation2 + $0x1a0] sm:$0xff] %vm226_vm0, %v6020_v0  ;;  %s4421_s21 = sshll.u32 %s9483_s19, 7  ;;  %s6025_s29 = smov 20   ;;  %vm1747_vm5 = vcmask 97280   ;;  %vm1780_vm6 = vcmask 130048  }
   0xf   : > { %237 = vst.msk [vmem:[#allocation2 + $0x18] sm:$0x1] %vm235_vm2, %v6020_v0  ;;  %238 = vst.msk [vmem:[#allocation2 + $0x30] sm:$0x1] %vm235_vm2, %v6020_v0  ;;  %s6124_s24 = scalar_lea.vmem %s9054_s0, %s4421_s21  ;;  %s6026_s30 = smov 24   ;;  %vm1813_vm7 = vcmask 162816  }
  0x10   : > { %239 = vst.msk [vmem:[#allocation2 + $0x48] sm:$0x1] %vm235_vm2, %v6020_v0  ;;  %240 = vst.msk [vmem:[#allocation2 + $0x60] sm:$0x1] %vm235_vm2, %v6020_v0  ;;  %v6127_v1 = vld [vmem:[%s6124_s24 + $0x8] sm:$0xff]   ;;  %v6130_v2 = vld [vmem:[%s6124_s24] sm:$0xff]  }
  0x11   : > { %241 = vst.msk [vmem:[#allocation2 + $0x78] sm:$0x1] %vm235_vm2, %v6020_v0  ;;  %242 = vst.msk [vmem:[#allocation2 + $0x90] sm:$0x1] %vm235_vm2, %v6020_v0  ;;  %v6133_v3 = vld [vmem:[%s6124_s24 + $0x10] sm:$0xff]   ;;  %v9089_v4 = vunpack.c.l.bf16 %v6127_v1  ;;  %v9088_v5 = vunpack.c.h.bf16 %v6127_v1  ;;  %v9091_v6 = vunpack.c.l.bf16 %v6130_v2  ;;  %v9090_v7 = vunpack.c.h.bf16 %v6130_v2  ;;  %v6140_v8 = vld [vmem:[%s6124_s24 + $0x18] sm:$0xff]  }
  0x12   : > { %243 = vst.msk [vmem:[#allocation2 + $0xa8] sm:$0x1] %vm235_vm2, %v6020_v0  ;;  %244 = vst.msk [vmem:[#allocation2 + $0xc0] sm:$0x1] %vm235_vm2, %v6020_v0  ;;  %v6143_v9 = vld [vmem:[%s6124_s24 + $0x20] sm:$0xff]   ;;  %v6146_v10 = vld [vmem:[%s6124_s24 + $0x28] sm:$0xff]   ;;  %v9085_v13 = vunpack.c.l.bf16 %v6133_v3  ;;  %v9084_v14 = vunpack.c.h.bf16 %v6133_v3  ;;  %v9087_v15 = vunpack.c.l.bf16 %v6140_v8  ;;  %v9086_v16 = vunpack.c.h.bf16 %v6140_v8 }
  0x13   : > { %245 = vst.msk [vmem:[#allocation2 + $0xd8] sm:$0x1] %vm235_vm2, %v6020_v0  ;;  %246 = vst.msk [vmem:[#allocation2 + $0xf0] sm:$0x1] %vm235_vm2, %v6020_v0  ;;  %v401_v11 = vld [vmem:[#allocation2 + $0x1] sm:$0xff]  ;;  %v6153_v17 = vld [vmem:[%s6124_s24 + $0x30] sm:$0xff]   ;;  %v9081_v19 = vunpack.c.l.bf16 %v6143_v9  ;;  %v9080_v20 = vunpack.c.h.bf16 %v6143_v9  ;;  %v9083_v21 = vunpack.c.l.bf16 %v6146_v10  ;;  %v9082_v25 = vunpack.c.h.bf16 %v6146_v10 }
  0x14   : > { %247 = vst.msk [vmem:[#allocation2 + $0x108] sm:$0x1] %vm235_vm2, %v6020_v0  ;;  %248 = vst.msk [vmem:[#allocation2 + $0x120] sm:$0x1] %vm235_vm2, %v6020_v0  ;;  %v402_v12 = vld [vmem:[#allocation2 + $0x9] sm:$0xff]  ;;  %v6171_v22 = vld [vmem:[%s6124_s24 + $0x38] sm:$0xff]   ;;  %v9077_v26 = vunpack.c.l.bf16 %v6153_v17  ;;  %v9076_v27 = vunpack.c.h.bf16 %v6153_v17 }
  0x15   : > { %249 = vst.msk [vmem:[#allocation2 + $0x138] sm:$0x1] %vm235_vm2, %v6020_v0  ;;  %250 = vst.msk [vmem:[#allocation2 + $0x150] sm:$0x1] %vm235_vm2, %v6020_v0  ;;  %v4636_v18 = vpack.i.bf16 %v402_v12, %v401_v11  ;;  %v6174_v23 = vld [vmem:[%s6124_s24 + $0x40] sm:$0xff]   ;;  %v6177_v24 = vld [vmem:[%s6124_s24 + $0x48] sm:$0xff]   ;;  %v9079_v28 = vunpack.c.l.bf16 %v6171_v22  ;;  %v9078_v32 = vunpack.c.h.bf16 %v6171_v22 }
  0x16   : > { %251 = vst.msk [vmem:[#allocation2 + $0x168] sm:$0x1] %vm235_vm2, %v6020_v0  ;;  %252 = vst.msk [vmem:[#allocation2 + $0x180] sm:$0x1] %vm235_vm2, %v6020_v0  ;;  %v6196_v29 = vld [vmem:[%s6124_s24 + $0x50] sm:$0xff]   ;;  %v6199_v30 = vld [vmem:[%s6124_s24 + $0x58] sm:$0xff]   ;;  %v9073_v33 = vunpack.c.l.bf16 %v6174_v23  ;;  %v9072_v34 = vunpack.c.h.bf16 %v6174_v23  ;;  %v9075_v35 = vunpack.c.l.bf16 %v6177_v24  ;;  %v9074_v38 = vunpack.c.h.bf16 %v6177_v24 }
  0x17   : > { %255 = vst.msk [vmem:[#allocation2 + $0x29] sm:$0x1] %vm235_vm2, %v6020_v0  ;;  %256 = vst.msk [vmem:[#allocation2 + $0x41] sm:$0x1] %vm235_vm2, %v6020_v0  ;;  %v6202_v31 = vld [vmem:[%s6124_s24 + $0x60] sm:$0xff]   ;;  %4637 = vrot.lane.b32.xlu0 %v4636_v18, %s6021_s25  ;;  %v6219_v36 = vld [vmem:[%s6124_s24 + $0x68] sm:$0xff]   ;;  %v9069_v39 = vunpack.c.l.bf16 %v6196_v29  ;;  %v9068_v40 = vunpack.c.h.bf16 %v6196_v29  ;;  %v9071_v41 = vunpack.c.l.bf16 %v6199_v30  ;;  %v9070_v43 = vunpack.c.h.bf16 %v6199_v30 }
  0x18   : > { %257 = vst.msk [vmem:[#allocation2 + $0x59] sm:$0x1] %vm235_vm2, %v6020_v0  ;;  %258 = vst.msk [vmem:[#allocation2 + $0x71] sm:$0x1] %vm235_vm2, %v6020_v0  ;;  %v6222_v37 = vld [vmem:[%s6124_s24 + $0x70] sm:$0xff]   ;;  %v6241_v42 = vld [vmem:[%s6124_s24 + $0x78] sm:$0xff]   ;;  %v9065_v44 = vunpack.c.l.bf16 %v6202_v31  ;;  %v9064_v45 = vunpack.c.h.bf16 %v6202_v31  ;;  %v9067_v46 = vunpack.c.l.bf16 %v6219_v36  ;;  %v9066_v47 = vunpack.c.h.bf16 %v6219_v36 }
  0x19   : > { %259 = vst.msk [vmem:[#allocation2 + $0x89] sm:$0x1] %vm235_vm2, %v6020_v0  ;;  %260 = vst.msk [vmem:[#allocation2 + $0xa1] sm:$0x1] %vm235_vm2, %v6020_v0  ;;  %v9063_v48 = vunpack.c.l.bf16 %v6222_v37  ;;  %v9062_v49 = vunpack.c.h.bf16 %v6222_v37  ;;  %v9061_v50 = vunpack.c.l.bf16 %v6241_v42  ;;  %v9060_v51 = vunpack.c.h.bf16 %v6241_v42  ;;  %s6027_s6 = smov 28   ;;  %s6028_s13 = smov 32  }
  0x1a   : > { %261 = vst.msk [vmem:[#allocation2 + $0xb9] sm:$0x1] %vm235_vm2, %v6020_v0  ;;  %262 = vst.msk [vmem:[#allocation2 + $0xd1] sm:$0x1] %vm235_vm2, %v6020_v0  ;;  %vm1846_vm8 = vcmask 195584   ;;  %vm1879_vm9 = vcmask 228352  }
  0x1b   : > { %263 = vst.msk [vmem:[#allocation2 + $0xe9] sm:$0x1] %vm235_vm2, %v6020_v0  ;;  %264 = vst.msk [vmem:[#allocation2 + $0x101] sm:$0x1] %vm235_vm2, %v6020_v0  ;;  %vm1912_vm10 = vcmask 261120   ;;  %vm1988_vm11 = vcmask 293888  }
  0x1c   : > { %265 = vst.msk [vmem:[#allocation2 + $0x119] sm:$0x1] %vm235_vm2, %v6020_v0  ;;  %266 = vst.msk [vmem:[#allocation2 + $0x131] sm:$0x1] %vm235_vm2, %v6020_v0  ;;  %s6029_s14 = smov 36   ;;  %vm4086_vm12 = vcmask 1043456  }
  0x1d   : > { %267 = vst.msk [vmem:[#allocation2 + $0x149] sm:$0x1] %vm235_vm2, %v6020_v0  ;;  %268 = vst.msk [vmem:[#allocation2 + $0x161] sm:$0x1] %vm235_vm2, %v6020_v0  ;;  %vm4037_vm13 = vcmask 326656  }
  0x1e   : > { %269 = vst.msk [vmem:[#allocation2 + $0x179] sm:$0x1] %vm235_vm2, %v6020_v0  ;;  %270 = vst.msk [vmem:[#allocation2 + $0x191] sm:$0x1] %vm235_vm2, %v6020_v0 }
  0x1f   : > { %254 = vst.msk [vmem:[#allocation2 + $0x11] sm:$0x1] %vm235_vm2, %v6020_v0  ;;  %236 = vst.msk [vmem:[#allocation2] sm:$0x1] %vm235_vm2, %v6020_v0 }
  0x20   : > { %253 = vst.msk [vmem:[#allocation2 + $0x198] sm:$0x1] %vm235_vm2, %v6020_v0  ;;  %271 = vst.msk [vmem:[#allocation2 + $0x1a9] sm:$0x1] %vm235_vm2, %v6020_v0 }
  0x21   : > { %9211 = vst [vmem:[#allocation3_spill] sm:$0xff] %v6127_v1  ;;  %9212 = vst [vmem:[#allocation4_spill] sm:$0xff] %v6130_v2 }
  0x22   : > { %9213 = vst [vmem:[#allocation5_spill] sm:$0xff] %v6133_v3  ;;  %9214 = vst [vmem:[#allocation6_spill] sm:$0xff] %v6140_v8 }
  0x23   : > { %9215 = vst [vmem:[#allocation7_spill] sm:$0xff] %v6143_v9  ;;  %9216 = vst [vmem:[#allocation8_spill] sm:$0xff] %v6146_v10 }
  0x24   : > { %9217 = vst [vmem:[#allocation9_spill] sm:$0xff] %v6153_v17  ;;  %339 = vst.msk [vmem:[#allocation2 + $0x31] sm:$0xff] %vm226_vm0, %v9089_v4 }
  0x25   : > { %340 = vst.msk [vmem:[#allocation2 + $0x39] sm:$0xff] %vm226_vm0, %v9088_v5  ;;  %337 = vst.msk [vmem:[#allocation2 + $0x19] sm:$0xff] %vm226_vm0, %v9091_v6 }
  0x26   : > { %338 = vst.msk [vmem:[#allocation2 + $0x21] sm:$0xff] %vm226_vm0, %v9090_v7  ;;  %9218 = vst [vmem:[#allocation10_spill] sm:$0xff] %v6171_v22 }
  0x27   : > { %9219 = vst [vmem:[#allocation11_spill] sm:$0xff] %v6174_v23  ;;  %9220 = vst [vmem:[#allocation12_spill] sm:$0xff] %v6177_v24 }
  0x28   : > { %341 = vst.msk [vmem:[#allocation2 + $0x49] sm:$0xff] %vm226_vm0, %v9085_v13  ;;  %342 = vst.msk [vmem:[#allocation2 + $0x51] sm:$0xff] %vm226_vm0, %v9084_v14 }
  0x29   : > { %343 = vst.msk [vmem:[#allocation2 + $0x61] sm:$0xff] %vm226_vm0, %v9087_v15  ;;  %344 = vst.msk [vmem:[#allocation2 + $0x69] sm:$0xff] %vm226_vm0, %v9086_v16 }
  0x2a   : > { %9221 = vst [vmem:[#allocation13_spill] sm:$0xff] %v6196_v29  ;;  %9222 = vst [vmem:[#allocation14_spill] sm:$0xff] %v6199_v30 }
  0x2b   : > { %9223 = vst [vmem:[#allocation15_spill] sm:$0xff] %v6202_v31  ;;  %345 = vst.msk [vmem:[#allocation2 + $0x79] sm:$0xff] %vm226_vm0, %v9081_v19  ;;  %v405_v52 = vld [vmem:[#allocation2 + $0x31] sm:$0xff] }
  0x2c   : > { %346 = vst.msk [vmem:[#allocation2 + $0x81] sm:$0xff] %vm226_vm0, %v9080_v20  ;;  %347 = vst.msk [vmem:[#allocation2 + $0x91] sm:$0xff] %vm226_vm0, %v9083_v21  ;;  %v406_v53 = vld [vmem:[#allocation2 + $0x39] sm:$0xff] }
  0x2d   : > { %9224 = vst [vmem:[#allocation16_spill] sm:$0xff] %v6219_v36  ;;  %9225 = vst [vmem:[#allocation17_spill] sm:$0xff] %v6222_v37  ;;  %v403_v54 = vld [vmem:[#allocation2 + $0x19] sm:$0xff]  ;;  %v6297_v55 = vpack.i.bf16 %v406_v53, %v405_v52  ;;  %v404_v56 = vld [vmem:[#allocation2 + $0x21] sm:$0xff] }
  0x2e   : > { %348 = vst.msk [vmem:[#allocation2 + $0x99] sm:$0xff] %vm226_vm0, %v9082_v25  ;;  %349 = vst.msk [vmem:[#allocation2 + $0xa9] sm:$0xff] %vm226_vm0, %v9077_v26  ;;  %v6305_v59 = vpack.i.bf16 %v404_v56, %v403_v54  ;;  %v6416_v19 = vld [vmem:[#allocation2 + $0x18] sm:$0xff] }
  0x2f   : > { %350 = vst.msk [vmem:[#allocation2 + $0xb1] sm:$0xff] %vm226_vm0, %v9076_v27  ;;  %351 = vst.msk [vmem:[#allocation2 + $0xc1] sm:$0xff] %vm226_vm0, %v9079_v28  ;;  %v407_v57 = vld [vmem:[#allocation2 + $0x49] sm:$0xff]  ;;  %v408_v58 = vld [vmem:[#allocation2 + $0x51] sm:$0xff]  ;;  %4647 = vrot.lane.b32.xlu1 %v6297_v55, %s6021_s25 }
  0x30   : > { %9226 = vst [vmem:[#allocation18_spill] sm:$0xff] %v6241_v42  ;;  %352 = vst.msk [vmem:[#allocation2 + $0xc9] sm:$0xff] %vm226_vm0, %v9078_v32  ;;  %v409_v60 = vld [vmem:[#allocation2 + $0x61] sm:$0xff]  ;;  %v410_v61 = vld [vmem:[#allocation2 + $0x69] sm:$0xff]  ;;  %v6309_v62 = vpack.i.bf16 %v408_v58, %v407_v57  ;;  %4642 = vrot.lane.b32.xlu0 %v6305_v59, %s6021_s25 }
  0x31   : > { %353 = vst.msk [vmem:[#allocation2 + $0xd9] sm:$0xff] %vm226_vm0, %v9073_v33  ;;  %354 = vst.msk [vmem:[#allocation2 + $0xe1] sm:$0xff] %vm226_vm0, %v9072_v34  ;;  %v6313_v63 = vpack.i.bf16 %v410_v61, %v409_v60  ;;  %v6434_v25 = vld [vmem:[#allocation2 + $0x50] sm:$0xff]  ;;  %v6447_v21 = vld [vmem:[#allocation2 + $0x60] sm:$0xff] }
  0x32   : > { %355 = vst.msk [vmem:[#allocation2 + $0xf1] sm:$0xff] %vm226_vm0, %v9075_v35  ;;  %356 = vst.msk [vmem:[#allocation2 + $0xf9] sm:$0xff] %vm226_vm0, %v9074_v38  ;;  %v411_v0 = vld [vmem:[#allocation2 + $0x79] sm:$0xff]  ;;  %v6449_v14 = vld [vmem:[#allocation2 + $0x68] sm:$0xff] }
  0x33   : > { %357 = vst.msk [vmem:[#allocation2 + $0x109] sm:$0xff] %vm226_vm0, %v9069_v39  ;;  %358 = vst.msk [vmem:[#allocation2 + $0x111] sm:$0xff] %vm226_vm0, %v9068_v40  ;;  %v412_v11 = vld [vmem:[#allocation2 + $0x81] sm:$0xff]  ;;  %v413_v12 = vld [vmem:[#allocation2 + $0x91] sm:$0xff]  ;;  %4652 = vrot.lane.b32.xlu1 %v6309_v62, %s6021_s25  ;;  %v6459_v15 = vpack.i.bf16 %v6449_v14, %v6447_v21 }
  0x34   : > { %359 = vst.msk [vmem:[#allocation2 + $0x121] sm:$0xff] %vm226_vm0, %v9071_v41  ;;  %360 = vst.msk [vmem:[#allocation2 + $0x129] sm:$0xff] %vm226_vm0, %v9070_v43  ;;  %v6317_v52 = vpack.i.bf16 %v412_v11, %v411_v0  ;;  %4657 = vrot.lane.b32.xlu0 %v6313_v63, %s6021_s25  ;;  %v437_v40 = vld [vmem:[#allocation2 + $0x32] sm:$0xff]  ;;  %v438_v39 = vld [vmem:[#allocation2 + $0x3a] sm:$0xff] }
  0x35   : > { %361 = vst.msk [vmem:[#allocation2 + $0x139] sm:$0xff] %vm226_vm0, %v9065_v44  ;;  %362 = vst.msk [vmem:[#allocation2 + $0x141] sm:$0xff] %vm226_vm0, %v9064_v45  ;;  %v414_v18 = vld [vmem:[#allocation2 + $0x99] sm:$0xff]  ;;  %v415_v54 = vld [vmem:[#allocation2 + $0xa9] sm:$0xff] }
  0x36   : > { %363 = vst.msk [vmem:[#allocation2 + $0x151] sm:$0xff] %vm226_vm0, %v9067_v46  ;;  %364 = vst.msk [vmem:[#allocation2 + $0x159] sm:$0xff] %vm226_vm0, %v9066_v47  ;;  %v6321_v53 = vpack.i.bf16 %v414_v18, %v413_v12  ;;  %v416_v56 = vld [vmem:[#allocation2 + $0xb1] sm:$0xff]  ;;  %v417_v57 = vld [vmem:[#allocation2 + $0xc1] sm:$0xff] }
  0x37   : > { %365 = vst.msk [vmem:[#allocation2 + $0x169] sm:$0xff] %vm226_vm0, %v9063_v48  ;;  %366 = vst.msk [vmem:[#allocation2 + $0x171] sm:$0xff] %vm226_vm0, %v9062_v49  ;;  %v418_v58 = vld [vmem:[#allocation2 + $0xc9] sm:$0xff]  ;;  %4662 = vrot.lane.b32.xlu1 %v6317_v52, %s6021_s25  ;;  %v6325_v60 = vpack.i.bf16 %v416_v56, %v415_v54  ;;  %v445_v34 = vld [vmem:[#allocation2 + $0x92] sm:$0xff] }
  0x38   : > { %367 = vst.msk [vmem:[#allocation2 + $0x181] sm:$0xff] %vm226_vm0, %v9061_v50  ;;  %368 = vst.msk [vmem:[#allocation2 + $0x189] sm:$0xff] %vm226_vm0, %v9060_v51  ;;  %4667 = vrot.lane.b32.xlu0 %v6321_v53, %s6021_s25  ;;  %v6329_v61 = vpack.i.bf16 %v418_v58, %v417_v57  ;;  %v419_v0 = vld [vmem:[#allocation2 + $0xd9] sm:$0xff]  ;;  %v420_v11 = vld [vmem:[#allocation2 + $0xe1] sm:$0xff] }
  0x39   : > { %v421_v51 = vld [vmem:[#allocation2 + $0xf1] sm:$0xff]  ;;  %v422_v50 = vld [vmem:[#allocation2 + $0xf9] sm:$0xff]  ;;  %v6333_v12 = vpack.i.bf16 %v420_v11, %v419_v0  ;;  %v433_v47 = vld [vmem:[#allocation2 + $0x2] sm:$0xff] }
  0x3a   : > { %v6337_v18 = vpack.i.bf16 %v422_v50, %v421_v51  ;;  %v423_v54 = vld [vmem:[#allocation2 + $0x109] sm:$0xff]  ;;  %v424_v56 = vld [vmem:[#allocation2 + $0x111] sm:$0xff]  ;;  %v454_v27 = vld [vmem:[#allocation2 + $0xfa] sm:$0xff] }
  0x3b   : > { %4672 = vrot.lane.b32.xlu1 %v6325_v60, %s6021_s25  ;;  %v425_v49 = vld [vmem:[#allocation2 + $0x121] sm:$0xff]  ;;  %v426_v48 = vld [vmem:[#allocation2 + $0x129] sm:$0xff]  ;;  %v6341_v57 = vpack.i.bf16 %v424_v56, %v423_v54  ;;  %v453_v35 = vld [vmem:[#allocation2 + $0xf2] sm:$0xff] }
  0x3c   : > { %4677 = vrot.lane.b32.xlu0 %v6329_v61, %s6021_s25  ;;  %v6345_v58 = vpack.i.bf16 %v426_v48, %v425_v49  ;;  %v427_v0 = vld [vmem:[#allocation2 + $0x139] sm:$0xff]  ;;  %v428_v11 = vld [vmem:[#allocation2 + $0x141] sm:$0xff]  ;;  %v434_v46 = vld [vmem:[#allocation2 + $0xa] sm:$0xff] }
  0x3d   : > { %v429_v45 = vld [vmem:[#allocation2 + $0x151] sm:$0xff]  ;;  %v430_v44 = vld [vmem:[#allocation2 + $0x159] sm:$0xff]  ;;  %v6349_v50 = vpack.i.bf16 %v428_v11, %v427_v0  ;;  %v4716_v49 = vpack.i.bf16 %v434_v46, %v433_v47  ;;  %v436_v11 = vld [vmem:[#allocation2 + $0x22] sm:$0xff] }
  0x3e   : > { %v6353_v51 = vpack.i.bf16 %v430_v44, %v429_v45  ;;  %v431_v54 = vld [vmem:[#allocation2 + $0x169] sm:$0xff]  ;;  %v432_v56 = vld [vmem:[#allocation2 + $0x171] sm:$0xff]  ;;  %v435_v0 = vld [vmem:[#allocation2 + $0x1a] sm:$0xff]  ;;  %v6366_v45 = vpack.i.bf16 %v438_v39, %v437_v40 }
  0x3f   : > { %4682 = vrot.lane.b32.xlu1 %v6333_v12, %s6021_s25  ;;  %v6357_v48 = vpack.i.bf16 %v432_v56, %v431_v54  ;;  %v6363_v44 = vpack.i.bf16 %v436_v11, %v435_v0  ;;  %v439_v54 = vld [vmem:[#allocation2 + $0x4a] sm:$0xff]  ;;  %v440_v56 = vld [vmem:[#allocation2 + $0x52] sm:$0xff]  ;;  %v441_v43 = vld [vmem:[#allocation2 + $0x62] sm:$0xff] }
  0x40   : > { %4687 = vrot.lane.b32.xlu0 %v6337_v18, %s6021_s25  ;;  %v442_v41 = vld [vmem:[#allocation2 + $0x6a] sm:$0xff]  ;;  %v6370_v46 = vpack.i.bf16 %v440_v56, %v439_v54  ;;  %v443_v0 = vld [vmem:[#allocation2 + $0x7a] sm:$0xff]  ;;  %v444_v11 = vld [vmem:[#allocation2 + $0x82] sm:$0xff] }
  0x41   : > { %v6374_v47 = vpack.i.bf16 %v442_v41, %v441_v43  ;;  %v6378_v39 = vpack.i.bf16 %v444_v11, %v443_v0  ;;  %v447_v54 = vld [vmem:[#allocation2 + $0xaa] sm:$0xff]  ;;  %v448_v56 = vld [vmem:[#allocation2 + $0xb2] sm:$0xff]  ;;  %v449_v33 = vld [vmem:[#allocation2 + $0xc2] sm:$0xff] }
  0x42   : > { %v450_v38 = vld [vmem:[#allocation2 + $0xca] sm:$0xff]  ;;  %v6386_v41 = vpack.i.bf16 %v448_v56, %v447_v54  ;;  %v451_v0 = vld [vmem:[#allocation2 + $0xda] sm:$0xff]  ;;  %v452_v11 = vld [vmem:[#allocation2 + $0xe2] sm:$0xff] }
  0x43   : > { %4692 = vrot.lane.b32.xlu1 %v6341_v57, %s6021_s25  ;;  %v6390_v43 = vpack.i.bf16 %v450_v38, %v449_v33  ;;  %v455_v54 = vld [vmem:[#allocation2 + $0x10a] sm:$0xff]  ;;  %v456_v56 = vld [vmem:[#allocation2 + $0x112] sm:$0xff]  ;;  %v457_v26 = vld [vmem:[#allocation2 + $0x122] sm:$0xff] }
  0x44   : > { %4697 = vrot.lane.b32.xlu0 %v6345_v58, %s6021_s25  ;;  %v458_v32 = vld [vmem:[#allocation2 + $0x12a] sm:$0xff]  ;;  %v6402_v33 = vpack.i.bf16 %v456_v56, %v455_v54  ;;  %v461_v28 = vld [vmem:[#allocation2 + $0x152] sm:$0xff]  ;;  %v462_v20 = vld [vmem:[#allocation2 + $0x15a] sm:$0xff] }
  0x45   : > { %v6406_v38 = vpack.i.bf16 %v458_v32, %v457_v26  ;;  %v463_v54 = vld [vmem:[#allocation2 + $0x16a] sm:$0xff]  ;;  %v464_v56 = vld [vmem:[#allocation2 + $0x172] sm:$0xff]  ;;  %v6418_v26 = vld [vmem:[#allocation2 + $0x20] sm:$0xff] }
  0x46   : > { %v6422_v32 = vpack.i.bf16 %v464_v56, %v463_v54  ;;  %v6451_v13 = vld [vmem:[#allocation2 + $0x78] sm:$0xff]  ;;  %v6453_v16 = vld [vmem:[#allocation2 + $0x80] sm:$0xff]  ;;  %v6467_v5 = vld [vmem:[#allocation2 + $0x90] sm:$0xff] }
  0x47   : > { %4702 = vrot.lane.b32.xlu1 %v6349_v50, %s6021_s25  ;;  %v6469_v4 = vld [vmem:[#allocation2 + $0x98] sm:$0xff]  ;;  %v6471_v7 = vld [vmem:[#allocation2 + $0xa8] sm:$0xff]  ;;  %v6473_v6 = vld [vmem:[#allocation2 + $0xb0] sm:$0xff] }
  0x48   : > { %4707 = vrot.lane.b32.xlu0 %v6353_v51, %s6021_s25  ;;  %9227 = vst [vmem:[#allocation19_spill] sm:$0xff] %v6471_v7  ;;  %v6479_v42 = vpack.i.bf16 %v6469_v4, %v6467_v5  ;;  %v6485_v37 = vpack.i.bf16 %v6473_v6, %v6471_v7  ;;  %v6487_v31 = vld [vmem:[#allocation2 + $0xc0] sm:$0xff]  ;;  %v6489_v36 = vld [vmem:[#allocation2 + $0xc8] sm:$0xff]  ;;  %v6491_v29 = vld [vmem:[#allocation2 + $0xd8] sm:$0xff] }
  0x49   : > { %9228 = vst [vmem:[#allocation20_spill] sm:$0xff] %v6487_v31  ;;  %9229 = vst [vmem:[#allocation21_spill] sm:$0xff] %v6489_v36  ;;  %v6493_v30 = vld [vmem:[#allocation2 + $0xe0] sm:$0xff]  ;;  %v6499_v23 = vpack.i.bf16 %v6489_v36, %v6487_v31  ;;  %v6507_v17 = vld [vmem:[#allocation2 + $0xf0] sm:$0xff] }
  0x4a   : > { %9230 = vst [vmem:[#allocation22_spill] sm:$0xff] %v6491_v29  ;;  %9231 = vst [vmem:[#allocation23_spill] sm:$0xff] %v6493_v30  ;;  %v6505_v24 = vpack.i.bf16 %v6493_v30, %v6491_v29  ;;  %v6509_v22 = vld [vmem:[#allocation2 + $0xf8] sm:$0xff]  ;;  %v6511_v9 = vld [vmem:[#allocation2 + $0x108] sm:$0xff] }
  0x4b   : > { %4712 = vrot.lane.b32.xlu1 %v6357_v48, %s6021_s25  ;;  %9232 = vst [vmem:[#allocation24_spill] sm:$0xff] %v6507_v17  ;;  %9233 = vst [vmem:[#allocation25_spill] sm:$0xff] %v6509_v22  ;;  %v6513_v10 = vld [vmem:[#allocation2 + $0x110] sm:$0xff]  ;;  %v6519_v3 = vpack.i.bf16 %v6509_v22, %v6507_v17  ;;  %v6527_v1 = vld [vmem:[#allocation2 + $0x120] sm:$0xff] }
  0x4c   : > { %4717 = vrot.lane.b32.xlu0 %v4716_v49, %s6022_s26  ;;  %v446_v49 = vld [vmem:[#allocation2 + $0x9a] sm:$0xff]  ;;  %9234 = vst [vmem:[#allocation26_spill] sm:$0xff] %v6511_v9  ;;  %9235 = vst [vmem:[#allocation27_spill] sm:$0xff] %v6513_v10  ;;  %v6525_v8 = vpack.i.bf16 %v6513_v10, %v6511_v9  ;;  %v6529_v2 = vld [vmem:[#allocation2 + $0x128] sm:$0xff] }
  0x4d   : > { %v6382_v40 = vpack.i.bf16 %v446_v49, %v445_v34  ;;  %v6394_v34 = vpack.i.bf16 %v452_v11, %v451_v0  ;;  %v6398_v49 = vpack.i.bf16 %v454_v27, %v453_v35  ;;  %v459_v0 = vld [vmem:[#allocation2 + $0x13a] sm:$0xff]  ;;  %v460_v11 = vld [vmem:[#allocation2 + $0x142] sm:$0xff]  ;;  %v6414_v35 = vpack.i.bf16 %v462_v20, %v461_v28  ;;  %9236 = vst [vmem:[#allocation28_spill] sm:$0xff] %v6527_v1  ;;  %v6547_v10 = vld [vmem:[#allocation2 + $0x150] sm:$0xff] }
  0x4e   : > { %v6410_v27 = vpack.i.bf16 %v460_v11, %v459_v0  ;;  %v4796_v0 = vpack.i.bf16 %v6418_v26, %v6416_v19  ;;  %v6428_v11 = vld [vmem:[#allocation2 + $0x30] sm:$0xff]  ;;  %v6430_v20 = vld [vmem:[#allocation2 + $0x38] sm:$0xff]  ;;  %v6432_v28 = vld [vmem:[#allocation2 + $0x48] sm:$0xff]  ;;  %9237 = vst [vmem:[#allocation29_spill] sm:$0xff] %v6529_v2  ;;  %v6539_v17 = vpack.i.bf16 %v6529_v2, %v6527_v1 }
  0x4f   : > { %4722 = vrot.lane.b32.xlu1 %v6363_v44, %s6022_s26  ;;  %v6440_v54 = vpack.i.bf16 %v6430_v20, %v6428_v11  ;;  %v6445_v56 = vpack.i.bf16 %v6434_v25, %v6432_v28  ;;  %v6531_v29 = vld [vmem:[#allocation2 + $0x138] sm:$0xff]  ;;  %v6533_v30 = vld [vmem:[#allocation2 + $0x140] sm:$0xff]  ;;  %v6551_v31 = vld [vmem:[#allocation2 + $0x168] sm:$0xff] }
  0x50   : > { %4727 = vrot.lane.b32.xlu0 %v6366_v45, %s6022_s26  ;;  %9238 = vst [vmem:[#allocation30_spill] sm:$0xff] %v6531_v29  ;;  %9239 = vst [vmem:[#allocation31_spill] sm:$0xff] %v6533_v30  ;;  %v6545_v9 = vpack.i.bf16 %v6533_v30, %v6531_v29  ;;  %v6549_v22 = vld [vmem:[#allocation2 + $0x158] sm:$0xff]  ;;  %v6553_v36 = vld [vmem:[#allocation2 + $0x170] sm:$0xff] }
  0x51   : > { %v6559_v1 = vpack.i.bf16 %v6549_v22, %v6547_v10  ;;  %v6565_v29 = vpack.i.bf16 %v6553_v36, %v6551_v31  ;;  %v495_v30 = vld [vmem:[#allocation2 + $0x180] sm:$0xff]  ;;  %v496_v2 = vld [vmem:[#allocation2 + $0x188] sm:$0xff] }
  0x52   : > { %v6569_v7 = vpack.i.bf16 %v496_v2, %v495_v30 }
  0x53   : > { %4732 = vrot.lane.b32.xlu1 %v6370_v46, %s6022_s26 }
  0x54   : > { %4737 = vrot.lane.b32.xlu0 %v6374_v47, %s6022_s26 }
  0x57   : > { %4742 = vrot.lane.b32.xlu1 %v6378_v39, %s6022_s26 }
  0x58   : > { %4747 = vrot.lane.b32.xlu0 %v6382_v40, %s6022_s26 }
  0x5b   : > { %4752 = vrot.lane.b32.xlu1 %v6386_v41, %s6022_s26 }
  0x5c   : > { %4757 = vrot.lane.b32.xlu0 %v6390_v43, %s6022_s26 }
  0x5f   : > { %4762 = vrot.lane.b32.xlu1 %v6394_v34, %s6022_s26 }
  0x60   : > { %4767 = vrot.lane.b32.xlu0 %v6398_v49, %s6022_s26 }
  0x63   : > { %4772 = vrot.lane.b32.xlu1 %v6402_v33, %s6022_s26 }
  0x64   : > { %4777 = vrot.lane.b32.xlu0 %v6406_v38, %s6022_s26 }
  0x67   : > { %4782 = vrot.lane.b32.xlu1 %v6410_v27, %s6022_s26 }
  0x68   : > { %4787 = vrot.lane.b32.xlu0 %v6414_v35, %s6022_s26 }
  0x6b   : > { %4792 = vrot.lane.b32.xlu1 %v6422_v32, %s6022_s26 }
  0x6c   : > { %4797 = vrot.lane.b32.xlu0 %v4796_v0, %s6023_s27  ;;  %v6465_v0 = vpack.i.bf16 %v6453_v16, %v6451_v13 }
  0x6f   : > { %4802 = vrot.lane.b32.xlu1 %v6440_v54, %s6023_s27 }
  0x70   : > { %4807 = vrot.lane.b32.xlu0 %v6445_v56, %s6023_s27 }
  0x73   : > { %4812 = vrot.lane.b32.xlu1 %v6459_v15, %s6023_s27 }
  0x74   : > { %4817 = vrot.lane.b32.xlu0 %v6465_v0, %s6023_s27 }
  0x77   : > { %4822 = vrot.lane.b32.xlu1 %v6479_v42, %s6023_s27 }
  0x78   : > { %4827 = vrot.lane.b32.xlu0 %v6485_v37, %s6023_s27 }
  0x7b   : > { %4832 = vrot.lane.b32.xlu1 %v6499_v23, %s6023_s27 }
  0x7c   : > { %4837 = vrot.lane.b32.xlu0 %v6505_v24, %s6023_s27 }
  0x7f   : > { %4842 = vrot.lane.b32.xlu1 %v6519_v3, %s6023_s27 }
  0x80   : > { %4847 = vrot.lane.b32.xlu0 %v6525_v8, %s6023_s27 }
  0x83   : > { %4852 = vrot.lane.b32.xlu1 %v6539_v17, %s6023_s27 }
  0x84   : > { %4857 = vrot.lane.b32.xlu0 %v6545_v9, %s6023_s27 }
  0x87   : > { %4862 = vrot.lane.b32.xlu1 %v6559_v1, %s6023_s27 }
  0x88   : > { %4867 = vrot.lane.b32.xlu0 %v6565_v29, %s6023_s27 }
  0x89   : > { %v6593_v2 = vpop.permute.xlu0 %4637 }
  0x8b   : > { %4872 = vrot.lane.b32.xlu1 %v6569_v7, %s6023_s27 }
  0x8c   : > { %4877 = vrot.lane.b32.xlu0 %v6305_v59, %s6024_s28  ;;  %v527_v59 = vld [vmem:[#allocation2 + $0x181] sm:$0xff] }
  0x8f   : > { %4882 = vrot.lane.b32.xlu1 %v6297_v55, %s6024_s28 }
  0x90   : > { %4887 = vrot.lane.b32.xlu0 %v6309_v62, %s6024_s28  ;;  %v528_v62 = vld [vmem:[#allocation2 + $0x189] sm:$0xff] }
  0x93   : > { %4892 = vrot.lane.b32.xlu1 %v6313_v63, %s6024_s28 }
  0x94   : > { %4897 = vrot.lane.b32.xlu0 %v6317_v52, %s6024_s28 }
  0x97   : > { %4902 = vrot.lane.b32.xlu1 %v6321_v53, %s6024_s28  ;;  %v6613_v53 = vpack.i.bf16 %v528_v62, %v527_v59 }
  0x98   : > { %4907 = vrot.lane.b32.xlu0 %v6325_v60, %s6024_s28 }
  0x9b   : > { %4912 = vrot.lane.b32.xlu1 %v6329_v61, %s6024_s28 }
  0x9c   : > { %4917 = vrot.lane.b32.xlu0 %v6333_v12, %s6024_s28 }
  0x9f   : > { %4922 = vrot.lane.b32.xlu1 %v6337_v18, %s6024_s28 }
  0xa0   : > { %4927 = vrot.lane.b32.xlu0 %v6341_v57, %s6024_s28 }
  0xa1   : > { %v6599_v30 = vpop.permute.xlu1 %4647 }
  0xa2   : > { %v6601_v55 = vpop.permute.xlu0 %4642 }
  0xa3   : > { %4932 = vrot.lane.b32.xlu1 %v6345_v58, %s6024_s28 }
  0xa4   : > { %4937 = vrot.lane.b32.xlu0 %v6349_v50, %s6024_s28 }
  0xa5   : > { %v6607_v63 = vpop.permute.xlu1 %4652 }
  0xa6   : > { %v6609_v52 = vpop.permute.xlu0 %4657 }
  0xa7   : > { %4942 = vrot.lane.b32.xlu1 %v6353_v51, %s6024_s28 }
  0xa8   : > { %4947 = vrot.lane.b32.xlu0 %v6357_v48, %s6024_s28 }
  0xa9   : > { %v6617_v60 = vpop.permute.xlu1 %4662 }
  0xaa   : > { %v6619_v61 = vpop.permute.xlu0 %4667 }
  0xab   : > { %4952 = vrot.lane.b32.xlu1 %v6613_v53, %s6024_s28 }
  0xac   : > { %4957 = vrot.lane.b32.xlu0 %v6363_v44, %s6025_s29 }
  0xad   : > { %v6625_v12 = vpop.permute.xlu1 %4672 }
  0xae   : > { %v6627_v18 = vpop.permute.xlu0 %4677 }
  0xaf   : > { %4962 = vrot.lane.b32.xlu1 %v6366_v45, %s6025_s29 }
  0xb0   : > { %4967 = vrot.lane.b32.xlu0 %v6370_v46, %s6025_s29 }
  0xb1   : > { %v6633_v57 = vpop.permute.xlu1 %4682 }
  0xb2   : > { %v6635_v58 = vpop.permute.xlu0 %4687 }
  0xb3   : > { %4972 = vrot.lane.b32.xlu1 %v6374_v47, %s6025_s29 }
  0xb4   : > { %4977 = vrot.lane.b32.xlu0 %v6378_v39, %s6025_s29 }
  0xb5   : > { %v6641_v50 = vpop.permute.xlu1 %4692 }
  0xb6   : > { %v6643_v51 = vpop.permute.xlu0 %4697 }
  0xb7   : > { %4982 = vrot.lane.b32.xlu1 %v6382_v40, %s6025_s29  ;;  %v559_v40 = vld [vmem:[#allocation2 + $0x182] sm:$0xff] }
  0xb8   : > { %4987 = vrot.lane.b32.xlu0 %v6386_v41, %s6025_s29  ;;  %v560_v41 = vld [vmem:[#allocation2 + $0x18a] sm:$0xff] }
  0xb9   : > { %v6649_v48 = vpop.permute.xlu1 %4702 }
  0xba   : > { %v6651_v44 = vpop.permute.xlu0 %4707 }
  0xbb   : > { %4992 = vrot.lane.b32.xlu1 %v6390_v43, %s6025_s29 }
  0xbc   : > { %4997 = vrot.lane.b32.xlu0 %v6394_v34, %s6025_s29 }
  0xbd   : > { %v6657_v45 = vpop.permute.xlu1 %4712 }
  0xbe   : > { %v6659_v46 = vpop.permute.xlu0 %4717 }
  0xbf   : > { %5002 = vrot.lane.b32.xlu1 %v6398_v49, %s6025_s29  ;;  %v6679_v49 = vpack.i.bf16 %v560_v41, %v559_v40  ;;  %v594_v41 = vld [vmem:[#allocation2 + $0x31] sm:$0xff] }
  0xc0   : > { %5007 = vrot.lane.b32.xlu0 %v6402_v33, %s6025_s29 }
  0xc1   : > { %v6665_v47 = vpop.permute.xlu1 %4722 }
  0xc2   : > { %v6667_v39 = vpop.permute.xlu0 %4727 }
  0xc3   : > { %5012 = vrot.lane.b32.xlu1 %v6406_v38, %s6025_s29 }
  0xc4   : > { %5017 = vrot.lane.b32.xlu0 %v6410_v27, %s6025_s29 }
  0xc5   : > { %v6673_v43 = vpop.permute.xlu1 %4732 }
  0xc6   : > { %v6675_v34 = vpop.permute.xlu0 %4737 }
  0xc7   : > { %5022 = vrot.lane.b32.xlu1 %v6414_v35, %s6025_s29 }
  0xc8   : > { %5027 = vrot.lane.b32.xlu0 %v6422_v32, %s6025_s29 }
  0xc9   : > { %v6683_v33 = vpop.permute.xlu1 %4742 }
  0xca   : > { %v6685_v38 = vpop.permute.xlu0 %4747 }
  0xcb   : > { %5032 = vrot.lane.b32.xlu1 %v6679_v49, %s6025_s29 }
  0xcc   : > { %5037 = vrot.lane.b32.xlu0 %v6440_v54, %s6026_s30 }
  0xcd   : > { %v6691_v27 = vpop.permute.xlu1 %4752 }
  0xce   : > { %v6693_v59 = vpop.permute.xlu0 %4757 }
  0xcf   : > { %5042 = vrot.lane.b32.xlu1 %v6445_v56, %s6026_s30 }
  0xd0   : > { %5047 = vrot.lane.b32.xlu0 %v6459_v15, %s6026_s30 }
  0xd1   : > { %v6699_v35 = vpop.permute.xlu1 %4762 }
  0xd2   : > { %v6701_v32 = vpop.permute.xlu0 %4767 }
  0xd3   : > { %5052 = vrot.lane.b32.xlu1 %v6465_v0, %s6026_s30 }
  0xd4   : > { %5057 = vrot.lane.b32.xlu0 %v6479_v42, %s6026_s30 }
  0xd5   : > { %v6707_v54 = vpop.permute.xlu1 %4772 }
  0xd6   : > { %v6709_v62 = vpop.permute.xlu0 %4777 }
  0xd7   : > { %9240 = vst [vmem:[#allocation32_spill] sm:$0xff] %v6709_v62  ;;  %5062 = vrot.lane.b32.xlu1 %v6485_v37, %s6026_s30  ;;  %v608_v62 = vld [vmem:[#allocation2 + $0xd9] sm:$0xff] }
  0xd8   : > { %5067 = vrot.lane.b32.xlu0 %v6499_v23, %s6026_s30 }
  0xd9   : > { %v6715_v15 = vpop.permute.xlu1 %4782 }
  0xda   : > { %9241 = vst [vmem:[#allocation33_spill] sm:$0xff] %v6715_v15  ;;  %v6717_v56 = vpop.permute.xlu0 %4787 }
  0xdb   : > { %9242 = vst [vmem:[#allocation34_spill] sm:$0xff] %v6717_v56  ;;  %5072 = vrot.lane.b32.xlu1 %v6505_v24, %s6026_s30  ;;  %v593_v24 = vld [vmem:[#allocation2 + $0x1a0] sm:$0xff]  ;;  %v599_v56 = vld [vmem:[#allocation2 + $0x69] sm:$0xff] }
  0xdc   : > { %5077 = vrot.lane.b32.xlu0 %v6519_v3, %s6026_s30  ;;  %v592_v3 = vld [vmem:[#allocation2 + $0x198] sm:$0xff] }
  0xdd   : > { %v6723_v42 = vpop.permute.xlu1 %4792 }
  0xde   : > { %9243 = vst [vmem:[#allocation35_spill] sm:$0xff] %v6723_v42  ;;  %v6725_v0 = vpop.permute.xlu0 %4797 }
  0xdf   : > { %9244 = vst [vmem:[#allocation36_spill] sm:$0xff] %v6725_v0  ;;  %5082 = vrot.lane.b32.xlu1 %v6525_v8, %s6026_s30  ;;  %v595_v0 = vld [vmem:[#allocation2 + $0x39] sm:$0xff] }
  0xe0   : > { %5087 = vrot.lane.b32.xlu0 %v6539_v17, %s6026_s30  ;;  %v5111_v17 = vpack.i.bf16 %v593_v24, %v592_v3  ;;  %v600_v3 = vld [vmem:[#allocation2 + $0x79] sm:$0xff]  ;;  %v601_v24 = vld [vmem:[#allocation2 + $0x81] sm:$0xff] }
  0xe1   : > { %v6731_v23 = vpop.permute.xlu1 %4802 }
  0xe2   : > { %9245 = vst [vmem:[#allocation37_spill] sm:$0xff] %v6731_v23  ;;  %v6733_v37 = vpop.permute.xlu0 %4807  ;;  %v597_v23 = vld [vmem:[#allocation2 + $0x51] sm:$0xff] }
  0xe3   : > { %9246 = vst [vmem:[#allocation38_spill] sm:$0xff] %v6733_v37  ;;  %5092 = vrot.lane.b32.xlu1 %v6545_v9, %s6026_s30  ;;  %v5116_v37 = vpack.i.bf16 %v595_v0, %v594_v41  ;;  %v596_v9 = vld [vmem:[#allocation2 + $0x49] sm:$0xff]  ;;  %v603_v0 = vld [vmem:[#allocation2 + $0x99] sm:$0xff] }
  0xe4   : > { %5097 = vrot.lane.b32.xlu0 %v6559_v1, %s6026_s30  ;;  %v598_v1 = vld [vmem:[#allocation2 + $0x61] sm:$0xff] }
  0xe5   : > { %v6739_v40 = vpop.permute.xlu1 %4812 }
  0xe6   : > { %9247 = vst [vmem:[#allocation39_spill] sm:$0xff] %v6739_v40  ;;  %v6741_v8 = vpop.permute.xlu0 %4817  ;;  %v5121_v40 = vpack.i.bf16 %v597_v23, %v596_v9  ;;  %v605_v23 = vld [vmem:[#allocation2 + $0xb1] sm:$0xff] }
  0xe7   : > { %9248 = vst [vmem:[#allocation40_spill] sm:$0xff] %v6741_v8  ;;  %5102 = vrot.lane.b32.xlu1 %v6565_v29, %s6026_s30  ;;  %v5126_v29 = vpack.i.bf16 %v599_v56, %v598_v1  ;;  %v607_v56 = vld [vmem:[#allocation2 + $0xc9] sm:$0xff] }
  0xe8   : > { %5107 = vrot.lane.b32.xlu0 %v6569_v7, %s6026_s30  ;;  %v602_v7 = vld [vmem:[#allocation2 + $0x91] sm:$0xff] }
  0xe9   : > { %v6747_v42 = vpop.permute.xlu1 %4822 }
  0xea   : > { %9249 = vst [vmem:[#allocation41_spill] sm:$0xff] %v6747_v42  ;;  %v6749_v15 = vpop.permute.xlu0 %4827  ;;  %v5131_v42 = vpack.i.bf16 %v601_v24, %v600_v3  ;;  %v611_v24 = vld [vmem:[#allocation2 + $0xf9] sm:$0xff] }
  0xeb   : > { %9250 = vst [vmem:[#allocation42_spill] sm:$0xff] %v6749_v15  ;;  %5112 = vrot.lane.b32.xlu1 %v5111_v17, %s6026_s30  ;;  %v5136_v15 = vpack.i.bf16 %v603_v0, %v602_v7  ;;  %v604_v17 = vld [vmem:[#allocation2 + $0xa9] sm:$0xff] }
  0xec   : > { %5117 = vrot.lane.b32.xlu0 %v5116_v37, %s6027_s6  ;;  %v606_v37 = vld [vmem:[#allocation2 + $0xc1] sm:$0xff] }
  0xed   : > { %v6753_v8 = vpop.permute.xlu1 %4832 }
  0xee   : > { %9251 = vst [vmem:[#allocation43_spill] sm:$0xff] %v6753_v8  ;;  %v6755_v41 = vpop.permute.xlu0 %4837  ;;  %v5141_v8 = vpack.i.bf16 %v605_v23, %v604_v17  ;;  %v615_v23 = vld [vmem:[#allocation2 + $0x129] sm:$0xff] }
  0xef   : > { %9252 = vst [vmem:[#allocation44_spill] sm:$0xff] %v6755_v41  ;;  %5122 = vrot.lane.b32.xlu1 %v5121_v40, %s6027_s6  ;;  %v5146_v41 = vpack.i.bf16 %v607_v56, %v606_v37  ;;  %v609_v40 = vld [vmem:[#allocation2 + $0xe1] sm:$0xff]  ;;  %v5996_v56 = vld [vmem:[%s9055_s1 + $0x10] ss:$0 sps:$4 sm:$0x33]  }
  0xf0   : > { %5127 = vrot.lane.b32.xlu0 %v5126_v29, %s6027_s6  ;;  %v610_v29 = vld [vmem:[#allocation2 + $0xf1] sm:$0xff]  ;;  %v5151_v0 = vpack.i.bf16 %v609_v40, %v608_v62  ;;  %4616 = vmatprep.subr.msk.bf16.mxu0 %vm2037_vm3, %v5996_v56  ;;  %v2039_v40 = vsel %vm2037_vm3, %v5996_v56, 0 }
  0xf1   : > { %v6759_v9 = vpop.permute.xlu1 %4842  ;;  %4541 = vmatpush3.bf16.msra.mxu0 %v2039_v40  ;;  %v5998_v40 = vld [vmem:[%s9055_s1] sm:$0xff]  }
  0xf2   : > { %9253 = vst [vmem:[#allocation45_spill] sm:$0xff] %v6759_v9  ;;  %v6761_v1 = vpop.permute.xlu0 %4847  ;;  %v612_v9 = vld [vmem:[#allocation2 + $0x109] sm:$0xff] }
  0xf3   : > { %9254 = vst [vmem:[#allocation46_spill] sm:$0xff] %v6761_v1  ;;  %5132 = vrot.lane.b32.xlu1 %v5131_v42, %s6027_s6  ;;  %v5156_v1 = vpack.i.bf16 %v611_v24, %v610_v29  ;;  %v613_v42 = vld [vmem:[#allocation2 + $0x111] sm:$0xff] }
  0xf4   : > { %5137 = vrot.lane.b32.xlu0 %v5136_v15, %s6027_s6  ;;  %v614_v15 = vld [vmem:[#allocation2 + $0x121] sm:$0xff]  ;;  %v618_v24 = vld [vmem:[#allocation2 + $0x151] sm:$0xff] }
  0xf5   : > { %v6765_v3 = vpop.permute.xlu1 %4852  ;;  %v5166_v62 = vpack.i.bf16 %v615_v23, %v614_v15  ;;  %v621_v15 = vld [vmem:[#allocation2 + $0x171] sm:$0xff] }
  0xf6   : > { %v6767_v7 = vpop.permute.xlu0 %4857 }
  0xf7   : > { %9255 = vst [vmem:[#allocation47_spill] sm:$0xff] %v6767_v7  ;;  %5142 = vrot.lane.b32.xlu1 %v5141_v8, %s6027_s6  ;;  %v5161_v7 = vpack.i.bf16 %v613_v42, %v612_v9  ;;  %v616_v8 = vld [vmem:[#allocation2 + $0x139] sm:$0xff]  ;;  %v620_v42 = vld [vmem:[#allocation2 + $0x169] sm:$0xff] }
  0xf8   : > { %5147 = vrot.lane.b32.xlu0 %v5146_v41, %s6027_s6  ;;  %v617_v41 = vld [vmem:[#allocation2 + $0x141] sm:$0xff] }
  0xf9   : > { %v6771_v17 = vpop.permute.xlu1 %4862  ;;  %v5171_v9 = vpack.i.bf16 %v617_v41, %v616_v8  ;;  %v626_v8 = vld [vmem:[#allocation2 + $0x32] sm:$0xff]  ;;  %v627_v41 = vld [vmem:[#allocation2 + $0x3a] sm:$0xff] }
  0xfa   : > { %9256 = vst [vmem:[#allocation48_spill] sm:$0xff] %v6771_v17  ;;  %v6773_v37 = vpop.permute.xlu0 %4867  ;;  %v619_v17 = vld [vmem:[#allocation2 + $0x159] sm:$0xff] }
  0xfb   : > { %9257 = vst [vmem:[#allocation49_spill] sm:$0xff] %v6773_v37  ;;  %5152 = vrot.lane.b32.xlu1 %v5151_v0, %s6027_s6  ;;  %v5997_v0 = vld [vmem:[%s9055_s1 + $0x8] sm:$0xff]  }
  0xfc   : > { %5157 = vrot.lane.b32.xlu0 %v5156_v1, %s6027_s6  ;;  %v5176_v1 = vpack.i.bf16 %v619_v17, %v618_v24  ;;  %4542 = vmatprep.subr.bf16.mxu0 %v5997_v0 }
  0xfd   : > { %v6780_v29 = vpop.permute.xlu1 %4872  ;;  %4543 = vmatpush3.bf16.msra.mxu0 %v5997_v0 }
  0xfe   : > { %9258 = vst [vmem:[#allocation50_spill] sm:$0xff] %v6780_v29  ;;  %v6782_v37 = vpop.permute.xlu0 %4877  ;;  %v5181_v29 = vpack.i.bf16 %v621_v15, %v620_v42  ;;  %4544 = vmatprep.subr.bf16.mxu0 %v5998_v40  ;;  %v628_v42 = vld [vmem:[#allocation2 + $0x4a] sm:$0xff]  ;;  %v629_v15 = vld [vmem:[#allocation2 + $0x52] sm:$0xff] }
  0xff   : > { %9259 = vst [vmem:[#allocation51_spill] sm:$0xff] %v6782_v37  ;;  %5162 = vrot.lane.b32.xlu1 %v5161_v7, %s6027_s6  ;;  %v624_v7 = vld [vmem:[#allocation2 + $0x199] sm:$0xff] }
 0x100   : > { %5167 = vrot.lane.b32.xlu0 %v5166_v62, %s6027_s6  ;;  %v625_v62 = vld [vmem:[#allocation2 + $0x1a1] sm:$0xff] }
 0x101   : > { %v6789_v23 = vpop.permute.xlu1 %4882  ;;  %4545 = vmatpush3.bf16.msra.mxu0 %v5998_v40  ;;  %v5191_v0 = vpack.i.bf16 %v625_v62, %v624_v7  ;;  %v5201_v40 = vpack.i.bf16 %v629_v15, %v628_v42  ;;  %v632_v7 = vld [vmem:[#allocation2 + $0x7a] sm:$0xff]  ;;  %v633_v62 = vld [vmem:[#allocation2 + $0x82] sm:$0xff]  ;;  %v637_v42 = vld [vmem:[#allocation2 + $0xb2] sm:$0xff] }
 0x102   : > { %9260 = vst [vmem:[#allocation52_spill] sm:$0xff] %v6789_v23  ;;  %v6791_v56 = vpop.permute.xlu0 %4887  ;;  %v631_v23 = vld [vmem:[#allocation2 + $0x6a] sm:$0xff] }
 0x103   : > { %9261 = vst [vmem:[#allocation53_spill] sm:$0xff] %v6791_v56  ;;  %5172 = vrot.lane.b32.xlu1 %v5171_v9, %s6027_s6  ;;  %v5196_v9 = vpack.i.bf16 %v627_v41, %v626_v8  ;;  %v630_v56 = vld [vmem:[#allocation2 + $0x62] sm:$0xff]  ;;  %v635_v8 = vld [vmem:[#allocation2 + $0x9a] sm:$0xff] }
 0x104   : > { %5177 = vrot.lane.b32.xlu0 %v5176_v1, %s6027_s6 }
 0x105   : > { %v6798_v17 = vpop.permute.xlu1 %4892 }
 0x106   : > { %9262 = vst [vmem:[#allocation54_spill] sm:$0xff] %v6798_v17  ;;  %v6800_v24 = vpop.permute.xlu0 %4897  ;;  %v640_v17 = vld [vmem:[#allocation2 + $0xda] sm:$0xff] }
 0x107   : > { %9263 = vst [vmem:[#allocation55_spill] sm:$0xff] %v6800_v24  ;;  %5182 = vrot.lane.b32.xlu1 %v5181_v29, %s6027_s6  ;;  %v5206_v29 = vpack.i.bf16 %v631_v23, %v630_v56  ;;  %v639_v23 = vld [vmem:[#allocation2 + $0xca] sm:$0xff] }
 0x108   : > { %5187 = vrot.lane.b32.xlu0 %v6613_v53, %s6027_s6  ;;  %v634_v53 = vld [vmem:[#allocation2 + $0x92] sm:$0xff] }
 0x109   : > { %v6805_v1 = vpop.permute.xlu1 %4902 }
 0x10a   : > { %9264 = vst [vmem:[#allocation56_spill] sm:$0xff] %v6805_v1  ;;  %v6807_v37 = vpop.permute.xlu0 %4907  ;;  %v5211_v1 = vpack.i.bf16 %v633_v62, %v632_v7  ;;  %v643_v62 = vld [vmem:[#allocation2 + $0xfa] sm:$0xff] }
 0x10b   : > { %9265 = vst [vmem:[#allocation57_spill] sm:$0xff] %v6807_v37  ;;  %5192 = vrot.lane.b32.xlu1 %v5191_v0, %s6027_s6  ;;  %v5216_v37 = vpack.i.bf16 %v635_v8, %v634_v53  ;;  %v636_v0 = vld [vmem:[#allocation2 + $0xaa] sm:$0xff] }
 0x10c   : > { %5197 = vrot.lane.b32.xlu0 %v5196_v9, %s6028_s13  ;;  %v638_v9 = vld [vmem:[#allocation2 + $0xc2] sm:$0xff] }
 0x10d   : > { %v6811_v24 = vpop.permute.xlu1 %4912 }
 0x10e   : > { %9266 = vst [vmem:[#allocation58_spill] sm:$0xff] %v6811_v24  ;;  %v6813_v41 = vpop.permute.xlu0 %4917  ;;  %v5221_v24 = vpack.i.bf16 %v637_v42, %v636_v0  ;;  %v647_v42 = vld [vmem:[#allocation2 + $0x12a] sm:$0xff] }
 0x10f   : > { %9267 = vst [vmem:[#allocation59_spill] sm:$0xff] %v6813_v41  ;;  %5202 = vrot.lane.b32.xlu1 %v5201_v40, %s6028_s13  ;;  %v5226_v41 = vpack.i.bf16 %v639_v23, %v638_v9  ;;  %v641_v40 = vld [vmem:[#allocation2 + $0xe2] sm:$0xff] }
 0x110   : > { %5207 = vrot.lane.b32.xlu0 %v5206_v29, %s6028_s13  ;;  %v642_v29 = vld [vmem:[#allocation2 + $0xf2] sm:$0xff]  ;;  %v5231_v8 = vpack.i.bf16 %v641_v40, %v640_v17  ;;  %v651_v40 = vld [vmem:[#allocation2 + $0x15a] sm:$0xff] }
 0x111   : > { %v6817_v15 = vpop.permute.xlu1 %4922 }
 0x112   : > { %9268 = vst [vmem:[#allocation60_spill] sm:$0xff] %v6817_v15  ;;  %v6819_v56 = vpop.permute.xlu0 %4927  ;;  %v644_v15 = vld [vmem:[#allocation2 + $0x10a] sm:$0xff] }
 0x113   : > { %9269 = vst [vmem:[#allocation61_spill] sm:$0xff] %v6819_v56  ;;  %5212 = vrot.lane.b32.xlu1 %v5211_v1, %s6028_s13  ;;  %v5236_v56 = vpack.i.bf16 %v643_v62, %v642_v29  ;;  %v645_v1 = vld [vmem:[#allocation2 + $0x112] sm:$0xff] }
 0x114   : > { %5217 = vrot.lane.b32.xlu0 %v5216_v37, %s6028_s13  ;;  %v646_v37 = vld [vmem:[#allocation2 + $0x122] sm:$0xff]  ;;  %v5241_v23 = vpack.i.bf16 %v645_v1, %v644_v15 }
 0x115   : > { %v6823_v7 = vpop.permute.xlu1 %4932 }
 0x116   : > { %9270 = vst [vmem:[#allocation62_spill] sm:$0xff] %v6823_v7  ;;  %v6825_v53 = vpop.permute.xlu0 %4937  ;;  %v648_v7 = vld [vmem:[#allocation2 + $0x13a] sm:$0xff] }
 0x117   : > { %9271 = vst [vmem:[#allocation63_spill] sm:$0xff] %v6825_v53  ;;  %5222 = vrot.lane.b32.xlu1 %v5221_v24, %s6028_s13  ;;  %v5246_v53 = vpack.i.bf16 %v647_v42, %v646_v37  ;;  %v649_v24 = vld [vmem:[#allocation2 + $0x142] sm:$0xff]  ;;  %v656_v37 = vld [vmem:[#allocation2 + $0x19a] sm:$0xff] }
 0x118   : > { %5227 = vrot.lane.b32.xlu0 %v5226_v41, %s6028_s13  ;;  %v650_v41 = vld [vmem:[#allocation2 + $0x152] sm:$0xff]  ;;  %v5251_v62 = vpack.i.bf16 %v649_v24, %v648_v7  ;;  %v657_v42 = vld [vmem:[#allocation2 + $0x1a2] sm:$0xff] }
 0x119   : > { %v6829_v0 = vpop.permute.xlu1 %4942  ;;  %v5271_v7 = vpack.i.bf16 %v657_v42, %v656_v37  ;;  %v4650_v37 = vunpack.i.h.bf16 %v6599_v30  ;;  %v4649_v42 = vunpack.i.l.bf16 %v6599_v30 }
 0x11a   : > { %9272 = vst [vmem:[#allocation64_spill] sm:$0xff] %v6829_v0  ;;  %v6831_v9 = vpop.permute.xlu0 %4947  ;;  %v652_v0 = vld [vmem:[#allocation2 + $0x16a] sm:$0xff] }
 0x11b   : > { %9273 = vst [vmem:[#allocation65_spill] sm:$0xff] %v6831_v9  ;;  %5232 = vrot.lane.b32.xlu1 %v5231_v8, %s6028_s13  ;;  %v5256_v9 = vpack.i.bf16 %v651_v40, %v650_v41  ;;  %v653_v8 = vld [vmem:[#allocation2 + $0x172] sm:$0xff] }
 0x11c   : > { %5237 = vrot.lane.b32.xlu0 %v5236_v56, %s6028_s13  ;;  %v5261_v1 = vpack.i.bf16 %v653_v8, %v652_v0  ;;  %v4639_v8 = vunpack.i.l.bf16 %v6593_v2 }
 0x11d   : > { %v6835_v17 = vpop.permute.xlu1 %4952 }
 0x11e   : > { %9274 = vst [vmem:[#allocation66_spill] sm:$0xff] %v6835_v17  ;;  %v6837_v29 = vpop.permute.xlu0 %4957 }
 0x11f   : > { %5242 = vrot.lane.b32.xlu1 %v5241_v23, %s6028_s13 }
 0x120   : > { %5247 = vrot.lane.b32.xlu0 %v5246_v53, %s6028_s13 }
 0x121   : > { %v6841_v15 = vpop.permute.xlu1 %4962 }
 0x122   : > { %v6843_v56 = vpop.permute.xlu0 %4967 }
 0x123   : > { %5252 = vrot.lane.b32.xlu1 %v5251_v62, %s6028_s13  ;;  %v4640_v62 = vunpack.i.h.bf16 %v6593_v2  ;;  %v4659_v2 = vunpack.i.l.bf16 %v6609_v52 }
 0x124   : > { %5257 = vrot.lane.b32.xlu0 %v5256_v9, %s6028_s13 }
 0x125   : > { %v6847_v17 = vpop.permute.xlu1 %4972 }
 0x126   : > { %9275 = vst [vmem:[#allocation67_spill] sm:$0xff] %v6847_v17  ;;  %v6849_v23 = vpop.permute.xlu0 %4977 }
 0x127   : > { %9276 = vst [vmem:[#allocation68_spill] sm:$0xff] %v6849_v23  ;;  %5262 = vrot.lane.b32.xlu1 %v5261_v1, %s6028_s13  ;;  %v370_v1 = vld [vmem:[#allocation2 + $0x8] sm:$0xff]  ;;  %v4665_v23 = vunpack.i.h.bf16 %v6617_v60 }
 0x128   : > { %5267 = vrot.lane.b32.xlu0 %v6679_v49, %s6028_s13  ;;  %v369_v49 = vld [vmem:[#allocation2] sm:$0xff]  ;;  %v6883_v30 = vsel %vm226_vm0, %v370_v1, %v4640_v62  ;;  %v4669_v62 = vunpack.i.l.bf16 %v6619_v61 }
 0x129   : > { %v6854_v53 = vpop.permute.xlu1 %4982  ;;  %v6886_v17 = vsel %vm226_vm0, %v369_v49, %v4639_v8 }
 0x12a   : > { %9277 = vst [vmem:[#allocation69_spill] sm:$0xff] %v6854_v53  ;;  %v6856_v24 = vpop.permute.xlu0 %4987 }
 0x12b   : > { %9278 = vst [vmem:[#allocation70_spill] sm:$0xff] %v6856_v24  ;;  %5272 = vrot.lane.b32.xlu1 %v5271_v7, %s6028_s13  ;;  %v4644_v7 = vunpack.i.l.bf16 %v6601_v55 }
 0x12d   : > { %v6859_v0 = vpop.permute.xlu1 %4992 }
 0x12e   : > { %9279 = vst [vmem:[#allocation71_spill] sm:$0xff] %v6859_v0  ;;  %v6861_v9 = vpop.permute.xlu0 %4997  ;;  %v4660_v0 = vunpack.i.h.bf16 %v6609_v52  ;;  %v6900_v52 = vsel %vm226_vm0, %v6416_v19, %v4644_v7  ;;  %v9289_v7 = vld [vmem:[#allocation21_spill] sm:$0xff] }
 0x12f   : > { %9280 = vst [vmem:[#allocation72_spill] sm:$0xff] %v6861_v9  ;;  %v4645_v9 = vunpack.i.h.bf16 %v6601_v55  ;;  %v4664_v55 = vunpack.i.l.bf16 %v6617_v60 }
 0x130   : > { %v6919_v19 = vsel %vm226_vm0, %v6449_v14, %v4660_v0  ;;  %v4680_v0 = vunpack.i.h.bf16 %v6627_v18 }
 0x131   : > { %v6863_v41 = vpop.permute.xlu1 %5002  ;;  %v6907_v60 = vsel %vm226_vm0, %v6418_v26, %v4645_v9  ;;  %v6929_v26 = vsel %vm226_vm0, %v6453_v16, %v4665_v23  ;;  %v4674_v9 = vunpack.i.l.bf16 %v6625_v12  ;;  %v6945_v16 = vsel %vm226_vm0, %v6467_v5, %v4669_v62 }
 0x132   : > { %9281 = vst [vmem:[#allocation73_spill] sm:$0xff] %v6863_v41  ;;  %v6865_v40 = vpop.permute.xlu0 %5007  ;;  %v4655_v41 = vunpack.i.h.bf16 %v6607_v63  ;;  %v4685_v23 = vunpack.i.h.bf16 %v6633_v57  ;;  %v4704_v62 = vunpack.i.l.bf16 %v6649_v48 }
 0x133   : > { %9282 = vst [vmem:[#allocation74_spill] sm:$0xff] %v6865_v40  ;;  %v4654_v40 = vunpack.i.l.bf16 %v6607_v63  ;;  %v6892_v63 = vsel %vm226_vm0, %v6428_v11, %v4649_v42  ;;  %v4699_v42 = vunpack.i.l.bf16 %v6643_v51 }
 0x134   : > { %v6911_v11 = vsel %vm226_vm0, %v6434_v25, %v4655_v41  ;;  %v4675_v25 = vunpack.i.h.bf16 %v6625_v12  ;;  %v4684_v12 = vunpack.i.l.bf16 %v6633_v57  ;;  %v4690_v41 = vunpack.i.h.bf16 %v6635_v58  ;;  %v9288_v57 = vld [vmem:[#allocation19_spill] sm:$0xff] }
 0x135   : > { %v6872_v24 = vpop.permute.xlu1 %5012 }
 0x136   : > { %9283 = vst [vmem:[#allocation75_spill] sm:$0xff] %v6872_v24  ;;  %v6878_v53 = vpop.permute.xlu0 %5017  ;;  %v4670_v24 = vunpack.i.h.bf16 %v6619_v61  ;;  %v6925_v61 = vsel %vm226_vm0, %v6447_v21, %v4659_v2  ;;  %v4679_v21 = vunpack.i.l.bf16 %v6627_v18  ;;  %v4700_v18 = vunpack.i.h.bf16 %v6643_v51 }
 0x137   : > { %9284 = vst [vmem:[#allocation76_spill] sm:$0xff] %v6878_v53  ;;  %v6896_v53 = vsel %vm226_vm0, %v6430_v20, %v4650_v37  ;;  %v6915_v20 = vsel %vm226_vm0, %v6432_v28, %v4654_v40  ;;  %v6935_v28 = vsel %vm226_vm0, %v6451_v13, %v4664_v55  ;;  %v4694_v40 = vunpack.i.l.bf16 %v6641_v50 }
 0x138   : > { %v6939_v14 = vsel %vm226_vm0, %v6469_v4, %v4670_v24  ;;  %v4689_v4 = vunpack.i.l.bf16 %v6635_v58  ;;  %v4695_v24 = vunpack.i.h.bf16 %v6641_v50  ;;  %v6960_v5 = vsel %vm226_vm0, %v6473_v6, %v4675_v25  ;;  %v9290_v50 = vld [vmem:[#allocation20_spill] sm:$0xff]  ;;  %v9291_v25 = vld [vmem:[#allocation23_spill] sm:$0xff] }
 0x139   : > { %v6903_v8 = vpop.permute.xlu1 %5022  ;;  %v6964_v37 = vsel %vm226_vm0, %v9288_v57, %v4674_v9  ;;  %v4705_v58 = vunpack.i.h.bf16 %v6649_v48  ;;  %v6970_v2 = vsel %vm226_vm0, %v9289_v7, %v4680_v0  ;;  %v6974_v55 = vsel %vm226_vm0, %v9290_v50, %v4679_v21  ;;  %v9292_v57 = vld [vmem:[#allocation22_spill] sm:$0xff]  ;;  %v9294_v50 = vld [vmem:[#allocation24_spill] sm:$0xff] }
 0x13a   : > { %9285 = vst [vmem:[#allocation77_spill] sm:$0xff] %v6903_v8  ;;  %v6921_v1 = vpop.permute.xlu0 %5027  ;;  %v4710_v6 = vunpack.i.h.bf16 %v6651_v44  ;;  %v6980_v9 = vsel %vm226_vm0, %v9291_v25, %v4685_v23  ;;  %v6984_v51 = vsel %vm226_vm0, %v9292_v57, %v4684_v12  ;;  %v4709_v7 = vunpack.i.l.bf16 %v6651_v44  ;;  %v9296_v25 = vld [vmem:[#allocation26_spill] sm:$0xff]  ;;  %v9297_v57 = vld [vmem:[#allocation29_spill] sm:$0xff]  ;;  %v9299_v44 = vld [vmem:[#allocation28_spill] sm:$0xff] }
 0x13b   : > { %9286 = vst [vmem:[#allocation78_spill] sm:$0xff] %v6921_v1  ;;  %v6995_v48 = vsel %vm226_vm0, %v9294_v50, %v4689_v4  ;;  %v9295_v1 = vld [vmem:[#allocation27_spill] sm:$0xff]  ;;  %v7003_v12 = vsel %vm226_vm0, %v9296_v25, %v4694_v40  ;;  %v7013_v8 = vsel %vm226_vm0, %v9299_v44, %v4699_v42  ;;  %v9301_v40 = vld [vmem:[#allocation30_spill] sm:$0xff]  ;;  %v4719_v42 = vunpack.i.l.bf16 %v6659_v46 }
 0x13c   : > { %v6999_v23 = vsel %vm226_vm0, %v9295_v1, %v4695_v24  ;;  %v9300_v4 = vld [vmem:[#allocation31_spill] sm:$0xff]  ;;  %v4715_v1 = vunpack.i.h.bf16 %v6657_v45  ;;  %v4714_v24 = vunpack.i.l.bf16 %v6657_v45  ;;  %v7023_v25 = vsel %vm226_vm0, %v9301_v40, %v4704_v62 }
 0x13d   : > { %v6950_v13 = vpop.permute.xlu1 %5032  ;;  %v7017_v50 = vsel %vm226_vm0, %v9300_v4, %v4705_v58  ;;  %v7033_v58 = vsel %vm226_vm0, %v6547_v10, %v4709_v7  ;;  %v4725_v44 = vunpack.i.h.bf16 %v6665_v47  ;;  %v4724_v45 = vunpack.i.l.bf16 %v6665_v47 }
 0x13e   : > { %9287 = vst [vmem:[#allocation79_spill] sm:$0xff] %v6950_v13  ;;  %v6956_v49 = vpop.permute.xlu0 %5037  ;;  %v9293_v13 = vld [vmem:[#allocation25_spill] sm:$0xff]  ;;  %v4730_v4 = vunpack.i.h.bf16 %v6667_v39  ;;  %v4729_v40 = vunpack.i.l.bf16 %v6667_v39  ;;  %v7048_v10 = vsel %vm226_vm0, %v6553_v36, %v4715_v1  ;;  %v7052_v47 = vsel %vm226_vm0, %v6551_v31, %v4714_v24 }
 0x13f   : > { %v6988_v0 = vsel %vm226_vm0, %v9293_v13, %v4690_v41  ;;  %v7007_v41 = vsel %vm226_vm0, %v9297_v57, %v4700_v18  ;;  %v7027_v18 = vsel %vm226_vm0, %v6549_v22, %v4710_v6  ;;  %v4720_v57 = vunpack.i.h.bf16 %v6659_v46 }
 0x140   : > { %v4735_v22 = vunpack.i.h.bf16 %v6673_v43  ;;  %v4734_v6 = vunpack.i.l.bf16 %v6673_v43  ;;  %v4739_v46 = vunpack.i.l.bf16 %v6675_v34  ;;  %v4740_v7 = vunpack.i.h.bf16 %v6675_v34 }
 0x141   : > { %v6991_v21 = vpop.permute.xlu1 %5042  ;;  %v4745_v39 = vunpack.i.h.bf16 %v6683_v33  ;;  %v7062_v43 = vsel %vm1714_vm4, %v6886_v17, %v4719_v42  ;;  %v4749_v36 = vunpack.i.l.bf16 %v6685_v38  ;;  %v7068_v31 = vsel %vm1714_vm4, %v6900_v52, %v4724_v45 }
 0x142   : > { %v7009_v13 = vpop.permute.xlu0 %5047  ;;  %v7072_v34 = vsel %vm1714_vm4, %v6907_v60, %v4725_v44  ;;  %v4750_v1 = vunpack.i.h.bf16 %v6685_v38  ;;  %v7087_v52 = vsel %vm1714_vm4, %v6911_v11, %v4735_v22  ;;  %v7091_v60 = vsel %vm1714_vm4, %v6915_v20, %v4734_v6 }
 0x143   : > { %9298 = vst [vmem:[#allocation19_spill] sm:$0xff] %v7009_v13  ;;  %v7101_v38 = vsel %vm1714_vm4, %v6919_v19, %v4740_v7  ;;  %v4755_v11 = vunpack.i.h.bf16 %v6691_v27  ;;  %v4760_v42 = vunpack.i.h.bf16 %v6693_v59  ;;  %v4759_v19 = vunpack.i.l.bf16 %v6693_v59  ;;  %v9304_v59 = vld [vmem:[#allocation32_spill] sm:$0xff] }
 0x144   : > { %v4765_v44 = vunpack.i.h.bf16 %v6699_v35  ;;  %v4769_v45 = vunpack.i.l.bf16 %v6701_v32  ;;  %v4780_v6 = vunpack.i.h.bf16 %v9304_v59 }
 0x145   : > { %v7038_v62 = vpop.permute.xlu1 %5052  ;;  %v7146_v7 = vsel %vm1714_vm4, %v6974_v55, %v4759_v19 }
 0x146   : > { %9302 = vst [vmem:[#allocation21_spill] sm:$0xff] %v7038_v62  ;;  %v7044_v13 = vpop.permute.xlu0 %5057  ;;  %v7058_v62 = vsel %vm1714_vm4, %v6883_v30, %v4720_v57  ;;  %v7076_v30 = vsel %vm1714_vm4, %v6896_v53, %v4730_v4  ;;  %v7095_v53 = vsel %vm1714_vm4, %v6925_v61, %v4739_v46  ;;  %v4754_v57 = vunpack.i.l.bf16 %v6691_v27  ;;  %v9306_v46 = vld [vmem:[#allocation33_spill] sm:$0xff] }
 0x147   : > { %9303 = vst [vmem:[#allocation20_spill] sm:$0xff] %v7044_v13  ;;  %v4744_v13 = vunpack.i.l.bf16 %v6683_v33  ;;  %v7083_v33 = vsel %vm1714_vm4, %v6892_v63, %v4729_v40  ;;  %v7105_v63 = vsel %vm1714_vm4, %v6929_v26, %v4745_v39  ;;  %v7115_v61 = vsel %vm1714_vm4, %v6945_v16, %v4749_v36 }
 0x148   : > { %v7121_v26 = vsel %vm1714_vm4, %v6939_v14, %v4750_v1  ;;  %v4764_v27 = vunpack.i.l.bf16 %v6699_v35  ;;  %v4770_v16 = vunpack.i.h.bf16 %v6701_v32  ;;  %v4774_v4 = vunpack.i.l.bf16 %v6707_v54 }
 0x149   : > { %v7079_v17 = vpop.permute.xlu1 %5062  ;;  %v7111_v20 = vsel %vm1714_vm4, %v6935_v28, %v4744_v13  ;;  %v4775_v13 = vunpack.i.h.bf16 %v6707_v54  ;;  %v4779_v40 = vunpack.i.l.bf16 %v9304_v59  ;;  %v7136_v14 = vsel %vm1714_vm4, %v6960_v5, %v4755_v11  ;;  %v9307_v5 = vld [vmem:[#allocation34_spill] sm:$0xff] }
 0x14a   : > { %v7097_v24 = vpop.permute.xlu0 %5067  ;;  %v7140_v35 = vsel %vm1714_vm4, %v6964_v37, %v4754_v57  ;;  %v4785_v32 = vunpack.i.h.bf16 %v9306_v46  ;;  %v7150_v54 = vsel %vm1714_vm4, %v6970_v2, %v4760_v42  ;;  %v4784_v39 = vunpack.i.l.bf16 %v9306_v46 }
 0x14b   : > { %v4789_v36 = vunpack.i.l.bf16 %v9307_v5  ;;  %v7156_v37 = vsel %vm1714_vm4, %v6980_v9, %v4765_v44  ;;  %v7160_v1 = vsel %vm1714_vm4, %v6984_v51, %v4764_v27  ;;  %v7164_v55 = vsel %vm1714_vm4, %v6995_v48, %v4769_v45  ;;  %v9311_v45 = vld [vmem:[#allocation36_spill] sm:$0xff] }
 0x14c   : > { %v4790_v11 = vunpack.i.h.bf16 %v9307_v5  ;;  %v7171_v57 = vsel %vm1714_vm4, %v6988_v0, %v4770_v16  ;;  %v7175_v9 = vsel %vm1714_vm4, %v6999_v23, %v4775_v13  ;;  %v7179_v51 = vsel %vm1714_vm4, %v7003_v12, %v4774_v4  ;;  %v9310_v23 = vld [vmem:[#allocation35_spill] sm:$0xff]  ;;  %v9312_v13 = vld [vmem:[#allocation37_spill] sm:$0xff]  ;;  %v9316_v5 = vld [vmem:[#allocation40_spill] sm:$0xff] }
 0x14d   : > { %v7126_v28 = vpop.permute.xlu1 %5072  ;;  %v7183_v48 = vsel %vm1714_vm4, %v7013_v8, %v4779_v40  ;;  %v7189_v19 = vsel %vm1714_vm4, %v7007_v41, %v4780_v6  ;;  %v7193_v0 = vsel %vm1714_vm4, %v7017_v50, %v4785_v32  ;;  %v4795_v44 = vunpack.i.h.bf16 %v9310_v23  ;;  %v9313_v40 = vld [vmem:[#allocation38_spill] sm:$0xff] }
 0x14e   : > { %v7132_v22 = vpop.permute.xlu0 %5077  ;;  %v4794_v27 = vunpack.i.l.bf16 %v9310_v23  ;;  %v7199_v12 = vsel %vm1714_vm4, %v7023_v25, %v4784_v39  ;;  %v7203_v8 = vsel %vm1714_vm4, %v7033_v58, %v4789_v36  ;;  %v4800_v16 = vunpack.i.h.bf16 %v9311_v45  ;;  %v9315_v58 = vld [vmem:[#allocation39_spill] sm:$0xff] }
 0x14f   : > { %9305 = vst [vmem:[#allocation23_spill] sm:$0xff] %v7132_v22  ;;  %v4799_v41 = vunpack.i.l.bf16 %v9311_v45  ;;  %v7209_v50 = vsel %vm1714_vm4, %v7027_v18, %v4790_v11  ;;  %v4805_v4 = vunpack.i.h.bf16 %v9312_v13  ;;  %v4804_v59 = vunpack.i.l.bf16 %v9312_v13  ;;  %v9320_v13 = vld [vmem:[#allocation41_spill] sm:$0xff] }
 0x150   : > { %v4809_v6 = vunpack.i.l.bf16 %v9313_v40  ;;  %v4810_v46 = vunpack.i.h.bf16 %v9313_v40  ;;  %v4815_v32 = vunpack.i.h.bf16 %v9315_v58  ;;  %v4814_v39 = vunpack.i.l.bf16 %v9315_v58 }
 0x151   : > { %v7167_v2 = vpop.permute.xlu1 %5082  ;;  %v4819_v36 = vunpack.i.l.bf16 %v9316_v5  ;;  %v7224_v18 = vsel %vm1714_vm4, %v7048_v10, %v4795_v44  ;;  %v7228_v11 = vsel %vm1714_vm4, %v7052_v47, %v4794_v27  ;;  %v4820_v45 = vunpack.i.h.bf16 %v9316_v5  ;;  %v9321_v10 = vld [vmem:[#allocation42_spill] sm:$0xff]  ;;  %v9326_v5 = vld [vmem:[#allocation45_spill] sm:$0xff] }
 0x152   : > { %9308 = vst [vmem:[#allocation22_spill] sm:$0xff] %v7167_v2  ;;  %v7185_v42 = vpop.permute.xlu0 %5087  ;;  %9318 = vst [vmem:[#allocation26_spill] sm:$0xff] %v7224_v18  ;;  %v4824_v40 = vunpack.i.l.bf16 %v9320_v13  ;;  %v7238_v58 = vsel %vm1747_vm5, %v7058_v62, %v4800_v16  ;;  %v4829_v44 = vunpack.i.l.bf16 %v9321_v10  ;;  %v7244_v47 = vsel %vm1747_vm5, %v7068_v31, %v4804_v59 }
 0x153   : > { %9309 = vst [vmem:[#allocation25_spill] sm:$0xff] %v7185_v42  ;;  %9319 = vst [vmem:[#allocation29_spill] sm:$0xff] %v7228_v11  ;;  %v7248_v27 = vsel %vm1747_vm5, %v7072_v34, %v4805_v4  ;;  %v7259_v16 = vsel %vm1747_vm5, %v7076_v30, %v4810_v46  ;;  %v7263_v31 = vsel %vm1747_vm5, %v7091_v60, %v4814_v39  ;;  %v9324_v60 = vld [vmem:[#allocation43_spill] sm:$0xff]  ;;  %v9344_v42 = vld [vmem:[#allocation62_spill] sm:$0xff] }
 0x154   : > { %v7267_v34 = vsel %vm1747_vm5, %v7087_v52, %v4815_v32  ;;  %v7277_v59 = vsel %vm1747_vm5, %v7101_v38, %v4820_v45  ;;  %v7281_v30 = vsel %vm1747_vm5, %v7111_v20, %v4824_v40  ;;  %v4834_v46 = vunpack.i.l.bf16 %v9324_v60  ;;  %v9325_v32 = vld [vmem:[#allocation44_spill] sm:$0xff] }
 0x155   : > { %v7214_v25 = vpop.permute.xlu1 %5092  ;;  %v4840_v39 = vunpack.i.h.bf16 %v9325_v32  ;;  %v4839_v38 = vunpack.i.l.bf16 %v9325_v32  ;;  %v4844_v45 = vunpack.i.l.bf16 %v9326_v5  ;;  %v4855_v40 = vunpack.i.h.bf16 %v6765_v3 }
 0x156   : > { %9314 = vst [vmem:[#allocation24_spill] sm:$0xff] %v7214_v25  ;;  %v7220_v23 = vpop.permute.xlu0 %5097  ;;  %v7234_v25 = vsel %vm1747_vm5, %v7062_v43, %v4799_v41  ;;  %v7252_v43 = vsel %vm1747_vm5, %v7083_v33, %v4809_v6  ;;  %v4830_v41 = vunpack.i.h.bf16 %v9321_v10  ;;  %v7271_v33 = vsel %vm1747_vm5, %v7095_v53, %v4819_v36 }
 0x157   : > { %9317 = vst [vmem:[#allocation27_spill] sm:$0xff] %v7220_v23  ;;  %v4825_v23 = vunpack.i.h.bf16 %v9320_v13  ;;  %v4835_v6 = vunpack.i.h.bf16 %v9324_v60  ;;  %v7291_v53 = vsel %vm1747_vm5, %v7115_v61, %v4829_v44  ;;  %v4845_v36 = vunpack.i.h.bf16 %v9326_v5  ;;  %v9327_v13 = vld [vmem:[#allocation46_spill] sm:$0xff]  ;;  %v9329_v44 = vld [vmem:[#allocation47_spill] sm:$0xff] }
 0x158   : > { %v7297_v20 = vsel %vm1747_vm5, %v7121_v26, %v4830_v41  ;;  %v4850_v61 = vunpack.i.h.bf16 %v9327_v13  ;;  %v4854_v10 = vunpack.i.l.bf16 %v6765_v3  ;;  %v4859_v60 = vunpack.i.l.bf16 %v9329_v44 }
 0x159   : > { %v7255_v62 = vpop.permute.xlu1 %5102  ;;  %v7287_v52 = vsel %vm1747_vm5, %v7105_v63, %v4825_v23  ;;  %v4849_v63 = vunpack.i.l.bf16 %v9327_v13  ;;  %v7312_v26 = vsel %vm1747_vm5, %v7140_v35, %v4834_v46  ;;  %v7316_v41 = vsel %vm1747_vm5, %v7136_v14, %v4835_v6  ;;  %v9331_v35 = vld [vmem:[#allocation49_spill] sm:$0xff] }
 0x15a   : > { %9322 = vst [vmem:[#allocation28_spill] sm:$0xff] %v7255_v62  ;;  %v7273_v4 = vpop.permute.xlu0 %5107  ;;  %v4860_v5 = vunpack.i.h.bf16 %v9329_v44  ;;  %v7322_v18 = vsel %vm1747_vm5, %v7146_v7, %v4839_v38  ;;  %v7326_v3 = vsel %vm1747_vm5, %v7150_v54, %v4840_v39  ;;  %v4869_v46 = vunpack.i.l.bf16 %v9331_v35  ;;  %v9338_v62 = vld [vmem:[#allocation56_spill] sm:$0xff] }
 0x15b   : > { %9323 = vst [vmem:[#allocation31_spill] sm:$0xff] %v7273_v4  ;;  %v7332_v14 = vsel %vm1747_vm5, %v7160_v1, %v4844_v45  ;;  %v7336_v6 = vsel %vm1747_vm5, %v7156_v37, %v4845_v36  ;;  %v7340_v7 = vsel %vm1747_vm5, %v7164_v55, %v4849_v63  ;;  %v4870_v38 = vunpack.i.h.bf16 %v9331_v35 }
 0x15c   : > { %v7347_v39 = vsel %vm1747_vm5, %v7171_v57, %v4850_v61  ;;  %v7351_v1 = vsel %vm1747_vm5, %v7179_v51, %v4854_v10  ;;  %v7355_v37 = vsel %vm1747_vm5, %v7175_v9, %v4855_v40  ;;  %v7359_v55 = vsel %vm1747_vm5, %v7183_v48, %v4859_v60  ;;  %v9332_v51 = vld [vmem:[#allocation51_spill] sm:$0xff]  ;;  %v9333_v61 = vld [vmem:[#allocation52_spill] sm:$0xff]  ;;  %v9334_v10 = vld [vmem:[#allocation53_spill] sm:$0xff] }
 0x15d   : > { %v7302_v23 = vpop.permute.xlu1 %5112  ;;  %v7365_v45 = vsel %vm1747_vm5, %v7189_v19, %v4860_v5  ;;  %v4880_v63 = vunpack.i.h.bf16 %v9332_v51  ;;  %v7379_v48 = vsel %vm1747_vm5, %v7203_v8, %v4869_v46  ;;  %v4885_v40 = vunpack.i.h.bf16 %v9333_v61  ;;  %v9335_v5 = vld [vmem:[#allocation54_spill] sm:$0xff] }
 0x15e   : > { %9328 = vst [vmem:[#allocation30_spill] sm:$0xff] %v7302_v23  ;;  %v7308_v32 = vpop.permute.xlu0 %5117  ;;  %v9330_v23 = vld [vmem:[#allocation48_spill] sm:$0xff]  ;;  %v4884_v19 = vunpack.i.l.bf16 %v9333_v61  ;;  %v4890_v44 = vunpack.i.h.bf16 %v9334_v10  ;;  %v4889_v60 = vunpack.i.l.bf16 %v9334_v10  ;;  %v4895_v46 = vunpack.i.h.bf16 %v9335_v5 }
 0x15f   : > { %v4864_v13 = vunpack.i.l.bf16 %v9330_v23  ;;  %v4865_v11 = vunpack.i.h.bf16 %v9330_v23  ;;  %v4879_v23 = vunpack.i.l.bf16 %v9332_v51  ;;  %v9337_v51 = vld [vmem:[#allocation55_spill] sm:$0xff]  ;;  %v4904_v35 = vunpack.i.l.bf16 %v9338_v62 }
 0x160   : > { %v4899_v61 = vunpack.i.l.bf16 %v9337_v51  ;;  %v4900_v10 = vunpack.i.h.bf16 %v9337_v51  ;;  %v7410_v8 = vsel %vm1780_vm6, %v7244_v47, %v4884_v19  ;;  %v4934_v2 = vunpack.i.l.bf16 %v9344_v42 }
 0x161   : > { %v7343_v54 = vpop.permute.xlu1 %5122  ;;  %v7369_v57 = vsel %vm1747_vm5, %v7199_v12, %v4864_v13  ;;  %v7375_v9 = vsel %vm1747_vm5, %v7193_v0, %v4865_v11  ;;  %v7385_v12 = vsel %vm1747_vm5, %v7209_v50, %v4870_v38  ;;  %v4894_v13 = vunpack.i.l.bf16 %v9335_v5 }
 0x162   : > { %v7361_v36 = vpop.permute.xlu0 %5127  ;;  %v7400_v50 = vsel %vm1780_vm6, %v7234_v25, %v4879_v23  ;;  %v7404_v38 = vsel %vm1780_vm6, %v7238_v58, %v4880_v63  ;;  %v7414_v5 = vsel %vm1780_vm6, %v7248_v27, %v4885_v40  ;;  %v4905_v11 = vunpack.i.h.bf16 %v9338_v62  ;;  %v9339_v25 = vld [vmem:[#allocation57_spill] sm:$0xff]  ;;  %v9340_v40 = vld [vmem:[#allocation58_spill] sm:$0xff] }
 0x163   : > { %v4909_v23 = vunpack.i.l.bf16 %v9339_v25  ;;  %v7420_v58 = vsel %vm1780_vm6, %v7252_v43, %v4889_v60  ;;  %v7424_v63 = vsel %vm1780_vm6, %v7259_v16, %v4890_v44  ;;  %v7428_v47 = vsel %vm1780_vm6, %v7263_v31, %v4894_v13 }
 0x164   : > { %v4910_v19 = vunpack.i.h.bf16 %v9339_v25  ;;  %v7435_v62 = vsel %vm1780_vm6, %v7267_v34, %v4895_v46  ;;  %v7439_v43 = vsel %vm1780_vm6, %v7271_v33, %v4899_v61  ;;  %v4915_v60 = vunpack.i.h.bf16 %v9340_v40  ;;  %v9341_v34 = vld [vmem:[#allocation59_spill] sm:$0xff]  ;;  %v9342_v25 = vld [vmem:[#allocation60_spill] sm:$0xff] }
 0x165   : > { %v7390_v0 = vpop.permute.xlu1 %5132  ;;  %v4914_v16 = vunpack.i.l.bf16 %v9340_v40  ;;  %v7447_v31 = vsel %vm1780_vm6, %v7277_v59, %v4900_v10  ;;  %v7451_v13 = vsel %vm1780_vm6, %v7281_v30, %v4904_v35  ;;  %v4920_v46 = vunpack.i.h.bf16 %v9341_v34  ;;  %v9343_v35 = vld [vmem:[#allocation61_spill] sm:$0xff] }
 0x166   : > { %v7396_v4 = vpop.permute.xlu0 %5137  ;;  %v4919_v51 = vunpack.i.l.bf16 %v9341_v34  ;;  %v7457_v33 = vsel %vm1780_vm6, %v7287_v52, %v4905_v11  ;;  %v7461_v61 = vsel %vm1780_vm6, %v7291_v53, %v4909_v23  ;;  %v4925_v59 = vunpack.i.h.bf16 %v9342_v25 }
 0x167   : > { %v4924_v10 = vunpack.i.l.bf16 %v9342_v25  ;;  %v7467_v30 = vsel %vm1780_vm6, %v7297_v20, %v4910_v19  ;;  %v4930_v40 = vunpack.i.h.bf16 %v9343_v35  ;;  %v4929_v34 = vunpack.i.l.bf16 %v9343_v35  ;;  %v9346_v20 = vld [vmem:[#allocation63_spill] sm:$0xff] }
 0x168   : > { %v7476_v53 = vsel %vm1780_vm6, %v7312_v26, %v4914_v16  ;;  %v7480_v11 = vsel %vm1780_vm6, %v7316_v41, %v4915_v60  ;;  %v4935_v23 = vunpack.i.h.bf16 %v9344_v42  ;;  %v4939_v19 = vunpack.i.l.bf16 %v9346_v20  ;;  %v9347_v16 = vld [vmem:[#allocation64_spill] sm:$0xff] }
 0x169   : > { %v7431_v27 = vpop.permute.xlu1 %5142  ;;  %v7488_v35 = vsel %vm1780_vm6, %v7322_v18, %v4919_v51  ;;  %v4940_v26 = vunpack.i.h.bf16 %v9346_v20  ;;  %v4944_v22 = vunpack.i.l.bf16 %v9347_v16  ;;  %v7498_v41 = vsel %vm1780_vm6, %v7332_v14, %v4924_v10  ;;  %v9348_v18 = vld [vmem:[#allocation65_spill] sm:$0xff] }
 0x16a   : > { %v7443_v44 = vpop.permute.xlu0 %5147  ;;  %v7502_v42 = vsel %vm1780_vm6, %v7336_v6, %v4925_v59  ;;  %v4945_v60 = vunpack.i.h.bf16 %v9347_v16  ;;  %v4949_v51 = vunpack.i.l.bf16 %v9348_v18  ;;  %v7516_v14 = vsel %vm1780_vm6, %v7351_v1, %v4934_v2 }
 0x16b   : > { %v4950_v10 = vunpack.i.h.bf16 %v9348_v18  ;;  %v7523_v59 = vsel %vm1780_vm6, %v7355_v37, %v4935_v23  ;;  %v7535_v2 = vsel %vm1780_vm6, %v7365_v45, %v4940_v26  ;;  %v7539_v1 = vsel %vm1780_vm6, %v7369_v57, %v4944_v22  ;;  %v9355_v26 = vld [vmem:[#allocation67_spill] sm:$0xff]  ;;  %v9356_v18 = vld [vmem:[#allocation68_spill] sm:$0xff]  ;;  %v9357_v57 = vld [vmem:[#allocation69_spill] sm:$0xff] }
 0x16c   : > { %9349 = vst [vmem:[#allocation33_spill] sm:$0xff] %v7535_v2  ;;  %9350 = vst [vmem:[#allocation34_spill] sm:$0xff] %v7539_v1  ;;  %v4965_v37 = vunpack.i.h.bf16 %v6841_v15  ;;  %v4964_v23 = vunpack.i.l.bf16 %v6841_v15  ;;  %v4970_v20 = vunpack.i.h.bf16 %v6843_v56  ;;  %v4969_v45 = vunpack.i.l.bf16 %v6843_v56 }
 0x16d   : > { %v7472_v52 = vpop.permute.xlu1 %5152  ;;  %v7555_v22 = vsel %vm1780_vm6, %v7385_v12, %v4950_v10  ;;  %v4974_v16 = vunpack.i.l.bf16 %v9355_v26  ;;  %v4975_v56 = vunpack.i.h.bf16 %v9355_v26  ;;  %v4979_v12 = vunpack.i.l.bf16 %v9356_v18 }
 0x16e   : > { %9345 = vst [vmem:[#allocation32_spill] sm:$0xff] %v7472_v52  ;;  %v7484_v25 = vpop.permute.xlu0 %5157  ;;  %v7492_v52 = vsel %vm1780_vm6, %v7326_v3, %v4920_v46  ;;  %v7508_v3 = vsel %vm1780_vm6, %v7340_v7, %v4929_v34  ;;  %v7512_v46 = vsel %vm1780_vm6, %v7347_v39, %v4930_v40  ;;  %v7527_v7 = vsel %vm1780_vm6, %v7359_v55, %v4939_v19 }
 0x16f   : > { %v4960_v39 = vunpack.i.h.bf16 %v6837_v29  ;;  %v4959_v40 = vunpack.i.l.bf16 %v6837_v29  ;;  %v7545_v55 = vsel %vm1780_vm6, %v7375_v9, %v4945_v60  ;;  %v7549_v29 = vsel %vm1780_vm6, %v7379_v48, %v4949_v51  ;;  %9353 = vst [vmem:[#allocation37_spill] sm:$0xff] %v7555_v22 }
 0x170   : > { %9351 = vst [vmem:[#allocation35_spill] sm:$0xff] %v7545_v55  ;;  %9352 = vst [vmem:[#allocation36_spill] sm:$0xff] %v7549_v29  ;;  %v1816_v10 = vsel %vm1813_vm7, %v7410_v8, %v4964_v23  ;;  %v1817_v19 = vsel %vm1813_vm7, %v7414_v5, %v4965_v37  ;;  %v4980_v15 = vunpack.i.h.bf16 %v9356_v18  ;;  %v5039_v26 = vunpack.i.l.bf16 %v6956_v49 }
 0x171   : > { %v7519_v6 = vpop.permute.xlu1 %5162  ;;  %v1814_v48 = vsel %vm1813_vm7, %v7400_v50, %v4959_v40  ;;  %v1815_v60 = vsel %vm1813_vm7, %v7404_v38, %v4960_v39  ;;  %v4984_v50 = vunpack.i.l.bf16 %v9357_v57  ;;  %v1818_v38 = vsel %vm1813_vm7, %v7420_v58, %v4969_v45 }
 0x172   : > { %v7531_v34 = vpop.permute.xlu0 %5167  ;;  %v1819_v39 = vsel %vm1813_vm7, %v7424_v63, %v4970_v20  ;;  %v4985_v40 = vunpack.i.h.bf16 %v9357_v57  ;;  %v7584_v8 = vsel %vm1813_vm7, %v7428_v47, %v4974_v16  ;;  %v5040_v5 = vunpack.i.h.bf16 %v6956_v49  ;;  %v9359_v20 = vld [vmem:[#allocation19_spill] sm:$0xff] }
 0x173   : > { %v5045_v37 = vunpack.i.h.bf16 %v6991_v21  ;;  %v5044_v23 = vunpack.i.l.bf16 %v6991_v21  ;;  %v7593_v58 = vsel %vm1813_vm7, %v7435_v62, %v4975_v56  ;;  %v7597_v63 = vsel %vm1813_vm7, %v7439_v43, %v4979_v12  ;;  %v9361_v62 = vld [vmem:[#allocation70_spill] sm:$0xff] }
 0x174   : > { %v5050_v47 = vunpack.i.h.bf16 %v9359_v20  ;;  %v5049_v45 = vunpack.i.l.bf16 %v9359_v20  ;;  %v7605_v21 = vsel %vm1813_vm7, %v7447_v31, %v4980_v15  ;;  %v7609_v57 = vsel %vm1813_vm7, %v7451_v13, %v4984_v50 }
 0x175   : > { %v7560_v9 = vpop.permute.xlu1 %5172  ;;  %v4990_v16 = vunpack.i.h.bf16 %v9361_v62  ;;  %v4989_v56 = vunpack.i.l.bf16 %v9361_v62  ;;  %v7615_v43 = vsel %vm1813_vm7, %v7457_v33, %v4985_v40  ;;  %v5120_v12 = vunpack.i.h.bf16 %v7308_v32  ;;  %v9363_v40 = vld [vmem:[#allocation21_spill] sm:$0xff] }
 0x176   : > { %v7568_v51 = vpop.permute.xlu0 %5177  ;;  %v5119_v20 = vunpack.i.l.bf16 %v7308_v32  ;;  %v1847_v22 = vsel %vm1846_vm8, %v1814_v48, %v5039_v26  ;;  %v1849_v31 = vsel %vm1846_vm8, %v1816_v10, %v5044_v23  ;;  %v1850_v15 = vsel %vm1846_vm8, %v1817_v19, %v5045_v37  ;;  %v9364_v23 = vld [vmem:[#allocation20_spill] sm:$0xff] }
 0x177   : > { %v5124_v13 = vunpack.i.l.bf16 %v7343_v54  ;;  %v1848_v62 = vsel %vm1846_vm8, %v1815_v60, %v5040_v5  ;;  %v1851_v29 = vsel %vm1846_vm8, %v1818_v38, %v5049_v45  ;;  %v1852_v33 = vsel %vm1846_vm8, %v1819_v39, %v5050_v47 }
 0x178   : > { %v5055_v55 = vunpack.i.h.bf16 %v9363_v40  ;;  %v5125_v32 = vunpack.i.h.bf16 %v7343_v54  ;;  %v5130_v48 = vunpack.i.h.bf16 %v7361_v36  ;;  %v5129_v10 = vunpack.i.l.bf16 %v7361_v36 }
 0x179   : > { %v7589_v18 = vpop.permute.xlu1 %5182  ;;  %v5054_v37 = vunpack.i.l.bf16 %v9363_v40  ;;  %v1880_v60 = vsel %vm1879_vm9, %v1847_v22, %v5119_v20  ;;  %v1881_v38 = vsel %vm1879_vm9, %v1848_v62, %v5120_v12  ;;  %v5059_v39 = vunpack.i.l.bf16 %v9364_v23 }
 0x17a   : > { %9358 = vst [vmem:[#allocation38_spill] sm:$0xff] %v7589_v18  ;;  %v7601_v49 = vpop.permute.xlu0 %5187  ;;  %v1882_v5 = vsel %vm1879_vm9, %v1849_v31, %v5124_v13  ;;  %v1883_v36 = vsel %vm1879_vm9, %v1850_v15, %v5125_v32  ;;  %v1884_v2 = vsel %vm1879_vm9, %v1851_v29, %v5129_v10  ;;  %v1885_v22 = vsel %vm1879_vm9, %v1852_v33, %v5130_v48 }
 0x17b   : > { %9360 = vst [vmem:[#allocation39_spill] sm:$0xff] %v7601_v49  ;;  %v5135_v62 = vunpack.i.h.bf16 %v7390_v0  ;;  %v5134_v31 = vunpack.i.l.bf16 %v7390_v0  ;;  %v5140_v15 = vunpack.i.h.bf16 %v7396_v4  ;;  %v5139_v48 = vunpack.i.l.bf16 %v7396_v4 }
 0x17c   : > { %v1853_v4 = vsel %vm1846_vm8, %v7584_v8, %v5054_v37 }
 0x17d   : > { %v7623_v50 = vpop.permute.xlu1 %5192 }
 0x17e   : > { %9362 = vst [vmem:[#allocation40_spill] sm:$0xff] %v7623_v50  ;;  %v5198_v1 = vpop.permute.xlu0 %5197  ;;  %v5060_v50 = vunpack.i.h.bf16 %v9364_v23 }
 0x17f   : > { %v5200_v19 = vunpack.i.h.bf16 %v5198_v1  ;;  %v5199_v26 = vunpack.i.l.bf16 %v5198_v1 }
 0x181   : > { %v5203_v54 = vpop.permute.xlu1 %5202  ;;  %v1913_v47 = vsel %vm1912_vm10, %v1880_v60, %v5199_v26  ;;  %v1914_v45 = vsel %vm1912_vm10, %v1881_v38, %v5200_v19 }
 0x182   : > { %v5205_v1 = vunpack.i.h.bf16 %v5203_v54  ;;  %v5204_v49 = vunpack.i.l.bf16 %v5203_v54  ;;  %v5208_v40 = vpop.permute.xlu0 %5207  ;;  %v1945_v18 = vpack.c.bf16 %v1914_v45, %v1913_v47  ;;  %v1854_v45 = vsel %vm1846_vm8, %v7593_v58, %v5055_v55  ;;  %v9366_v58 = vld [vmem:[#allocation72_spill] sm:$0xff] }
 0x183   : > { %v5210_v12 = vunpack.i.h.bf16 %v5208_v40  ;;  %v5209_v20 = vunpack.i.l.bf16 %v5208_v40  ;;  %v5000_v37 = vunpack.i.h.bf16 %v9366_v58  ;;  %v4999_v40 = vunpack.i.l.bf16 %v9366_v58 }
 0x184   : > { %v1915_v13 = vsel %vm1912_vm10, %v1882_v5, %v5204_v49  ;;  %v1916_v19 = vsel %vm1912_vm10, %v1883_v36, %v5205_v1  ;;  %4546 = vmatprep.mubr.msk.bf16.mxu0 %vm1988_vm11, %v1945_v18  ;;  %v1826_v49 = vsel %vm1813_vm7, %v7461_v61, %v4989_v56  ;;  %v1827_v18 = vsel %vm1813_vm7, %v7467_v30, %v4990_v16 }
 0x185   : > { %v1917_v32 = vsel %vm1912_vm10, %v1884_v2, %v5209_v20  ;;  %v1918_v29 = vsel %vm1912_vm10, %v1885_v22, %v5210_v12  ;;  %v5213_v10 = vpop.permute.xlu1 %5212  ;;  %v1946_v33 = vpack.c.bf16 %v1916_v19, %v1915_v13  ;;  %v9365_v2 = vld [vmem:[#allocation71_spill] sm:$0xff]  ;;  %v1855_v61 = vsel %vm1846_vm8, %v7597_v63, %v5059_v39 }
 0x186   : > { %v5215_v26 = vunpack.i.h.bf16 %v5213_v10  ;;  %v5214_v23 = vunpack.i.l.bf16 %v5213_v10  ;;  %v5218_v60 = vpop.permute.xlu0 %5217  ;;  %v1947_v0 = vpack.c.bf16 %v1918_v29, %v1917_v32  ;;  %v4995_v54 = vunpack.i.h.bf16 %v9365_v2 }
 0x187   : > { %v5220_v38 = vunpack.i.h.bf16 %v5218_v60  ;;  %v5219_v5 = vunpack.i.l.bf16 %v5218_v60  ;;  %4547 = vmatmul.mubr.msk.bf16.vlgmr.msra.gmra.mxu0 %vm1988_vm11, %v1946_v33  ;;  %v4994_v47 = vunpack.i.l.bf16 %v9365_v2  ;;  %v1856_v30 = vsel %vm1846_vm8, %v7605_v21, %v5060_v50  ;;  %v9367_v2 = vld [vmem:[#allocation73_spill] sm:$0xff] }
 0x188   : > { %4550 = vmatprep.mubr.msk.bf16.mxu0 %vm1988_vm11, %v1947_v0  ;;  %v1886_v16 = vsel %vm1879_vm9, %v1853_v4, %v5134_v31  ;;  %v1887_v56 = vsel %vm1879_vm9, %v1854_v45, %v5135_v62  ;;  %v1888_v36 = vsel %vm1879_vm9, %v1855_v61, %v5139_v48  ;;  %v1889_v1 = vsel %vm1879_vm9, %v1856_v30, %v5140_v15  ;;  %v9368_v61 = vld [vmem:[#allocation23_spill] sm:$0xff] }
 0x189   : > { %v1919_v8 = vsel %vm1912_vm10, %v1886_v16, %v5214_v23  ;;  %v1920_v55 = vsel %vm1912_vm10, %v1887_v56, %v5215_v26  ;;  %v1921_v63 = vsel %vm1912_vm10, %v1888_v36, %v5219_v5  ;;  %v1922_v21 = vsel %vm1912_vm10, %v1889_v1, %v5220_v38  ;;  %v5223_v50 = vpop.permute.xlu1 %5222  ;;  %v9369_v36 = vld [vmem:[#allocation32_spill] sm:$0xff] }
 0x18a   : > { %v5065_v39 = vunpack.i.h.bf16 %v7079_v17  ;;  %v5064_v22 = vunpack.i.l.bf16 %v7079_v17  ;;  %v5070_v12 = vunpack.i.h.bf16 %v7097_v24  ;;  %v5069_v20 = vunpack.i.l.bf16 %v7097_v24  ;;  %v5228_v62 = vpop.permute.xlu0 %5227 }
 0x18b   : > { %v5145_v31 = vunpack.i.h.bf16 %v7431_v27  ;;  %v5144_v13 = vunpack.i.l.bf16 %v7431_v27  ;;  %v5150_v19 = vunpack.i.h.bf16 %v7443_v44  ;;  %v1948_v15 = vpack.c.bf16 %v1920_v55, %v1919_v8 }
 0x18c   : > { %v5149_v32 = vunpack.i.l.bf16 %v7443_v44  ;;  %v5225_v29 = vunpack.i.h.bf16 %v5223_v50  ;;  %v5224_v10 = vunpack.i.l.bf16 %v5223_v50  ;;  %v1949_v33 = vpack.c.bf16 %v1922_v21, %v1921_v63  ;;  %v9370_v50 = vld [vmem:[#allocation74_spill] sm:$0xff] }
 0x18d   : > { %v1828_v17 = vsel %vm1813_vm7, %v7476_v53, %v4994_v47  ;;  %v1829_v48 = vsel %vm1813_vm7, %v7480_v11, %v4995_v54  ;;  %v5230_v24 = vunpack.i.h.bf16 %v5228_v62  ;;  %v5229_v26 = vunpack.i.l.bf16 %v5228_v62  ;;  %v5233_v47 = vpop.permute.xlu1 %5232 }
 0x18e   : > { %v1830_v27 = vsel %vm1813_vm7, %v7488_v35, %v4999_v40  ;;  %v1831_v23 = vsel %vm1813_vm7, %v7492_v52, %v5000_v37  ;;  %v1857_v44 = vsel %vm1846_vm8, %v7609_v57, %v5064_v22  ;;  %v1858_v60 = vsel %vm1846_vm8, %v7615_v43, %v5065_v39  ;;  %v5238_v56 = vpop.permute.xlu0 %5237 }
 0x18f   : > { %4551 = vmatmul.mubr.msk.bf16.gmra.mxu0 %vm1988_vm11, %v1948_v15  ;;  %v1859_v53 = vsel %vm1846_vm8, %v1826_v49, %v5069_v20  ;;  %v1860_v11 = vsel %vm1846_vm8, %v1827_v18, %v5070_v12  ;;  %v1890_v0 = vsel %vm1879_vm9, %v1857_v44, %v5144_v13  ;;  %v1891_v38 = vsel %vm1879_vm9, %v1858_v60, %v5145_v31  ;;  %v9372_v60 = vld [vmem:[#allocation25_spill] sm:$0xff] }
 0x190   : > { %4554 = vmatprep.mubr.msk.bf16.mxu0 %vm1988_vm11, %v1949_v33  ;;  %v1892_v35 = vsel %vm1879_vm9, %v1859_v53, %v5149_v32  ;;  %v1893_v52 = vsel %vm1879_vm9, %v1860_v11, %v5150_v19  ;;  %v1923_v5 = vsel %vm1912_vm10, %v1890_v0, %v5224_v10  ;;  %v1924_v57 = vsel %vm1912_vm10, %v1891_v38, %v5225_v29 }
 0x191   : > { %v5005_v43 = vunpack.i.h.bf16 %v9367_v2  ;;  %v5004_v54 = vunpack.i.l.bf16 %v9367_v2  ;;  %v1925_v49 = vsel %vm1912_vm10, %v1892_v35, %v5229_v26  ;;  %v1926_v18 = vsel %vm1912_vm10, %v1893_v52, %v5230_v24  ;;  %v5243_v26 = vpop.permute.xlu1 %5242 }
 0x192   : > { %v5075_v4 = vunpack.i.h.bf16 %v7126_v28  ;;  %v5074_v45 = vunpack.i.l.bf16 %v7126_v28  ;;  %v5080_v30 = vunpack.i.h.bf16 %v9368_v61  ;;  %v5079_v16 = vunpack.i.l.bf16 %v9368_v61  ;;  %v5248_v0 = vpop.permute.xlu0 %5247 }
 0x193   : > { %v5155_v1 = vunpack.i.h.bf16 %v9369_v36  ;;  %v5154_v8 = vunpack.i.l.bf16 %v9369_v36  ;;  %v5160_v55 = vunpack.i.h.bf16 %v7484_v25  ;;  %v1950_v58 = vpack.c.bf16 %v1924_v57, %v1923_v5 }
 0x194   : > { %v5159_v37 = vunpack.i.l.bf16 %v7484_v25  ;;  %v5235_v40 = vunpack.i.h.bf16 %v5233_v47  ;;  %v5234_v63 = vunpack.i.l.bf16 %v5233_v47  ;;  %v1951_v21 = vpack.c.bf16 %v1926_v18, %v1925_v49 }
 0x195   : > { %v5010_v39 = vunpack.i.h.bf16 %v9370_v50  ;;  %v5009_v28 = vunpack.i.l.bf16 %v9370_v50  ;;  %v5240_v22 = vunpack.i.h.bf16 %v5238_v56  ;;  %v5239_v12 = vunpack.i.l.bf16 %v5238_v56  ;;  %v5253_v50 = vpop.permute.xlu1 %5252 }
 0x196   : > { %v1832_v20 = vsel %vm1813_vm7, %v7498_v41, %v5004_v54  ;;  %v1833_v62 = vsel %vm1813_vm7, %v7502_v42, %v5005_v43  ;;  %v1861_v31 = vsel %vm1846_vm8, %v1828_v17, %v5074_v45  ;;  %v1862_v25 = vsel %vm1846_vm8, %v1829_v48, %v5075_v4  ;;  %v9373_v43 = vld [vmem:[#allocation75_spill] sm:$0xff]  ;;  %v9374_v4 = vld [vmem:[#allocation76_spill] sm:$0xff] }
 0x197   : > { %4555 = vmatmul.mubr.msk.bf16.gmra.mxu0 %vm1988_vm11, %v1950_v58  ;;  %v1863_v13 = vsel %vm1846_vm8, %v1830_v27, %v5079_v16  ;;  %v1864_v19 = vsel %vm1846_vm8, %v1831_v23, %v5080_v30  ;;  %v1894_v15 = vsel %vm1879_vm9, %v1861_v31, %v5154_v8  ;;  %v1895_v32 = vsel %vm1879_vm9, %v1862_v25, %v5155_v1  ;;  %v9371_v27 = vld [vmem:[#allocation22_spill] sm:$0xff]  ;;  %v5258_v31 = vpop.permute.xlu0 %5257 }
 0x198   : > { %4558 = vmatprep.mubr.msk.bf16.mxu0 %vm1988_vm11, %v1951_v21  ;;  %v1896_v29 = vsel %vm1879_vm9, %v1863_v13, %v5159_v37  ;;  %v1897_v41 = vsel %vm1879_vm9, %v1864_v19, %v5160_v55  ;;  %v1927_v42 = vsel %vm1912_vm10, %v1894_v15, %v5234_v63  ;;  %v1928_v10 = vsel %vm1912_vm10, %v1895_v32, %v5235_v40 }
 0x199   : > { %v1834_v33 = vsel %vm1813_vm7, %v7508_v3, %v5009_v28  ;;  %v1835_v17 = vsel %vm1813_vm7, %v7512_v46, %v5010_v39  ;;  %v1929_v48 = vsel %vm1912_vm10, %v1896_v29, %v5239_v12  ;;  %v1930_v24 = vsel %vm1912_vm10, %v1897_v41, %v5240_v22  ;;  %v9375_v39 = vld [vmem:[#allocation24_spill] sm:$0xff]  ;;  %v9376_v12 = vld [vmem:[#allocation27_spill] sm:$0xff] }
 0x19a   : > { %v5085_v23 = vunpack.i.h.bf16 %v9371_v27  ;;  %v5084_v44 = vunpack.i.l.bf16 %v9371_v27  ;;  %v5090_v53 = vunpack.i.h.bf16 %v9372_v60  ;;  %v5089_v11 = vunpack.i.l.bf16 %v9372_v60 }
 0x19b   : > { %v5165_v38 = vunpack.i.h.bf16 %v7519_v6  ;;  %v5164_v3 = vunpack.i.l.bf16 %v7519_v6  ;;  %v5170_v46 = vunpack.i.h.bf16 %v7531_v34  ;;  %v1952_v35 = vpack.c.bf16 %v1928_v10, %v1927_v42  ;;  %v9377_v42 = vld [vmem:[#allocation33_spill] sm:$0xff] }
 0x19c   : > { %v5169_v52 = vunpack.i.l.bf16 %v7531_v34  ;;  %v5245_v5 = vunpack.i.h.bf16 %v5243_v26  ;;  %v5244_v57 = vunpack.i.l.bf16 %v5243_v26  ;;  %v1953_v2 = vpack.c.bf16 %v1930_v24, %v1929_v48  ;;  %v9378_v48 = vld [vmem:[#allocation77_spill] sm:$0xff] }
 0x19d   : > { %v5015_v54 = vunpack.i.h.bf16 %v9373_v43  ;;  %v5014_v49 = vunpack.i.l.bf16 %v9373_v43  ;;  %v5250_v18 = vunpack.i.h.bf16 %v5248_v0  ;;  %v5249_v47 = vunpack.i.l.bf16 %v5248_v0 }
 0x19e   : > { %v5020_v45 = vunpack.i.h.bf16 %v9374_v4  ;;  %v5019_v6 = vunpack.i.l.bf16 %v9374_v4  ;;  %v1865_v61 = vsel %vm1846_vm8, %v1832_v20, %v5084_v44  ;;  %v1866_v30 = vsel %vm1846_vm8, %v1833_v62, %v5085_v23  ;;  %v9382_v4 = vld [vmem:[#allocation38_spill] sm:$0xff] }
 0x19f   : > { %4559 = vmatmul.mubr.msk.bf16.gmra.mxu0 %vm1988_vm11, %v1952_v35  ;;  %v1867_v34 = vsel %vm1846_vm8, %v1834_v33, %v5089_v11  ;;  %v1868_v16 = vsel %vm1846_vm8, %v1835_v17, %v5090_v53  ;;  %v1898_v56 = vsel %vm1879_vm9, %v1865_v61, %v5164_v3  ;;  %v1899_v36 = vsel %vm1879_vm9, %v1866_v30, %v5165_v38  ;;  %v9379_v38 = vld [vmem:[#allocation78_spill] sm:$0xff]  ;;  %v9383_v61 = vld [vmem:[#allocation39_spill] sm:$0xff] }
 0x1a0   : > { %4562 = vmatprep.mubr.msk.bf16.mxu0 %vm1988_vm11, %v1953_v2  ;;  %v1900_v1 = vsel %vm1879_vm9, %v1867_v34, %v5169_v52  ;;  %v1901_v8 = vsel %vm1879_vm9, %v1868_v16, %v5170_v46  ;;  %v1931_v55 = vsel %vm1912_vm10, %v1898_v56, %v5244_v57  ;;  %v1932_v58 = vsel %vm1912_vm10, %v1899_v36, %v5245_v5  ;;  %v5263_v5 = vpop.permute.xlu1 %5262  ;;  %v9380_v57 = vld [vmem:[#allocation28_spill] sm:$0xff] }
 0x1a1   : > { %v1836_v37 = vsel %vm1813_vm7, %v7516_v14, %v5014_v49  ;;  %v1837_v40 = vsel %vm1813_vm7, %v7523_v59, %v5015_v54  ;;  %v1933_v63 = vsel %vm1912_vm10, %v1900_v1, %v5249_v47  ;;  %v1934_v21 = vsel %vm1912_vm10, %v1901_v8, %v5250_v18  ;;  %v9381_v54 = vld [vmem:[#allocation31_spill] sm:$0xff]  ;;  %v5268_v47 = vpop.permute.xlu0 %5267  ;;  %v9384_v8 = vld [vmem:[#allocation34_spill] sm:$0xff] }
 0x1a2   : > { %v5095_v28 = vunpack.i.h.bf16 %v9375_v39  ;;  %v5094_v22 = vunpack.i.l.bf16 %v9375_v39  ;;  %v5100_v20 = vunpack.i.h.bf16 %v9376_v12  ;;  %v5099_v62 = vunpack.i.l.bf16 %v9376_v12  ;;  %v9387_v39 = vld [vmem:[#allocation37_spill] sm:$0xff] }
 0x1a3   : > { %v5175_v25 = vunpack.i.h.bf16 %v7560_v9  ;;  %v5174_v14 = vunpack.i.l.bf16 %v7560_v9  ;;  %v5180_v59 = vunpack.i.h.bf16 %v7568_v51  ;;  %v1954_v13 = vpack.c.bf16 %v1932_v58, %v1931_v55  ;;  %v9385_v58 = vld [vmem:[#allocation35_spill] sm:$0xff] }
 0x1a4   : > { %v5179_v19 = vunpack.i.l.bf16 %v7568_v51  ;;  %v5255_v15 = vunpack.i.h.bf16 %v5253_v50  ;;  %v5254_v32 = vunpack.i.l.bf16 %v5253_v50  ;;  %v1955_v29 = vpack.c.bf16 %v1934_v21, %v1933_v63  ;;  %v9386_v21 = vld [vmem:[#allocation36_spill] sm:$0xff] }
 0x1a5   : > { %v1838_v41 = vsel %vm1813_vm7, %v7527_v7, %v5019_v6  ;;  %v1839_v10 = vsel %vm1813_vm7, %v9377_v42, %v5020_v45  ;;  %v5260_v33 = vunpack.i.h.bf16 %v5258_v31  ;;  %v5259_v17 = vunpack.i.l.bf16 %v5258_v31 }
 0x1a6   : > { %v5025_v9 = vunpack.i.h.bf16 %v9378_v48  ;;  %v5024_v24 = vunpack.i.l.bf16 %v9378_v48  ;;  %v1869_v26 = vsel %vm1846_vm8, %v1836_v37, %v5094_v22  ;;  %v1870_v51 = vsel %vm1846_vm8, %v1837_v40, %v5095_v28  ;;  %v9391_v48 = vld [vmem:[#allocation29_spill] sm:$0xff] }
 0x1a7   : > { %4563 = vmatmul.mubr.msk.bf16.gmra.mxu0 %vm1988_vm11, %v1954_v13  ;;  %v1871_v27 = vsel %vm1846_vm8, %v1838_v41, %v5099_v62  ;;  %v1872_v7 = vsel %vm1846_vm8, %v1839_v10, %v5100_v20  ;;  %v1902_v23 = vsel %vm1879_vm9, %v1869_v26, %v5174_v14  ;;  %v1903_v44 = vsel %vm1879_vm9, %v1870_v51, %v5175_v25  ;;  %v5273_v10 = vpop.permute.xlu1 %5272  ;;  %v9393_v26 = vld [vmem:[#allocation26_spill] sm:$0xff] }
 0x1a8   : > { %4566 = vmatprep.mubr.msk.bf16.mxu0 %vm1988_vm11, %v1955_v29  ;;  %v1904_v60 = vsel %vm1879_vm9, %v1871_v27, %v5179_v19  ;;  %v1905_v53 = vsel %vm1879_vm9, %v1872_v7, %v5180_v59  ;;  %v1935_v11 = vsel %vm1912_vm10, %v1902_v23, %v5254_v32  ;;  %v1936_v0 = vsel %vm1912_vm10, %v1903_v44, %v5255_v15  ;;  %v9388_v15 = vld [vmem:[#allocation79_spill] sm:$0xff]  ;;  %v9394_v27 = vld [vmem:[#allocation30_spill] sm:$0xff] }
 0x1a9   : > { %v5030_v3 = vunpack.i.h.bf16 %v9379_v38  ;;  %v5029_v46 = vunpack.i.l.bf16 %v9379_v38  ;;  %v1937_v35 = vsel %vm1912_vm10, %v1904_v60, %v5259_v17  ;;  %v1938_v52 = vsel %vm1912_vm10, %v1905_v53, %v5260_v33  ;;  %v9389_v33 = vld [vmem:[#allocation50_spill] sm:$0xff] }
 0x1aa   : > { %v5105_v2 = vunpack.i.h.bf16 %v9380_v57  ;;  %v5104_v43 = vunpack.i.l.bf16 %v9380_v57  ;;  %v5110_v49 = vunpack.i.h.bf16 %v9381_v54  ;;  %v5109_v18 = vunpack.i.l.bf16 %v9381_v54  ;;  %v9395_v44 = vld [vmem:[#allocation66_spill] sm:$0xff] }
 0x1ab   : > { %v5185_v45 = vunpack.i.h.bf16 %v9382_v4  ;;  %v5184_v6 = vunpack.i.l.bf16 %v9382_v4  ;;  %v5190_v30 = vunpack.i.h.bf16 %v9383_v61  ;;  %v1956_v34 = vpack.c.bf16 %v1936_v0, %v1935_v11  ;;  %v9397_v11 = vld [vmem:[#allocation40_spill] sm:$0xff] }
 0x1ac   : > { %v5189_v16 = vunpack.i.l.bf16 %v9383_v61  ;;  %v5265_v56 = vunpack.i.h.bf16 %v5263_v5  ;;  %v5264_v36 = vunpack.i.l.bf16 %v5263_v5  ;;  %v1957_v1 = vpack.c.bf16 %v1938_v52, %v1937_v35  ;;  %v2298_v61 = vld [vmem:[#allocation2 + $0x1] sm:$0xff] }
 0x1ad   : > { %v1840_v55 = vsel %vm1813_vm7, %v9384_v8, %v5024_v24  ;;  %v1841_v37 = vsel %vm1813_vm7, %v9385_v58, %v5025_v9  ;;  %v5270_v40 = vunpack.i.h.bf16 %v5268_v47  ;;  %v5269_v63 = vunpack.i.l.bf16 %v5268_v47 }
 0x1ae   : > { %v1842_v50 = vsel %vm1813_vm7, %v9386_v21, %v5029_v46  ;;  %v1843_v28 = vsel %vm1813_vm7, %v9387_v39, %v5030_v3  ;;  %v1873_v22 = vsel %vm1846_vm8, %v1840_v55, %v5104_v43  ;;  %v1874_v12 = vsel %vm1846_vm8, %v1841_v37, %v5105_v2  ;;  %v9402_v37 = vld [vmem:[#allocation3_spill] sm:$0xff] }
 0x1af   : > { %4567 = vmatmul.mubr.msk.bf16.gmra.mxu0 %vm1988_vm11, %v1956_v34  ;;  %v1875_v20 = vsel %vm1846_vm8, %v1842_v50, %v5109_v18  ;;  %v1876_v62 = vsel %vm1846_vm8, %v1843_v28, %v5110_v49  ;;  %v1906_v31 = vsel %vm1879_vm9, %v1873_v22, %v5184_v6  ;;  %v1907_v25 = vsel %vm1879_vm9, %v1874_v12, %v5185_v45  ;;  %v7880_v50 = vld [vmem:[%s9056_s2] ss:$0 sm:$0xff] }
 0x1b0   : > { %4570 = vmatprep.mubr.msk.bf16.mxu0 %vm1988_vm11, %v1957_v1  ;;  %v1908_v14 = vsel %vm1879_vm9, %v1875_v20, %v5189_v16  ;;  %v1909_v59 = vsel %vm1879_vm9, %v1876_v62, %v5190_v30  ;;  %v1939_v13 = vsel %vm1912_vm10, %v1906_v31, %v5264_v36  ;;  %v1940_v19 = vsel %vm1912_vm10, %v1907_v25, %v5265_v56  ;;  %v2299_v30 = vld [vmem:[#allocation2 + $0x9] sm:$0xff]  ;;  %v9399_v1 = vld [vmem:[#allocation4_spill] sm:$0xff] }
 0x1b1   : > { %v5035_v32 = vunpack.i.h.bf16 %v9388_v15  ;;  %v5034_v29 = vunpack.i.l.bf16 %v9388_v15  ;;  %v1941_v41 = vsel %vm1912_vm10, %v1908_v14, %v5269_v63  ;;  %v1942_v42 = vsel %vm1912_vm10, %v1909_v59, %v5270_v40  ;;  %v2330_v16 = vld [vmem:[#allocation2 + $0x2] sm:$0xff]  ;;  %v2331_v56 = vld [vmem:[#allocation2 + $0xa] sm:$0xff] }
 0x1b2   : > { %v9390_v17 = vunpack.i.l.bf16 %v9389_v33  ;;  %v9392_v24 = vunpack.i.h.bf16 %v9389_v33  ;;  %v5115_v7 = vunpack.i.h.bf16 %v9394_v27  ;;  %v5114_v23 = vunpack.i.l.bf16 %v9394_v27 }
 0x1b3   : > { %v9396_v60 = vunpack.i.l.bf16 %v9395_v44  ;;  %v5195_v0 = vunpack.i.h.bf16 %v9397_v11  ;;  %v5194_v38 = vunpack.i.l.bf16 %v9397_v11  ;;  %v1958_v3 = vpack.c.bf16 %v1940_v19, %v1939_v13 }
 0x1b4   : > { %v1778_v9 = vsel %vm1747_vm5, %v9391_v48, %v9390_v17  ;;  %v1779_v51 = vsel %vm1747_vm5, %v9393_v26, %v9392_v24  ;;  %v9398_v46 = vunpack.i.h.bf16 %v9395_v44  ;;  %v5275_v52 = vunpack.i.h.bf16 %v5273_v10 }
 0x1b5   : > { %v1811_v53 = vsel %vm1780_vm6, %v1778_v9, %v9396_v60  ;;  %v5274_v5 = vunpack.i.l.bf16 %v5273_v10  ;;  %v1959_v57 = vpack.c.bf16 %v1942_v42, %v1941_v41  ;;  %v5276_v34 = vpack.i.bf16 %v2299_v30, %v2298_v61 }
 0x1b6   : > { %v1812_v35 = vsel %vm1780_vm6, %v1779_v51, %v9398_v46  ;;  %v1844_v2 = vsel %vm1813_vm7, %v1811_v53, %v5034_v29  ;;  %v5281_v36 = vpack.i.bf16 %v2331_v56, %v2330_v16  ;;  %v9400_v8 = vunpack.c.l.bf16 %v9399_v1 }
 0x1b7   : > { %v1845_v43 = vsel %vm1813_vm7, %v1812_v35, %v5035_v32  ;;  %4571 = vmatmul.mubr.msk.bf16.gmra.mxu0 %vm1988_vm11, %v1958_v3  ;;  %v1877_v54 = vsel %vm1846_vm8, %v1844_v2, %v5114_v23  ;;  %5277 = vrot.lane.b32.xlu0 %v5276_v34, %s6021_s25  ;;  %v9401_v55 = vunpack.c.h.bf16 %v9399_v1  ;;  %v9403_v40 = vunpack.c.l.bf16 %v9402_v37 }
 0x1b8   : > { %v1878_v49 = vsel %vm1846_vm8, %v1845_v43, %v5115_v7  ;;  %4574 = vmatprep.mubr.msk.bf16.mxu0 %vm1988_vm11, %v1959_v57  ;;  %v1910_v18 = vsel %vm1879_vm9, %v1877_v54, %v5194_v38  ;;  %v9404_v63 = vunpack.c.h.bf16 %v9402_v37 }
 0x1b9   : > { %v1911_v47 = vsel %vm1879_vm9, %v1878_v49, %v5195_v0  ;;  %v1943_v4 = vsel %vm1912_vm10, %v1910_v18, %v5274_v5  ;;  %v5286_v58 = vpack.i.bf16 %v9401_v55, %v9400_v8 }
 0x1ba   : > { %v1944_v45 = vsel %vm1912_vm10, %v1911_v47, %v5275_v52  ;;  %v5291_v21 = vpack.i.bf16 %v9404_v63, %v9403_v40 }
 0x1bb   : > { %v1960_v6 = vpack.c.bf16 %v1944_v45, %v1943_v4  ;;  %5282 = vrot.lane.b32.xlu0 %v5281_v36, %s6022_s26  ;;  %5287 = vrot.lane.b32.xlu1 %v5286_v58, %s6029_s14 }
 0x1bf   : > { %4575 = vmatmul.mubr.msk.bf16.gmra.mxu0 %vm1988_vm11, %v1960_v6  ;;  %5292 = vrot.lane.b32.xlu0 %v5291_v21, %s6029_s14 }
 0x247   : > { %v4548_v39 = vpop.f32.mrf.mxu0 }
 0x248   : > { %v2084_v28 = vadd.f32 %v4548_v39, %v7880_v50 }
 0x249   : > { %v2075_v22 = vpop.f32.mrf.mxu0 }
 0x24a   : > { %v2204_v12 = vmax.f32 %v2084_v28, 0.0  ;;  %v2076_v20 = vadd.f32 %v7880_v50, %v2075_v22 }
 0x24b   : > { %v4549_v62 = vpop.f32.mrf.mxu0 }
 0x24c   : > { %2236 = vst.msk [vmem:[#allocation2 + $0x31] sm:$0xff] %vm226_vm0, %v2204_v12  ;;  %v2202_v31 = vmax.f32 %v2076_v20, 0.0  ;;  %v2087_v25 = vadd.f32 %v4549_v62, %v7880_v50 }
 0x24d   : > { %v2078_v14 = vpop.f32.mrf.mxu0 }
 0x24e   : > { %2234 = vst.msk [vmem:[#allocation2 + $0x19] sm:$0xff] %vm226_vm0, %v2202_v31  ;;  %v2205_v59 = vmax.f32 %v2087_v25, 0.0  ;;  %v2079_v13 = vadd.f32 %v7880_v50, %v2078_v14 }
 0x24f   : > { %v4552_v19 = vpop.f32.mrf.mxu0 }
 0x250   : > { %2237 = vst.msk [vmem:[#allocation2 + $0x39] sm:$0xff] %vm226_vm0, %v2205_v59  ;;  %v2203_v15 = vmax.f32 %v2079_v13, 0.0  ;;  %v2100_v32 = vadd.f32 %v4552_v19, %v7880_v50 }
 0x251   : > { %v2091_v29 = vpop.f32.mrf.mxu0 }
 0x252   : > { %2235 = vst.msk [vmem:[#allocation2 + $0x21] sm:$0xff] %vm226_vm0, %v2203_v15  ;;  %v2208_v41 = vmax.f32 %v2100_v32, 0.0  ;;  %v2092_v42 = vadd.f32 %v7880_v50, %v2091_v29 }
 0x253   : > { %v4553_v10 = vpop.f32.mrf.mxu0  ;;  %v2364_v26 = vld [vmem:[#allocation2 + $0x30] sm:$0xff] }
 0x254   : > { %2240 = vst.msk [vmem:[#allocation2 + $0x61] sm:$0xff] %vm226_vm0, %v2208_v41  ;;  %v2206_v33 = vmax.f32 %v2092_v42, 0.0  ;;  %v2103_v17 = vadd.f32 %v4553_v10, %v7880_v50  ;;  %v2302_v7 = vld [vmem:[#allocation2 + $0x31] sm:$0xff] }
 0x255   : > { %v2094_v48 = vpop.f32.mrf.mxu0  ;;  %v7916_v16 = vld [vmem:[#allocation2 + $0x18] sm:$0xff] }
 0x256   : > { %2238 = vst.msk [vmem:[#allocation2 + $0x49] sm:$0xff] %vm226_vm0, %v2206_v33  ;;  %v2209_v9 = vmax.f32 %v2103_v17, 0.0  ;;  %v2095_v24 = vadd.f32 %v7880_v50, %v2094_v48  ;;  %v2394_v63 = vld [vmem:[#allocation2 + $0x19] sm:$0xff] }
 0x257   : > { %v4556_v51 = vpop.f32.mrf.mxu0  ;;  %v2365_v27 = vld [vmem:[#allocation2 + $0x38] sm:$0xff] }
 0x258   : > { %v2303_v23 = vld [vmem:[#allocation2 + $0x39] sm:$0xff]  ;;  %2241 = vst.msk [vmem:[#allocation2 + $0x69] sm:$0xff] %vm226_vm0, %v2209_v9  ;;  %v2207_v44 = vmax.f32 %v2095_v24, 0.0  ;;  %v2116_v60 = vadd.f32 %v4556_v51, %v7880_v50  ;;  %v5306_v53 = vpack.i.bf16 %v2365_v27, %v2364_v26 }
 0x259   : > { %v5296_v11 = vpack.i.bf16 %v2303_v23, %v2302_v7  ;;  %v2107_v0 = vpop.f32.mrf.mxu0  ;;  %v2334_v38 = vld [vmem:[#allocation2 + $0x32] sm:$0xff]  ;;  %v2335_v3 = vld [vmem:[#allocation2 + $0x3a] sm:$0xff]  ;;  %v2333_v41 = vld [vmem:[#allocation2 + $0x22] sm:$0xff] }
 0x25a   : > { %2239 = vst.msk [vmem:[#allocation2 + $0x51] sm:$0xff] %vm226_vm0, %v2207_v44  ;;  %v2212_v46 = vmax.f32 %v2116_v60, 0.0  ;;  %v2108_v35 = vadd.f32 %v7880_v50, %v2107_v0  ;;  %5307 = vrot.lane.b32.xlu1 %v5306_v53, %s6023_s27  ;;  %v5301_v2 = vpack.i.bf16 %v2335_v3, %v2334_v38  ;;  %v7910_v6 = vld [vmem:[#allocation2 + $0x20] sm:$0xff] }
 0x25b   : > { %5297 = vrot.lane.b32.xlu0 %v5296_v11, %s6021_s25  ;;  %v4557_v52 = vpop.f32.mrf.mxu0  ;;  %v5346_v1 = vpack.i.bf16 %v7910_v6, %v7916_v16  ;;  %v2395_v55 = vld [vmem:[#allocation2 + $0x21] sm:$0xff] }
 0x25c   : > { %2244 = vst.msk [vmem:[#allocation2 + $0x91] sm:$0xff] %vm226_vm0, %v2212_v46  ;;  %v2210_v5 = vmax.f32 %v2108_v35, 0.0  ;;  %v2119_v57 = vadd.f32 %v4557_v52, %v7880_v50  ;;  %v5351_v28 = vpack.i.bf16 %v2395_v55, %v2394_v63  ;;  %v2306_v25 = vld [vmem:[#allocation2 + $0x61] sm:$0xff] }
 0x25d   : > { %v2110_v43 = vpop.f32.mrf.mxu0  ;;  %v2332_v19 = vld [vmem:[#allocation2 + $0x1a] sm:$0xff]  ;;  %v2366_v35 = vld [vmem:[#allocation2 + $0x48] sm:$0xff] }
 0x25e   : > { %2242 = vst.msk [vmem:[#allocation2 + $0x79] sm:$0xff] %vm226_vm0, %v2210_v5  ;;  %v2213_v54 = vmax.f32 %v2119_v57, 0.0  ;;  %v2111_v49 = vadd.f32 %v7880_v50, %v2110_v43  ;;  %5312 = vrot.lane.b32.xlu1 %v5296_v11, %s6024_s28  ;;  %v5341_v24 = vpack.i.bf16 %v2333_v41, %v2332_v19  ;;  %v2368_v3 = vld [vmem:[#allocation2 + $0x60] sm:$0xff]  ;;  %v5999_v43 = vld [vmem:[%s9057_s3 + $0x10] ss:$0 sps:$4 sm:$0xff]  }
 0x25f   : > { %5302 = vrot.lane.b32.xlu0 %v5301_v2, %s6022_s26  ;;  %v4560_v18 = vpop.f32.mrf.mxu0  ;;  %v2307_v12 = vld [vmem:[#allocation2 + $0x69] sm:$0xff]  ;;  %4617 = vmatprep.subr.msk.bf16.mxu1 %vm4086_vm12, %v5999_v43  ;;  %v6001_v63 = vld [vmem:[%s9057_s3] sm:$0xff]  }
 0x260   : > { %2245 = vst.msk [vmem:[#allocation2 + $0x99] sm:$0xff] %vm226_vm0, %v2213_v54  ;;  %v2211_v47 = vmax.f32 %v2111_v49, 0.0  ;;  %v2132_v4 = vadd.f32 %v4560_v18, %v7880_v50  ;;  %v7934_v13 = vpack.i.bf16 %v2307_v12, %v2306_v25  ;;  %v2338_v32 = vld [vmem:[#allocation2 + $0x62] sm:$0xff]  ;;  %v2339_v29 = vld [vmem:[#allocation2 + $0x6a] sm:$0xff] }
 0x261   : > { %v2123_v45 = vpop.f32.mrf.mxu0  ;;  %v7943_v9 = vpack.i.bf16 %v2339_v29, %v2338_v32  ;;  %v2369_v60 = vld [vmem:[#allocation2 + $0x68] sm:$0xff]  ;;  %v2399_v49 = vld [vmem:[#allocation2 + $0x51] sm:$0xff] }
 0x262   : > { %2243 = vst.msk [vmem:[#allocation2 + $0x81] sm:$0xff] %vm226_vm0, %v2211_v47  ;;  %v2216_v61 = vmax.f32 %v2132_v4, 0.0  ;;  %v2124_v30 = vadd.f32 %v7880_v50, %v2123_v45  ;;  %5322 = vrot.lane.b32.xlu1 %v5306_v53, %s6026_s30  ;;  %v5371_v52 = vpack.i.bf16 %v2369_v60, %v2368_v3  ;;  %v2398_v45 = vld [vmem:[#allocation2 + $0x49] sm:$0xff]  ;;  %v2525_v25 = vld [vmem:[#allocation2 + $0x52] sm:$0xff] }
 0x263   : > { %5317 = vrot.lane.b32.xlu0 %v5301_v2, %s6025_s29  ;;  %v4561_v34 = vpop.f32.mrf.mxu0  ;;  %v2310_v29 = vld [vmem:[#allocation2 + $0x91] sm:$0xff] }
 0x264   : > { %2248 = vst.msk [vmem:[#allocation2 + $0xc1] sm:$0xff] %vm226_vm0, %v2216_v61  ;;  %v2214_v56 = vmax.f32 %v2124_v30, 0.0  ;;  %v2135_v36 = vadd.f32 %v4561_v34, %v7880_v50  ;;  %v4088_v61 = vsel %vm4086_vm12, %v5999_v43, 0  ;;  %v6000_v30 = vld [vmem:[%s9057_s3 + $0x8] sm:$0xff]  }
 0x265   : > { %v2126_v8 = vpop.f32.mrf.mxu0  ;;  %4579 = vmatpush3.bf16.msra.mxu1 %v4088_v61 }
 0x266   : > { %2246 = vst.msk [vmem:[#allocation2 + $0xa9] sm:$0xff] %vm226_vm0, %v2214_v56  ;;  %v2217_v58 = vmax.f32 %v2135_v36, 0.0  ;;  %v2127_v37 = vadd.f32 %v7880_v50, %v2126_v8  ;;  %5327 = vrot.lane.b32.xlu1 %v5296_v11, %s6027_s6  ;;  %v2367_v11 = vld [vmem:[#allocation2 + $0x50] sm:$0xff]  ;;  %v5411_v36 = vpack.i.bf16 %v2399_v49, %v2398_v45  ;;  %4580 = vmatprep.subr.bf16.mxu1 %v6000_v30 }
 0x267   : > { %5347 = vrot.lane.b32.xlu0 %v5346_v1, %s6023_s27  ;;  %v4564_v40 = vpop.f32.mrf.mxu0  ;;  %v2311_v32 = vld [vmem:[#allocation2 + $0x99] sm:$0xff] }
 0x268   : > { %2249 = vst.msk [vmem:[#allocation2 + $0xc9] sm:$0xff] %vm226_vm0, %v2217_v58  ;;  %v2215_v21 = vmax.f32 %v2127_v37, 0.0  ;;  %v2148_v39 = vadd.f32 %v4564_v40, %v7880_v50  ;;  %v7996_v41 = vpack.i.bf16 %v2311_v32, %v2310_v29 }
 0x269   : > { %v2139_v22 = vpop.f32.mrf.mxu0  ;;  %4581 = vmatpush3.bf16.msra.mxu1 %v6000_v30  ;;  %v2341_v60 = vld [vmem:[#allocation2 + $0x82] sm:$0xff] }
 0x26a   : > { %2247 = vst.msk [vmem:[#allocation2 + $0xb1] sm:$0xff] %vm226_vm0, %v2215_v21  ;;  %v2220_v20 = vmax.f32 %v2148_v39, 0.0  ;;  %v2140_v62 = vadd.f32 %v7880_v50, %v2139_v22  ;;  %5332 = vrot.lane.b32.xlu1 %v5301_v2, %s6028_s13  ;;  %v5406_v2 = vpack.i.bf16 %v2367_v11, %v2366_v35  ;;  %4582 = vmatprep.subr.bf16.mxu1 %v6001_v63 }
 0x26b   : > { %5352 = vrot.lane.b32.xlu0 %v5351_v28, %s6024_s28  ;;  %v4565_v31 = vpop.f32.mrf.mxu0  ;;  %v8036_v35 = vld [vmem:[#allocation2 + $0xc0] sm:$0xff] }
 0x26c   : > { %2252 = vst.msk [vmem:[#allocation2 + $0xf1] sm:$0xff] %vm226_vm0, %v2220_v20  ;;  %v2218_v14 = vmax.f32 %v2140_v62, 0.0  ;;  %v2151_v59 = vadd.f32 %v4565_v31, %v7880_v50  ;;  %v2524_v31 = vld [vmem:[#allocation2 + $0x4a] sm:$0xff] }
 0x26d   : > { %v2142_v15 = vpop.f32.mrf.mxu0  ;;  %4583 = vmatpush3.bf16.msra.mxu1 %v6001_v63  ;;  %v2406_v49 = vld [vmem:[#allocation2 + $0xa9] sm:$0xff] }
 0x26e   : > { %2250 = vst.msk [vmem:[#allocation2 + $0xd9] sm:$0xff] %vm226_vm0, %v2218_v14  ;;  %v2221_v42 = vmax.f32 %v2151_v59, 0.0  ;;  %v2143_v10 = vadd.f32 %v7880_v50, %v2142_v15  ;;  %5337 = vrot.lane.b32.xlu1 %v5351_v28, %s6021_s25  ;;  %v5426_v15 = vpack.i.bf16 %v2525_v25, %v2524_v31 }
 0x26f   : > { %5362 = vrot.lane.b32.xlu0 %v7934_v13, %s6021_s25  ;;  %v4568_v33 = vpop.f32.mrf.mxu0  ;;  %v2347_v3 = vld [vmem:[#allocation2 + $0xca] sm:$0xff] }
 0x270   : > { %2253 = vst.msk [vmem:[#allocation2 + $0xf9] sm:$0xff] %vm226_vm0, %v2221_v42  ;;  %v2219_v17 = vmax.f32 %v2143_v10, 0.0  ;;  %v2164_v48 = vadd.f32 %v4568_v33, %v7880_v50  ;;  %v2343_v42 = vld [vmem:[#allocation2 + $0x9a] sm:$0xff] }
 0x271   : > { %v2155_v26 = vpop.f32.mrf.mxu0  ;;  %v2371_v10 = vld [vmem:[#allocation2 + $0x80] sm:$0xff]  ;;  %v8003_v33 = vld [vmem:[#allocation2 + $0x98] sm:$0xff] }
 0x272   : > { %2251 = vst.msk [vmem:[#allocation2 + $0xe1] sm:$0xff] %vm226_vm0, %v2219_v17  ;;  %v2224_v51 = vmax.f32 %v2164_v48, 0.0  ;;  %v2156_v27 = vadd.f32 %v7880_v50, %v2155_v26  ;;  %5342 = vrot.lane.b32.xlu1 %v5341_v24, %s6022_s26  ;;  %v2370_v17 = vld [vmem:[#allocation2 + $0x78] sm:$0xff]  ;;  %v8008_v48 = vld [vmem:[#allocation2 + $0x90] sm:$0xff] }
 0x273   : > { %5367 = vrot.lane.b32.xlu0 %v7943_v9, %s6022_s26  ;;  %v4569_v7 = vpop.f32.mrf.mxu0  ;;  %v8012_v26 = vpack.i.bf16 %v8003_v33, %v8008_v48  ;;  %v2345_v45 = vld [vmem:[#allocation2 + $0xb2] sm:$0xff] }
 0x274   : > { %2256 = vst.msk [vmem:[#allocation2 + $0x121] sm:$0xff] %vm226_vm0, %v2224_v51  ;;  %v2222_v23 = vmax.f32 %v2156_v27, 0.0  ;;  %v2167_v44 = vadd.f32 %v4569_v7, %v7880_v50  ;;  %v2403_v51 = vld [vmem:[#allocation2 + $0x81] sm:$0xff]  ;;  %v2402_v27 = vld [vmem:[#allocation2 + $0x79] sm:$0xff]  ;;  %v2318_v61 = vld [vmem:[#allocation2 + $0xf1] sm:$0xff] }
 0x275   : > { %v2158_v53 = vpop.f32.mrf.mxu0  ;;  %v8017_v7 = vpack.i.bf16 %v2403_v51, %v2402_v27 }
 0x276   : > { %2254 = vst.msk [vmem:[#allocation2 + $0x109] sm:$0xff] %vm226_vm0, %v2222_v23  ;;  %v2225_v0 = vmax.f32 %v2167_v44, 0.0  ;;  %v2159_v38 = vadd.f32 %v7880_v50, %v2158_v53  ;;  %5357 = vrot.lane.b32.xlu1 %v5341_v24, %s6025_s29  ;;  %v5466_v24 = vpack.i.bf16 %v2371_v10, %v2370_v17  ;;  %v2315_v23 = vld [vmem:[#allocation2 + $0xc9] sm:$0xff]  ;;  %v2340_v44 = vld [vmem:[#allocation2 + $0x7a] sm:$0xff]  ;;  %v8110_v17 = vpop.permute.xlu1 %5287 }
 0x277   : > { %5382 = vrot.lane.b32.xlu0 %v7943_v9, %s6025_s29  ;;  %v4572_v46 = vpop.f32.mrf.mxu0  ;;  %v2314_v53 = vld [vmem:[#allocation2 + $0xc1] sm:$0xff] }
 0x278   : > { %2257 = vst.msk [vmem:[#allocation2 + $0x129] sm:$0xff] %vm226_vm0, %v2225_v0  ;;  %v2223_v5 = vmax.f32 %v2159_v38, 0.0  ;;  %v2180_v57 = vadd.f32 %v4572_v46, %v7880_v50  ;;  %v8026_v11 = vpack.i.bf16 %v2315_v23, %v2314_v53  ;;  %v8028_v0 = vpack.i.bf16 %v2341_v60, %v2340_v44  ;;  %v2346_v38 = vld [vmem:[#allocation2 + $0xc2] sm:$0xff] }
 0x279   : > { %v2171_v54 = vpop.f32.mrf.mxu0  ;;  %v8030_v46 = vld [vmem:[#allocation2 + $0xc8] sm:$0xff] }
 0x27a   : > { %2255 = vst.msk [vmem:[#allocation2 + $0x111] sm:$0xff] %vm226_vm0, %v2223_v5  ;;  %v2228_v18 = vmax.f32 %v2180_v57, 0.0  ;;  %v2172_v47 = vadd.f32 %v7880_v50, %v2171_v54  ;;  %5372 = vrot.lane.b32.xlu1 %v5371_v52, %s6023_s27  ;;  %v8042_v5 = vpack.i.bf16 %v8030_v46, %v8036_v35  ;;  %v2375_v57 = vld [vmem:[#allocation2 + $0xb0] sm:$0xff] }
 0x27b   : > { %5407 = vrot.lane.b32.xlu0 %v5406_v2, %s6023_s27  ;;  %v4573_v4 = vpop.f32.mrf.mxu0  ;;  %v2407_v54 = vld [vmem:[#allocation2 + $0xb1] sm:$0xff]  ;;  %v2322_v31 = vld [vmem:[#allocation2 + $0x121] sm:$0xff] }
 0x27c   : > { %2260 = vst.msk [vmem:[#allocation2 + $0x151] sm:$0xff] %vm226_vm0, %v2228_v18  ;;  %v2226_v34 = vmax.f32 %v2172_v47, 0.0  ;;  %v2183_v56 = vadd.f32 %v4573_v4, %v7880_v50  ;;  %v8054_v18 = vpack.i.bf16 %v2407_v54, %v2406_v49  ;;  %v2319_v47 = vld [vmem:[#allocation2 + $0xf9] sm:$0xff]  ;;  %v2344_v4 = vld [vmem:[#allocation2 + $0xaa] sm:$0xff] }
 0x27d   : > { %v2174_v1 = vpop.f32.mrf.mxu0  ;;  %v5521_v30 = vpack.i.bf16 %v2319_v47, %v2318_v61  ;;  %v8101_v29 = vld [vmem:[#allocation2 + $0x120] sm:$0xff]  ;;  %v2382_v51 = vld [vmem:[#allocation2 + $0x108] sm:$0xff] }
 0x27e   : > { %2258 = vst.msk [vmem:[#allocation2 + $0x139] sm:$0xff] %vm226_vm0, %v2226_v34  ;;  %v2229_v8 = vmax.f32 %v2183_v56, 0.0  ;;  %v2175_v55 = vadd.f32 %v7880_v50, %v2174_v1  ;;  %5377 = vrot.lane.b32.xlu1 %v7934_v13, %s6024_s28  ;;  %v8060_v34 = vpack.i.bf16 %v2345_v45, %v2344_v4  ;;  %v2350_v56 = vld [vmem:[#allocation2 + $0xf2] sm:$0xff]  ;;  %v2414_v44 = vld [vmem:[#allocation2 + $0x109] sm:$0xff] }
 0x27f   : > { %5412 = vrot.lane.b32.xlu0 %v5411_v36, %s6024_s28  ;;  %v4576_v58 = vpop.f32.mrf.mxu0  ;;  %v8062_v1 = vld [vmem:[#allocation2 + $0xf8] sm:$0xff]  ;;  %v8096_v32 = vld [vmem:[#allocation2 + $0x128] sm:$0xff] }
 0x280   : > { %2261 = vst.msk [vmem:[#allocation2 + $0x159] sm:$0xff] %vm226_vm0, %v2229_v8  ;;  %v2227_v37 = vmax.f32 %v2175_v55, 0.0  ;;  %v2196_v40 = vadd.f32 %v4576_v58, %v7880_v50  ;;  %v8067_v8 = vld [vmem:[#allocation2 + $0xf0] sm:$0xff] }
 0x281   : > { %v2187_v21 = vpop.f32.mrf.mxu0  ;;  %v8073_v58 = vpack.i.bf16 %v8062_v1, %v8067_v8  ;;  %v2383_v10 = vld [vmem:[#allocation2 + $0x110] sm:$0xff] }
 0x282   : > { %2259 = vst.msk [vmem:[#allocation2 + $0x141] sm:$0xff] %vm226_vm0, %v2227_v37  ;;  %v2232_v39 = vmax.f32 %v2196_v40, 0.0  ;;  %v2188_v28 = vadd.f32 %v7880_v50, %v2187_v21  ;;  %5387 = vrot.lane.b32.xlu1 %v5371_v52, %s6026_s30  ;;  %v8038_v52 = vpack.i.bf16 %v2347_v3, %v2346_v38  ;;  %v2379_v37 = vld [vmem:[#allocation2 + $0xe0] sm:$0xff]  ;;  %v2378_v40 = vld [vmem:[#allocation2 + $0xd8] sm:$0xff]  ;;  %v8114_v27 = vpack.i.bf16 %v2383_v10, %v2382_v51 }
 0x283   : > { %5417 = vrot.lane.b32.xlu0 %v5406_v2, %s6026_s30  ;;  %v4577_v22 = vpop.f32.mrf.mxu0  ;;  %v2374_v2 = vld [vmem:[#allocation2 + $0xa8] sm:$0xff]  ;;  %v8079_v63 = vpack.i.bf16 %v2379_v37, %v2378_v40  ;;  %v2415_v23 = vld [vmem:[#allocation2 + $0x111] sm:$0xff] }
 0x284   : > { %2264 = vst.msk [vmem:[#allocation2 + $0x181] sm:$0xff] %vm226_vm0, %v2232_v39  ;;  %v2230_v12 = vmax.f32 %v2188_v28, 0.0  ;;  %v2199_v20 = vadd.f32 %v4577_v22, %v7880_v50  ;;  %v8048_v43 = vpack.i.bf16 %v2375_v57, %v2374_v2  ;;  %v2411_v21 = vld [vmem:[#allocation2 + $0xe1] sm:$0xff]  ;;  %v8084_v39 = vpop.permute.xlu0 %5277  ;;  %v2410_v28 = vld [vmem:[#allocation2 + $0xd9] sm:$0xff]  ;;  %v8123_v38 = vpack.i.bf16 %v2415_v23, %v2414_v44  ;;  %v2352_v57 = vld [vmem:[#allocation2 + $0x10a] sm:$0xff] }
 0x285   : > { %v2190_v62 = vpop.f32.mrf.mxu0  ;;  %v8086_v22 = vpack.i.bf16 %v2411_v21, %v2410_v28  ;;  %v2353_v2 = vld [vmem:[#allocation2 + $0x112] sm:$0xff] }
 0x286   : > { %2262 = vst.msk [vmem:[#allocation2 + $0x169] sm:$0xff] %vm226_vm0, %v2230_v12  ;;  %v2233_v14 = vmax.f32 %v2199_v20, 0.0  ;;  %v2191_v59 = vadd.f32 %v7880_v50, %v2190_v62  ;;  %5392 = vrot.lane.b32.xlu1 %v7934_v13, %s6027_s6  ;;  %v2342_v50 = vld [vmem:[#allocation2 + $0x92] sm:$0xff]  ;;  %v2323_v12 = vld [vmem:[#allocation2 + $0x129] sm:$0xff]  ;;  %v2348_v20 = vld [vmem:[#allocation2 + $0xda] sm:$0xff]  ;;  %v8133_v45 = vpack.i.bf16 %v2353_v2, %v2352_v57 }
 0x287   : > { %5422 = vrot.lane.b32.xlu0 %v5411_v36, %s6027_s6  ;;  %v8001_v13 = vpack.i.bf16 %v2343_v42, %v2342_v50  ;;  %v2349_v62 = vld [vmem:[#allocation2 + $0xe2] sm:$0xff]  ;;  %v5561_v25 = vpack.i.bf16 %v2323_v12, %v2322_v31  ;;  %v5571_v42 = vpack.i.bf16 %v8096_v32, %v8101_v29  ;;  %v2327_v3 = vld [vmem:[#allocation2 + $0x159] sm:$0xff]  ;;  %v2326_v54 = vld [vmem:[#allocation2 + $0x151] sm:$0xff] }
 0x288   : > { %2265 = vst.msk [vmem:[#allocation2 + $0x189] sm:$0xff] %vm226_vm0, %v2233_v14  ;;  %v2231_v19 = vmax.f32 %v2191_v59, 0.0  ;;  %v8092_v14 = vpack.i.bf16 %v2349_v62, %v2348_v20  ;;  %v8094_v59 = vpop.permute.xlu0 %5282  ;;  %v5601_v4 = vpack.i.bf16 %v2327_v3, %v2326_v54  ;;  %v2358_v61 = vld [vmem:[#allocation2 + $0x152] sm:$0xff] }
 0x289   : > { %v2387_v12 = vld [vmem:[#allocation2 + $0x140] sm:$0xff]  ;;  %v2386_v20 = vld [vmem:[#allocation2 + $0x138] sm:$0xff] }
 0x28a   : > { %2263 = vst.msk [vmem:[#allocation2 + $0x171] sm:$0xff] %vm226_vm0, %v2231_v19  ;;  %5397 = vrot.lane.b32.xlu1 %v5411_v36, %s6021_s25  ;;  %v2351_v36 = vld [vmem:[#allocation2 + $0xfa] sm:$0xff]  ;;  %v2354_v19 = vld [vmem:[#allocation2 + $0x122] sm:$0xff] }
 0x28b   : > { %5427 = vrot.lane.b32.xlu0 %v5426_v15, %s6028_s13  ;;  %v8069_v55 = vpack.i.bf16 %v2351_v36, %v2350_v56  ;;  %v2389_v56 = vld [vmem:[#allocation2 + $0x158] sm:$0xff]  ;;  %v2388_v36 = vld [vmem:[#allocation2 + $0x150] sm:$0xff]  ;;  %v2357_v3 = vld [vmem:[#allocation2 + $0x142] sm:$0xff] }
 0x28c   : > { %v5611_v28 = vpack.i.bf16 %v2389_v56, %v2388_v36  ;;  %v2356_v44 = vld [vmem:[#allocation2 + $0x13a] sm:$0xff]  ;;  %v5279_v56 = vunpack.i.l.bf16 %v8084_v39 }
 0x28d   : > { %v2390_v57 = vld [vmem:[#allocation2 + $0x168] sm:$0xff] }
 0x28e   : > { %5402 = vrot.lane.b32.xlu1 %v5426_v15, %s6022_s26 }
 0x28f   : > { %5437 = vrot.lane.b32.xlu0 %v7996_v41, %s6021_s25 }
 0x291   : > { %v2391_v23 = vld [vmem:[#allocation2 + $0x170] sm:$0xff] }
 0x292   : > { %5432 = vrot.lane.b32.xlu1 %v5426_v15, %s6025_s29  ;;  %v2355_v15 = vld [vmem:[#allocation2 + $0x12a] sm:$0xff] }
 0x293   : > { %5442 = vrot.lane.b32.xlu0 %v8001_v13, %s6022_s26  ;;  %v8103_v50 = vpack.i.bf16 %v2355_v15, %v2354_v19  ;;  %v2419_v19 = vld [vmem:[#allocation2 + $0x141] sm:$0xff]  ;;  %v2418_v15 = vld [vmem:[#allocation2 + $0x139] sm:$0xff]  ;;  %v2423_v36 = vld [vmem:[#allocation2 + $0x171] sm:$0xff] }
 0x294   : > { %v8153_v51 = vpack.i.bf16 %v2419_v19, %v2418_v15  ;;  %v2392_v19 = vld [vmem:[#allocation2 + $0x180] sm:$0xff]  ;;  %v5285_v15 = vunpack.i.h.bf16 %v8094_v59 }
 0x296   : > { %5447 = vrot.lane.b32.xlu1 %v8012_v26, %s6023_s27  ;;  %9407 = vst [vmem:[#allocation43_spill] sm:$0xff] %v8153_v51 }
 0x297   : > { %5467 = vrot.lane.b32.xlu0 %v5466_v24, %s6023_s27 }
 0x29a   : > { %5452 = vrot.lane.b32.xlu1 %v7996_v41, %s6024_s28 }
 0x29b   : > { %5472 = vrot.lane.b32.xlu0 %v8017_v7, %s6024_s28 }
 0x29e   : > { %5457 = vrot.lane.b32.xlu1 %v8017_v7, %s6021_s25 }
 0x29f   : > { %5477 = vrot.lane.b32.xlu0 %v5466_v24, %s6026_s30  ;;  %v8112_v24 = vpop.permute.xlu0 %5292 }
 0x2a2   : > { %5462 = vrot.lane.b32.xlu1 %v8028_v0, %s6022_s26 }
 0x2a3   : > { %5482 = vrot.lane.b32.xlu0 %v8026_v11, %s6021_s25 }
 0x2a6   : > { %5492 = vrot.lane.b32.xlu1 %v8042_v5, %s6023_s27 }
 0x2a7   : > { %5487 = vrot.lane.b32.xlu0 %v8038_v52, %s6022_s26 }
 0x2aa   : > { %5497 = vrot.lane.b32.xlu1 %v8026_v11, %s6024_s28 }
 0x2ab   : > { %5512 = vrot.lane.b32.xlu0 %v8048_v43, %s6023_s27 }
 0x2ae   : > { %5502 = vrot.lane.b32.xlu1 %v8054_v18, %s6021_s25 }
 0x2af   : > { %5517 = vrot.lane.b32.xlu0 %v8054_v18, %s6024_s28 }
 0x2b2   : > { %5507 = vrot.lane.b32.xlu1 %v8060_v34, %s6022_s26 }
 0x2b3   : > { %5522 = vrot.lane.b32.xlu0 %v5521_v30, %s6021_s25 }
 0x2b6   : > { %5532 = vrot.lane.b32.xlu1 %v8073_v58, %s6023_s27 }
 0x2b7   : > { %5527 = vrot.lane.b32.xlu0 %v8069_v55, %s6022_s26 }
 0x2ba   : > { %5537 = vrot.lane.b32.xlu1 %v5521_v30, %s6024_s28  ;;  %v2359_v30 = vld [vmem:[#allocation2 + $0x15a] sm:$0xff] }
 0x2bb   : > { %5552 = vrot.lane.b32.xlu0 %v8079_v63, %s6023_s27  ;;  %v5606_v21 = vpack.i.bf16 %v2359_v30, %v2358_v61  ;;  %v8165_v61 = vpack.i.bf16 %v2357_v3, %v2356_v44  ;;  %v5280_v30 = vunpack.i.h.bf16 %v8084_v39 }
 0x2bd   : > { %9410 = vst [vmem:[#allocation46_spill] sm:$0xff] %v8165_v61 }
 0x2be   : > { %5542 = vrot.lane.b32.xlu1 %v8086_v22, %s6021_s25 }
 0x2bf   : > { %5557 = vrot.lane.b32.xlu0 %v8086_v22, %s6024_s28 }
 0x2c2   : > { %5547 = vrot.lane.b32.xlu1 %v8092_v14, %s6022_s26 }
 0x2c3   : > { %5562 = vrot.lane.b32.xlu0 %v5561_v25, %s6021_s25 }
 0x2c6   : > { %5572 = vrot.lane.b32.xlu1 %v5571_v42, %s6023_s27 }
 0x2c7   : > { %5567 = vrot.lane.b32.xlu0 %v8103_v50, %s6022_s26 }
 0x2ca   : > { %5577 = vrot.lane.b32.xlu1 %v5561_v25, %s6024_s28  ;;  %v8146_v25 = vpack.i.bf16 %v2387_v12, %v2386_v20  ;;  %v2267_v12 = vld [vmem:[#allocation2 + $0x8] sm:$0xff] }
 0x2cb   : > { %5592 = vrot.lane.b32.xlu0 %v8114_v27, %s6023_s27  ;;  %v2422_v20 = vld [vmem:[#allocation2 + $0x169] sm:$0xff] }
 0x2cc   : > { %v8119_v60 = vpop.permute.xlu1 %5307  ;;  %v8179_v39 = vpack.i.bf16 %v2423_v36, %v2422_v20  ;;  %v2360_v20 = vld [vmem:[#allocation2 + $0x16a] sm:$0xff] }
 0x2cd   : > { %v8121_v53 = vpop.permute.xlu0 %5297 }
 0x2ce   : > { %9405 = vst [vmem:[#allocation41_spill] sm:$0xff] %v8121_v53  ;;  %5582 = vrot.lane.b32.xlu1 %v8123_v38, %s6021_s25 }
 0x2cf   : > { %5597 = vrot.lane.b32.xlu0 %v8123_v38, %s6024_s28 }
 0x2d0   : > { %v8129_v49 = vpop.permute.xlu1 %5312 }
 0x2d1   : > { %v8131_v47 = vpop.permute.xlu0 %5302 }
 0x2d2   : > { %9406 = vst [vmem:[#allocation42_spill] sm:$0xff] %v8131_v47  ;;  %5587 = vrot.lane.b32.xlu1 %v8133_v45, %s6022_s26 }
 0x2d3   : > { %5602 = vrot.lane.b32.xlu0 %v5601_v4, %s6021_s25 }
 0x2d4   : > { %v8138_v37 = vpop.permute.xlu1 %5322 }
 0x2d5   : > { %v8140_v40 = vpop.permute.xlu0 %5317 }
 0x2d6   : > { %5612 = vrot.lane.b32.xlu1 %v5611_v28, %s6023_s27  ;;  %v2266_v28 = vld [vmem:[#allocation2] sm:$0xff] }
 0x2d7   : > { %5607 = vrot.lane.b32.xlu0 %v5606_v21, %s6022_s26  ;;  %v2393_v21 = vld [vmem:[#allocation2 + $0x188] sm:$0xff] }
 0x2d8   : > { %v8144_v62 = vpop.permute.xlu1 %5327 }
 0x2d9   : > { %v5348_v31 = vpop.permute.xlu0 %5347 }
 0x2da   : > { %5617 = vrot.lane.b32.xlu1 %v5601_v4, %s6024_s28  ;;  %v8163_v4 = vpack.i.bf16 %v2391_v23, %v2390_v57  ;;  %v5284_v23 = vunpack.i.l.bf16 %v8094_v59  ;;  %v5641_v57 = vpack.i.bf16 %v2393_v21, %v2392_v19  ;;  %v5350_v47 = vunpack.i.h.bf16 %v5348_v31 }
 0x2db   : > { %5632 = vrot.lane.b32.xlu0 %v8146_v25, %s6023_s27  ;;  %v5349_v53 = vunpack.i.l.bf16 %v5348_v31  ;;  %v5324_v19 = vunpack.i.l.bf16 %v8138_v37 }
 0x2dc   : > { %v8151_v42 = vpop.permute.xlu1 %5332  ;;  %9409 = vst [vmem:[#allocation45_spill] sm:$0xff] %v8163_v4 }
 0x2dd   : > { %v5353_v10 = vpop.permute.xlu0 %5352 }
 0x2de   : > { %5622 = vrot.lane.b32.xlu1 %v8153_v51, %s6021_s25 }
 0x2df   : > { %5637 = vrot.lane.b32.xlu0 %v8153_v51, %s6024_s28  ;;  %v5354_v51 = vunpack.i.l.bf16 %v5353_v10 }
 0x2e0   : > { %v8161_v54 = vpop.permute.xlu1 %5337 }
 0x2e1   : > { %v8159_v2 = vpop.permute.xlu0 %5362 }
 0x2e2   : > { %9408 = vst [vmem:[#allocation44_spill] sm:$0xff] %v8159_v2  ;;  %5627 = vrot.lane.b32.xlu1 %v8165_v61, %s6022_s26  ;;  %v3579_v2 = vsel %vm226_vm0, %v2267_v12, %v5280_v30  ;;  %v5355_v61 = vunpack.i.h.bf16 %v5353_v10  ;;  %v2361_v30 = vld [vmem:[#allocation2 + $0x172] sm:$0xff]  ;;  %v5325_v12 = vunpack.i.h.bf16 %v8138_v37  ;;  %v5330_v37 = vunpack.i.h.bf16 %v8144_v62 }
 0x2e3   : > { %5657 = vrot.lane.b32.xlu0 %v8163_v4, %s6023_s27  ;;  %v3578_v4 = vsel %vm226_vm0, %v2266_v28, %v5279_v56 }
 0x2e4   : > { %v8177_v3 = vpop.permute.xlu1 %5342  ;;  %v3610_v59 = vsel %vm1714_vm4, %v3578_v4, %v5284_v23 }
 0x2e5   : > { %v8175_v44 = vpop.permute.xlu0 %5367  ;;  %v3642_v31 = vsel %vm1747_vm5, %v3610_v59, %v5349_v53  ;;  %v5289_v59 = vunpack.i.l.bf16 %v8110_v17 }
 0x2e6   : > { %9411 = vst [vmem:[#allocation47_spill] sm:$0xff] %v8175_v44  ;;  %5642 = vrot.lane.b32.xlu1 %v5641_v57, %s6023_s27  ;;  %v3611_v44 = vsel %vm1714_vm4, %v3579_v2, %v5285_v15  ;;  %v3674_v57 = vsel %vm1780_vm6, %v3642_v31, %v5354_v51  ;;  %v8203_v15 = vpack.i.bf16 %v2361_v30, %v2360_v20  ;;  %v5329_v51 = vunpack.i.l.bf16 %v8144_v62  ;;  %v9412_v20 = vld [vmem:[#allocation6_spill] sm:$0xff]  ;;  %s4422_s27 = sshll.u32 %s9483_s19, 8 }
 0x2e7   : > { %5662 = vrot.lane.b32.xlu0 %v8179_v39, %s6024_s28  ;;  %v3643_v56 = vsel %vm1747_vm5, %v3611_v44, %v5350_v47  ;;  %v5290_v47 = vunpack.i.h.bf16 %v8110_v17  ;;  %v9413_v30 = vunpack.c.l.bf16 %v9412_v20  ;;  %v9414_v31 = vunpack.c.h.bf16 %v9412_v20 }
 0x2e8   : > { %v5358_v21 = vpop.permute.xlu1 %5357  ;;  %v3675_v4 = vsel %vm1780_vm6, %v3643_v56, %v5355_v61  ;;  %v5334_v56 = vunpack.i.l.bf16 %v8151_v42  ;;  %v5340_v62 = vunpack.i.h.bf16 %v8161_v54 }
 0x2e9   : > { %v8188_v36 = vpop.permute.xlu0 %5382  ;;  %v5360_v28 = vunpack.i.h.bf16 %v5358_v21  ;;  %v5359_v10 = vunpack.i.l.bf16 %v5358_v21  ;;  %v5335_v21 = vunpack.i.h.bf16 %v8151_v42  ;;  %v5345_v42 = vunpack.i.h.bf16 %v8177_v3 }
 0x2ea   : > { %5647 = vrot.lane.b32.xlu1 %v8179_v39, %s6021_s25 }
 0x2eb   : > { %5667 = vrot.lane.b32.xlu0 %v8017_v7, %s6027_s6  ;;  %v3707_v53 = vsel %vm1813_vm7, %v3675_v4, %v5360_v28  ;;  %v3706_v2 = vsel %vm1813_vm7, %v3674_v57, %v5359_v10  ;;  %v5686_v28 = vpack.i.bf16 %v9414_v31, %v9413_v30  ;;  %v5339_v10 = vunpack.i.l.bf16 %v8161_v54 }
 0x2ec   : > { %v8209_v61 = vpop.permute.xlu1 %5372  ;;  %v3738_v7 = vsel %vm1846_vm8, %v3706_v2, %v5324_v19  ;;  %v3739_v44 = vsel %vm1846_vm8, %v3707_v53, %v5325_v12  ;;  %v5344_v19 = vunpack.i.l.bf16 %v8177_v3  ;;  %v5310_v30 = vunpack.i.h.bf16 %v8119_v60 }
 0x2ed   : > { %v8207_v23 = vpop.permute.xlu0 %5407  ;;  %v3770_v17 = vsel %vm1879_vm9, %v3738_v7, %v5329_v51  ;;  %v3771_v12 = vsel %vm1879_vm9, %v3739_v44, %v5330_v37  ;;  %v9415_v51 = vld [vmem:[#allocation5_spill] sm:$0xff]  ;;  %v3580_v3 = vsel %vm226_vm0, %v7916_v16, %v5339_v10  ;;  %v5309_v31 = vunpack.i.l.bf16 %v8119_v60 }
 0x2ee   : > { %5652 = vrot.lane.b32.xlu1 %v8203_v15, %s6022_s26  ;;  %v3802_v57 = vsel %vm1912_vm10, %v3770_v17, %v5334_v56  ;;  %v3803_v4 = vsel %vm1912_vm10, %v3771_v12, %v5335_v21  ;;  %v9416_v7 = vunpack.c.l.bf16 %v9415_v51  ;;  %v9417_v37 = vunpack.c.h.bf16 %v9415_v51 }
 0x2ef   : > { %5677 = vrot.lane.b32.xlu0 %v8028_v0, %s6028_s13  ;;  %v3962_v2 = vsel %vm1988_vm11, %v3802_v57, %v5289_v59  ;;  %v3963_v20 = vsel %vm1988_vm11, %v3803_v4, %v5290_v47  ;;  %v3581_v21 = vsel %vm226_vm0, %v7910_v6, %v5340_v62  ;;  %v3612_v47 = vsel %vm1714_vm4, %v3580_v3, %v5344_v19 }
 0x2f0   : > { %v8234_v54 = vpop.permute.xlu1 %5377  ;;  %v5681_v44 = vpack.i.bf16 %v9417_v37, %v9416_v7  ;;  %v3994_v59 = vpack.c.bf16 %v3963_v20, %v3962_v2  ;;  %v3613_v56 = vsel %vm1714_vm4, %v3581_v21, %v5345_v42  ;;  %v3644_v6 = vsel %vm1747_vm5, %v3612_v47, %v5309_v31 }
 0x2f1   : > { %v8232_v53 = vpop.permute.xlu0 %5412  ;;  %v5314_v62 = vunpack.i.l.bf16 %v8129_v49  ;;  %v5320_v4 = vunpack.i.h.bf16 %v8140_v40  ;;  %v5319_v2 = vunpack.i.l.bf16 %v8140_v40  ;;  %v5295_v47 = vunpack.i.h.bf16 %v8112_v24 }
 0x2f2   : > { %5672 = vrot.lane.b32.xlu1 %v7943_v9, %s6028_s13  ;;  %4584 = vmatprep.mubr.msk.bf16.mxu1 %vm4037_vm13, %v3994_v59  ;;  %v5315_v9 = vunpack.i.h.bf16 %v8129_v49 }
 0x2f3   : > { %5687 = vrot.lane.b32.xlu0 %v5686_v28, %s6029_s14  ;;  %v3645_v28 = vsel %vm1747_vm5, %v3613_v56, %v5310_v30  ;;  %v3676_v19 = vsel %vm1780_vm6, %v3644_v6, %v5314_v62 }
 0x2f4   : > { %v8254_v10 = vpop.permute.xlu1 %5387  ;;  %v3677_v57 = vsel %vm1780_vm6, %v3645_v28, %v5315_v9  ;;  %v3708_v49 = vsel %vm1813_vm7, %v3676_v19, %v5319_v2  ;;  %v9418_v9 = vld [vmem:[#allocation8_spill] sm:$0xff]  ;;  %v9421_v19 = vld [vmem:[#allocation7_spill] sm:$0xff] }
 0x2f5   : > { %v5418_v16 = vpop.permute.xlu0 %5417  ;;  %v3709_v7 = vsel %vm1813_vm7, %v3677_v57, %v5320_v4  ;;  %v9420_v62 = vunpack.c.h.bf16 %v9418_v9  ;;  %v9422_v57 = vunpack.c.l.bf16 %v9421_v19 }
 0x2f6   : > { %5682 = vrot.lane.b32.xlu1 %v5681_v44, %s6029_s14  ;;  %v5420_v12 = vunpack.i.h.bf16 %v5418_v16  ;;  %v5419_v42 = vunpack.i.l.bf16 %v5418_v16 }
 0x2f7   : > { %5697 = vrot.lane.b32.xlu0 %v8001_v13, %s6025_s29 }
 0x2f8   : > { %v8263_v60 = vpop.permute.xlu1 %5392  ;;  %v3740_v3 = vsel %vm1846_vm8, %v3708_v49, %v5419_v42  ;;  %v3741_v21 = vsel %vm1846_vm8, %v3709_v7, %v5420_v12 }
 0x2f9   : > { %v5423_v17 = vpop.permute.xlu0 %5422 }
 0x2fa   : > { %v5425_v20 = vunpack.i.h.bf16 %v5423_v17  ;;  %v5424_v51 = vunpack.i.l.bf16 %v5423_v17  ;;  %5692 = vrot.lane.b32.xlu1 %v8028_v0, %s6025_s29 }
 0x2fb   : > { %5707 = vrot.lane.b32.xlu0 %v8048_v43, %s6026_s30  ;;  %v5294_v43 = vunpack.i.l.bf16 %v8112_v24 }
 0x2fc   : > { %v8275_v44 = vpop.permute.xlu1 %5397  ;;  %v3772_v56 = vsel %vm1879_vm9, %v3740_v3, %v5424_v51  ;;  %v3773_v0 = vsel %vm1879_vm9, %v3741_v21, %v5425_v20 }
 0x2fd   : > { %v5428_v37 = vpop.permute.xlu0 %5427 }
 0x2fe   : > { %v5430_v40 = vunpack.i.h.bf16 %v5428_v37  ;;  %v5429_v59 = vunpack.i.l.bf16 %v5428_v37  ;;  %5702 = vrot.lane.b32.xlu1 %v8012_v26, %s6026_s30  ;;  %v9419_v26 = vunpack.c.l.bf16 %v9418_v9 }
 0x2ff   : > { %5717 = vrot.lane.b32.xlu0 %v8054_v18, %s6027_s6 }
 0x300   : > { %v3804_v30 = vsel %vm1912_vm10, %v3772_v56, %v5429_v59  ;;  %v3805_v31 = vsel %vm1912_vm10, %v3773_v0, %v5430_v40  ;;  %v8289_v6 = vpop.permute.xlu1 %5402  ;;  %v5736_v17 = vpack.i.bf16 %v9420_v62, %v9419_v26 }
 0x301   : > { %v5438_v16 = vpop.permute.xlu0 %5437  ;;  %v3964_v28 = vsel %vm1988_vm11, %v3804_v30, %v5294_v43  ;;  %v3965_v24 = vsel %vm1988_vm11, %v3805_v31, %v5295_v47 }
 0x302   : > { %5712 = vrot.lane.b32.xlu1 %v7996_v41, %s6027_s6  ;;  %v3995_v18 = vpack.c.bf16 %v3965_v24, %v3964_v28  ;;  %v9423_v41 = vunpack.c.h.bf16 %v9421_v19  ;;  %v5439_v0 = vunpack.i.l.bf16 %v5438_v16 }
 0x303   : > { %5727 = vrot.lane.b32.xlu0 %v8060_v34, %s6028_s13 }
 0x304   : > { %4585 = vmatmul.mubr.msk.bf16.vlgmr.msra.gmra.mxu1 %vm4037_vm13, %v3995_v18  ;;  %v8302_v42 = vpop.permute.xlu1 %5432  ;;  %v5731_v4 = vpack.i.bf16 %v9423_v41, %v9422_v57  ;;  %v3590_v26 = vsel %vm226_vm0, %v8008_v48, %v5439_v0  ;;  %v2539_v0 = vld [vmem:[#allocation2 + $0xfa] sm:$0xff] }
 0x305   : > { %v5443_v12 = vpop.permute.xlu0 %5442 }
 0x306   : > { %5722 = vrot.lane.b32.xlu1 %v8001_v13, %s6028_s13  ;;  %v5445_v28 = vunpack.i.h.bf16 %v5443_v12  ;;  %v5444_v24 = vunpack.i.l.bf16 %v5443_v12 }
 0x307   : > { %5737 = vrot.lane.b32.xlu0 %v5736_v17, %s6029_s14 }
 0x308   : > { %v8313_v20 = vpop.permute.xlu1 %5447  ;;  %v3622_v17 = vsel %vm1714_vm4, %v3590_v26, %v5444_v24 }
 0x309   : > { %v8311_v2 = vpop.permute.xlu0 %5467 }
 0x30a   : > { %5732 = vrot.lane.b32.xlu1 %v5731_v4, %s6029_s14 }
 0x30b   : > { %5747 = vrot.lane.b32.xlu0 %v8038_v52, %s6025_s29 }
 0x30c   : > { %v8320_v49 = vpop.permute.xlu1 %5452 }
 0x30d   : > { %v8318_v51 = vpop.permute.xlu0 %5472 }
 0x30e   : > { %5742 = vrot.lane.b32.xlu1 %v8060_v34, %s6025_s29  ;;  %v9424_v34 = vld [vmem:[#allocation10_spill] sm:$0xff] }
 0x30f   : > { %5757 = vrot.lane.b32.xlu0 %v8079_v63, %s6026_s30  ;;  %v9425_v63 = vunpack.c.l.bf16 %v9424_v34  ;;  %v9426_v21 = vunpack.c.h.bf16 %v9424_v34 }
 0x310   : > { %v8328_v7 = vpop.permute.xlu1 %5457 }
 0x311   : > { %v8326_v13 = vpop.permute.xlu0 %5477  ;;  %v5786_v40 = vpack.i.bf16 %v9426_v21, %v9425_v63  ;;  %v2507_v63 = vld [vmem:[#allocation2 + $0xf9] sm:$0xff] }
 0x312   : > { %5752 = vrot.lane.b32.xlu1 %v8042_v5, %s6026_s30  ;;  %v9427_v5 = vld [vmem:[#allocation9_spill] sm:$0xff] }
 0x313   : > { %5767 = vrot.lane.b32.xlu0 %v8086_v22, %s6027_s6  ;;  %v9428_v47 = vunpack.c.l.bf16 %v9427_v5  ;;  %v9429_v43 = vunpack.c.h.bf16 %v9427_v5 }
 0x314   : > { %v8336_v3 = vpop.permute.xlu1 %5462 }
 0x315   : > { %v8334_v37 = vpop.permute.xlu0 %5482  ;;  %v5781_v56 = vpack.i.bf16 %v9429_v43, %v9428_v47 }
 0x316   : > { %5762 = vrot.lane.b32.xlu1 %v8026_v11, %s6027_s6  ;;  %v5440_v11 = vunpack.i.h.bf16 %v5438_v16 }
 0x317   : > { %5777 = vrot.lane.b32.xlu0 %v8092_v14, %s6028_s13 }
 0x318   : > { %v8348_v22 = vpop.permute.xlu1 %5492 }
 0x319   : > { %v8346_v59 = vpop.permute.xlu0 %5487 }
 0x31a   : > { %5772 = vrot.lane.b32.xlu1 %v8038_v52, %s6028_s13  ;;  %v3591_v52 = vsel %vm226_vm0, %v8003_v33, %v5440_v11  ;;  %v2538_v11 = vld [vmem:[#allocation2 + $0xf2] sm:$0xff] }
 0x31b   : > { %5787 = vrot.lane.b32.xlu0 %v5786_v40, %s6029_s14  ;;  %v3623_v12 = vsel %vm1714_vm4, %v3591_v52, %v5445_v28 }
 0x31c   : > { %v8357_v31 = vpop.permute.xlu1 %5497 }
 0x31d   : > { %v5513_v30 = vpop.permute.xlu0 %5512 }
 0x31e   : > { %v5515_v18 = vunpack.i.h.bf16 %v5513_v30  ;;  %v5514_v9 = vunpack.i.l.bf16 %v5513_v30  ;;  %5782 = vrot.lane.b32.xlu1 %v5781_v56, %s6029_s14 }
 0x31f   : > { %5797 = vrot.lane.b32.xlu0 %v8069_v55, %s6025_s29 }
 0x320   : > { %v8366_v16 = vpop.permute.xlu1 %5502  ;;  %v3654_v41 = vsel %vm1747_vm5, %v3622_v17, %v5514_v9  ;;  %v3655_v55 = vsel %vm1747_vm5, %v3623_v12, %v5515_v18  ;;  %v5821_v17 = vpack.i.bf16 %v2539_v0, %v2538_v11  ;;  %v5490_v12 = vunpack.i.h.bf16 %v8346_v59 }
 0x321   : > { %v5518_v62 = vpop.permute.xlu0 %5517 }
 0x322   : > { %v5520_v19 = vunpack.i.h.bf16 %v5518_v62  ;;  %v5519_v57 = vunpack.i.l.bf16 %v5518_v62  ;;  %5792 = vrot.lane.b32.xlu1 %v8092_v14, %s6025_s29 }
 0x323   : > { %5807 = vrot.lane.b32.xlu0 %v8114_v27, %s6026_s30  ;;  %v2506_v27 = vld [vmem:[#allocation2 + $0xf1] sm:$0xff] }
 0x324   : > { %v8377_v33 = vsel %vm1780_vm6, %v3654_v41, %v5519_v57  ;;  %v8380_v48 = vsel %vm1780_vm6, %v3655_v55, %v5520_v19  ;;  %v8382_v34 = vpop.permute.xlu1 %5507  ;;  %v5811_v47 = vpack.i.bf16 %v2507_v63, %v2506_v27  ;;  %v5489_v19 = vunpack.i.l.bf16 %v8346_v59  ;;  %v9433_v55 = vld [vmem:[#allocation11_spill] sm:$0xff] }
 0x325   : > { %v5523_v4 = vpop.permute.xlu0 %5522  ;;  %v9435_v63 = vunpack.c.h.bf16 %v9433_v55 }
 0x326   : > { %v5525_v21 = vunpack.i.h.bf16 %v5523_v4  ;;  %v5524_v40 = vunpack.i.l.bf16 %v5523_v4  ;;  %5802 = vrot.lane.b32.xlu1 %v8073_v58, %s6026_s30  ;;  %v9430_v58 = vld [vmem:[#allocation12_spill] sm:$0xff]  ;;  %v9434_v4 = vunpack.c.l.bf16 %v9433_v55  ;;  %v2478_v55 = vld [vmem:[#allocation2 + $0x120] sm:$0xff] }
 0x327   : > { %5817 = vrot.lane.b32.xlu0 %v8123_v38, %s6027_s6  ;;  %v9431_v38 = vunpack.c.l.bf16 %v9430_v58  ;;  %v9432_v24 = vunpack.c.h.bf16 %v9430_v58 }
 0x328   : > { %v8388_v5 = vpop.permute.xlu1 %5532  ;;  %v3599_v30 = vsel %vm226_vm0, %v8062_v1, %v5525_v21  ;;  %v3598_v28 = vsel %vm226_vm0, %v8067_v8, %v5524_v40  ;;  %v5485_v1 = vunpack.i.h.bf16 %v8334_v37  ;;  %v5484_v8 = vunpack.i.l.bf16 %v8334_v37 }
 0x329   : > { %v5528_v14 = vpop.permute.xlu0 %5527  ;;  %v5836_v18 = vpack.i.bf16 %v9432_v24, %v9431_v38  ;;  %v5831_v21 = vpack.i.bf16 %v9435_v63, %v9434_v4  ;;  %v2479_v24 = vld [vmem:[#allocation2 + $0x128] sm:$0xff] }
 0x32a   : > { %v5530_v43 = vunpack.i.h.bf16 %v5528_v14  ;;  %v5529_v56 = vunpack.i.l.bf16 %v5528_v14  ;;  %5812 = vrot.lane.b32.xlu1 %v5811_v47, %s6027_s6  ;;  %v3595_v37 = vsel %vm226_vm0, %v8030_v46, %v5485_v1  ;;  %v3594_v40 = vsel %vm226_vm0, %v8036_v35, %v5484_v8  ;;  %v2284_v1 = vld [vmem:[#allocation2 + $0xd8] sm:$0xff]  ;;  %v2285_v8 = vld [vmem:[#allocation2 + $0xe0] sm:$0xff] }
 0x32b   : > { %5827 = vrot.lane.b32.xlu0 %v8133_v45, %s6028_s13  ;;  %v3626_v59 = vsel %vm1714_vm4, %v3594_v40, %v5489_v19  ;;  %v3627_v47 = vsel %vm1714_vm4, %v3595_v37, %v5490_v12 }
 0x32c   : > { %v8402_v9 = vsel %vm1714_vm4, %v3598_v28, %v5529_v56  ;;  %v8405_v52 = vsel %vm1714_vm4, %v3599_v30, %v5530_v43  ;;  %v5538_v62 = vpop.permute.xlu1 %5537 }
 0x32d   : > { %v5553_v26 = vpop.permute.xlu0 %5552  ;;  %v5540_v37 = vunpack.i.h.bf16 %v5538_v62  ;;  %v5539_v40 = vunpack.i.l.bf16 %v5538_v62 }
 0x32e   : > { %v5555_v57 = vunpack.i.h.bf16 %v5553_v26  ;;  %v5554_v41 = vunpack.i.l.bf16 %v5553_v26  ;;  %5822 = vrot.lane.b32.xlu1 %v5821_v17, %s6028_s13 }
 0x32f   : > { %5837 = vrot.lane.b32.xlu0 %v5836_v18, %s6029_s14  ;;  %v5535_v18 = vunpack.i.h.bf16 %v8388_v5 }
 0x330   : > { %v5543_v14 = vpop.permute.xlu1 %5542  ;;  %v3658_v11 = vsel %vm1747_vm5, %v3626_v59, %v5554_v41  ;;  %v3659_v0 = vsel %vm1747_vm5, %v3627_v47, %v5555_v57 }
 0x331   : > { %v5558_v27 = vpop.permute.xlu0 %5557  ;;  %v5545_v30 = vunpack.i.h.bf16 %v5543_v14  ;;  %v5544_v28 = vunpack.i.l.bf16 %v5543_v14 }
 0x332   : > { %v5560_v43 = vunpack.i.h.bf16 %v5558_v27  ;;  %v5559_v56 = vunpack.i.l.bf16 %v5558_v27  ;;  %5832 = vrot.lane.b32.xlu1 %v5831_v21, %s6029_s14  ;;  %v5851_v21 = vpack.i.bf16 %v2479_v24, %v2478_v55 }
 0x333   : > { %5847 = vrot.lane.b32.xlu0 %v8103_v50, %s6025_s29  ;;  %v5534_v50 = vunpack.i.l.bf16 %v8388_v5  ;;  %v3597_v19 = vsel %vm226_vm0, %v2285_v8, %v5545_v30  ;;  %v3596_v57 = vsel %vm226_vm0, %v2284_v1, %v5544_v28  ;;  %v2510_v28 = vld [vmem:[#allocation2 + $0x121] sm:$0xff]  ;;  %v2543_v8 = vld [vmem:[#allocation2 + $0x12a] sm:$0xff] }
 0x334   : > { %v8429_v46 = vsel %vm1780_vm6, %v3658_v11, %v5559_v56  ;;  %v8432_v35 = vsel %vm1780_vm6, %v3659_v0, %v5560_v43  ;;  %v5548_v38 = vpop.permute.xlu1 %5547  ;;  %v2511_v43 = vld [vmem:[#allocation2 + $0x129] sm:$0xff] }
 0x335   : > { %9436 = vst [vmem:[#allocation48_spill] sm:$0xff] %v8429_v46  ;;  %9437 = vst [vmem:[#allocation49_spill] sm:$0xff] %v8432_v35  ;;  %v5563_v58 = vpop.permute.xlu0 %5562  ;;  %v5550_v17 = vunpack.i.h.bf16 %v5548_v38  ;;  %v5549_v12 = vunpack.i.l.bf16 %v5548_v38  ;;  %v9438_v11 = vld [vmem:[#allocation43_spill] sm:$0xff]  ;;  %v5861_v38 = vpack.i.bf16 %v2511_v43, %v2510_v28  ;;  %v2542_v1 = vld [vmem:[#allocation2 + $0x122] sm:$0xff] }
 0x336   : > { %v5565_v26 = vunpack.i.h.bf16 %v5563_v58  ;;  %v5564_v41 = vunpack.i.l.bf16 %v5563_v58  ;;  %5842 = vrot.lane.b32.xlu1 %v8133_v45, %s6025_s29  ;;  %v2292_v46 = vld [vmem:[#allocation2 + $0x138] sm:$0xff] }
 0x337   : > { %5857 = vrot.lane.b32.xlu0 %v8146_v25, %s6026_s30  ;;  %v3628_v4 = vsel %vm1714_vm4, %v3596_v57, %v5549_v12  ;;  %v3629_v63 = vsel %vm1714_vm4, %v3597_v19, %v5550_v17  ;;  %v9440_v17 = vld [vmem:[#allocation14_spill] sm:$0xff] }
 0x338   : > { %v3660_v5 = vsel %vm1747_vm5, %v3628_v4, %v5534_v50  ;;  %v3661_v27 = vsel %vm1747_vm5, %v3629_v63, %v5535_v18  ;;  %v8446_v59 = vpop.permute.xlu1 %5572  ;;  %v3603_v25 = vsel %vm226_vm0, %v8096_v32, %v5565_v26  ;;  %v3602_v56 = vsel %vm226_vm0, %v8101_v29, %v5564_v41  ;;  %v9439_v26 = vld [vmem:[#allocation46_spill] sm:$0xff] }
 0x339   : > { %v5568_v14 = vpop.permute.xlu0 %5567  ;;  %v8456_v62 = vsel %vm1780_vm6, %v3660_v5, %v5539_v40  ;;  %v8459_v0 = vsel %vm1780_vm6, %v3661_v27, %v5540_v37  ;;  %v9441_v12 = vunpack.c.l.bf16 %v9440_v17  ;;  %v9442_v50 = vunpack.c.h.bf16 %v9440_v17  ;;  %v2452_v40 = vld [vmem:[#allocation2 + $0x152] sm:$0xff]  ;;  %v2453_v5 = vld [vmem:[#allocation2 + $0x15a] sm:$0xff] }
 0x33a   : > { %v5570_v47 = vunpack.i.h.bf16 %v5568_v14  ;;  %v5569_v45 = vunpack.i.l.bf16 %v5568_v14  ;;  %5852 = vrot.lane.b32.xlu1 %v5851_v21, %s6026_s30  ;;  %v5871_v63 = vpack.i.bf16 %v2543_v8, %v2542_v1  ;;  %v8492_v28 = vpack.i.bf16 %v2453_v5, %v2452_v40  ;;  %v2295_v40 = vld [vmem:[#allocation2 + $0x158] sm:$0xff] }
 0x33b   : > { %5867 = vrot.lane.b32.xlu0 %v9438_v11, %s6027_s6  ;;  %v5886_v19 = vpack.i.bf16 %v9442_v50, %v9441_v12  ;;  %v5574_v17 = vunpack.i.l.bf16 %v8446_v59 }
 0x33c   : > { %v8462_v30 = vsel %vm1714_vm4, %v3602_v56, %v5569_v45  ;;  %v8465_v32 = vsel %vm1714_vm4, %v3603_v25, %v5570_v47  ;;  %v8467_v29 = vpop.permute.xlu1 %5577  ;;  %v9443_v25 = vld [vmem:[#allocation13_spill] sm:$0xff] }
 0x33d   : > { %v5593_v58 = vpop.permute.xlu0 %5592  ;;  %v9444_v47 = vunpack.c.l.bf16 %v9443_v25 }
 0x33e   : > { %v5595_v24 = vunpack.i.h.bf16 %v5593_v58  ;;  %v5594_v18 = vunpack.i.l.bf16 %v5593_v58  ;;  %5862 = vrot.lane.b32.xlu1 %v5861_v38, %s6027_s6  ;;  %v5575_v58 = vunpack.i.h.bf16 %v8446_v59  ;;  %v2288_v38 = vld [vmem:[#allocation2 + $0x108] sm:$0xff]  ;;  %v5580_v59 = vunpack.i.h.bf16 %v8467_v29 }
 0x33f   : > { %5877 = vrot.lane.b32.xlu0 %v9439_v26, %s6028_s13 }
 0x340   : > { %v3662_v57 = vsel %vm1747_vm5, %v8402_v9, %v5594_v18  ;;  %v3663_v41 = vsel %vm1747_vm5, %v8405_v52, %v5595_v24  ;;  %v5583_v4 = vpop.permute.xlu1 %5582  ;;  %v9445_v9 = vunpack.c.h.bf16 %v9443_v25  ;;  %v2289_v24 = vld [vmem:[#allocation2 + $0x110] sm:$0xff] }
 0x341   : > { %v5598_v55 = vpop.permute.xlu0 %5597  ;;  %v5585_v27 = vunpack.i.h.bf16 %v5583_v4  ;;  %v5584_v14 = vunpack.i.l.bf16 %v5583_v4  ;;  %v2294_v4 = vld [vmem:[#allocation2 + $0x150] sm:$0xff] }
 0x342   : > { %v5600_v21 = vunpack.i.h.bf16 %v5598_v55  ;;  %v5599_v37 = vunpack.i.l.bf16 %v5598_v55  ;;  %5872 = vrot.lane.b32.xlu1 %v5871_v63, %s6028_s13  ;;  %v5881_v45 = vpack.i.bf16 %v9445_v9, %v9444_v47  ;;  %v2515_v47 = vld [vmem:[#allocation2 + $0x159] sm:$0xff]  ;;  %v8511_v9 = vld [vmem:[#allocation2 + $0x188] sm:$0xff] }
 0x343   : > { %5887 = vrot.lane.b32.xlu0 %v5886_v19, %s6029_s14  ;;  %v3601_v12 = vsel %vm226_vm0, %v2289_v24, %v5585_v27  ;;  %v3600_v50 = vsel %vm226_vm0, %v2288_v38, %v5584_v14 }
 0x344   : > { %v8487_v52 = vsel %vm1780_vm6, %v3662_v57, %v5599_v37  ;;  %v8490_v43 = vsel %vm1780_vm6, %v3663_v41, %v5600_v21  ;;  %v5588_v11 = vpop.permute.xlu1 %5587  ;;  %v9448_v57 = vld [vmem:[#allocation41_spill] sm:$0xff]  ;;  %v5579_v37 = vunpack.i.l.bf16 %v8467_v29  ;;  %v2457_v29 = vld [vmem:[#allocation2 + $0x18a] sm:$0xff] }
 0x345   : > { %9446 = vst [vmem:[#allocation51_spill] sm:$0xff] %v8487_v52  ;;  %9447 = vst [vmem:[#allocation52_spill] sm:$0xff] %v8490_v43  ;;  %v5603_v56 = vpop.permute.xlu0 %5602  ;;  %v5590_v1 = vunpack.i.h.bf16 %v5588_v11  ;;  %v5589_v8 = vunpack.i.l.bf16 %v5588_v11  ;;  %v5300_v41 = vunpack.i.h.bf16 %v9448_v57  ;;  %v5299_v55 = vunpack.i.l.bf16 %v9448_v57  ;;  %v6002_v52 = vld [vmem:[#allocation2 + $0x30] sm:$0xff] }
 0x346   : > { %v5605_v18 = vunpack.i.h.bf16 %v5603_v56  ;;  %v5604_v19 = vunpack.i.l.bf16 %v5603_v56  ;;  %5882 = vrot.lane.b32.xlu1 %v5881_v45, %s6029_s14  ;;  %v9449_v45 = vld [vmem:[#allocation42_spill] sm:$0xff] }
 0x347   : > { %5897 = vrot.lane.b32.xlu0 %v8492_v28, %s6025_s29  ;;  %v3632_v63 = vsel %vm1714_vm4, %v3600_v50, %v5589_v8  ;;  %v3633_v21 = vsel %vm1714_vm4, %v3601_v12, %v5590_v1  ;;  %v5304_v56 = vunpack.i.l.bf16 %v9449_v45  ;;  %v2425_v1 = vld [vmem:[#allocation2 + $0x189] sm:$0xff]  ;;  %v5305_v12 = vunpack.i.h.bf16 %v9449_v45  ;;  %v2514_v50 = vld [vmem:[#allocation2 + $0x151] sm:$0xff]  ;;  %v8533_v45 = vld [vmem:[#allocation2 + $0x180] sm:$0xff] }
 0x348   : > { %v3664_v5 = vsel %vm1747_vm5, %v3632_v63, %v5574_v17  ;;  %v3665_v27 = vsel %vm1747_vm5, %v3633_v21, %v5575_v58  ;;  %v8509_v25 = vpop.permute.xlu1 %5612  ;;  %v3607_v11 = vsel %vm226_vm0, %v2295_v40, %v5605_v18  ;;  %v2456_v8 = vld [vmem:[#allocation2 + $0x182] sm:$0xff]  ;;  %v3606_v17 = vsel %vm226_vm0, %v2294_v4, %v5604_v19 }
 0x349   : > { %v5608_v14 = vpop.permute.xlu0 %5607  ;;  %v9450_v58 = vld [vmem:[#allocation45_spill] sm:$0xff]  ;;  %v8522_v57 = vsel %vm1780_vm6, %v3664_v5, %v5579_v37  ;;  %v8525_v18 = vsel %vm1780_vm6, %v3665_v27, %v5580_v59  ;;  %v5901_v19 = vpack.i.bf16 %v2295_v40, %v2294_v4  ;;  %v8542_v27 = vpack.i.bf16 %v2457_v29, %v2456_v8  ;;  %v9456_v29 = vld [vmem:[#allocation15_spill] sm:$0xff]  ;;  %v6005_v59 = vld [vmem:[#allocation2 + $0x48] sm:$0xff] }
 0x34a   : > { %v5610_v38 = vunpack.i.h.bf16 %v5608_v14  ;;  %v5609_v24 = vunpack.i.l.bf16 %v5608_v14  ;;  %5892 = vrot.lane.b32.xlu1 %v9439_v26, %s6025_s29  ;;  %9451 = vst [vmem:[#allocation53_spill] sm:$0xff] %v8522_v57  ;;  %9452 = vst [vmem:[#allocation54_spill] sm:$0xff] %v8525_v18  ;;  %v5911_v14 = vpack.i.bf16 %v2515_v47, %v2514_v50  ;;  %v3582_v26 = vsel %vm226_vm0, %v6002_v52, %v5299_v55  ;;  %v9453_v55 = vld [vmem:[#allocation16_spill] sm:$0xff] }
 0x34b   : > { %5907 = vrot.lane.b32.xlu0 %v9450_v58, %s6026_s30  ;;  %v2424_v58 = vld [vmem:[#allocation2 + $0x181] sm:$0xff]  ;;  %v8546_v40 = vsel %vm1714_vm4, %v3582_v26, %v5304_v56  ;;  %v9458_v56 = vunpack.c.h.bf16 %v9456_v29  ;;  %v9459_v50 = vld [vmem:[#allocation44_spill] sm:$0xff] }
 0x34c   : > { %v8528_v63 = vsel %vm1714_vm4, %v3606_v17, %v5609_v24  ;;  %v8531_v21 = vsel %vm1714_vm4, %v3607_v11, %v5610_v38  ;;  %v8536_v37 = vpop.permute.xlu1 %5617  ;;  %v8540_v5 = vpack.i.bf16 %v2425_v1, %v2424_v58  ;;  %v6003_v11 = vld [vmem:[#allocation2 + $0x38] sm:$0xff]  ;;  %v9454_v24 = vunpack.c.l.bf16 %v9453_v55 }
 0x34d   : > { %v5633_v43 = vpop.permute.xlu0 %5632  ;;  %v3583_v4 = vsel %vm226_vm0, %v6003_v11, %v5300_v41  ;;  %v9455_v1 = vunpack.c.h.bf16 %v9453_v55  ;;  %v9457_v41 = vunpack.c.l.bf16 %v9456_v29  ;;  %v5400_v55 = vunpack.i.h.bf16 %v8275_v44 }
 0x34e   : > { %v5635_v47 = vunpack.i.h.bf16 %v5633_v43  ;;  %v5634_v38 = vunpack.i.l.bf16 %v5633_v43  ;;  %v8549_v52 = vsel %vm1714_vm4, %v3583_v4, %v5305_v12  ;;  %5902 = vrot.lane.b32.xlu1 %v5901_v19, %s6026_s30  ;;  %v8564_v43 = vld [vmem:[#allocation2 + $0x198] sm:$0xff]  ;;  %v8566_v12 = vld [vmem:[#allocation2 + $0x1a0] sm:$0xff]  ;;  %v5414_v11 = vunpack.i.l.bf16 %v8232_v53 }
 0x34f   : > { %5917 = vrot.lane.b32.xlu0 %v8179_v39, %s6027_s6  ;;  %v5936_v8 = vpack.i.bf16 %v9455_v1, %v9454_v24  ;;  %v8562_v17 = vpack.i.bf16 %v9458_v56, %v9457_v41  ;;  %v5399_v24 = vunpack.i.l.bf16 %v8275_v44  ;;  %v5410_v41 = vunpack.i.h.bf16 %v8207_v23 }
 0x350   : > { %v3666_v19 = vsel %vm1747_vm5, %v8462_v30, %v5634_v38  ;;  %v3667_v26 = vsel %vm1747_vm5, %v8465_v32, %v5635_v47  ;;  %v5623_v29 = vpop.permute.xlu1 %5622  ;;  %v5409_v38 = vunpack.i.l.bf16 %v8207_v23  ;;  %v5415_v44 = vunpack.i.h.bf16 %v8232_v53  ;;  %v6004_v23 = vld [vmem:[#allocation2 + $0x50] sm:$0xff]  ;;  %v2293_v53 = vld [vmem:[#allocation2 + $0x140] sm:$0xff] }
 0x351   : > { %v5638_v1 = vpop.permute.xlu0 %5637  ;;  %v5625_v47 = vunpack.i.h.bf16 %v5623_v29  ;;  %v5624_v58 = vunpack.i.l.bf16 %v5623_v29  ;;  %v3585_v4 = vsel %vm226_vm0, %v6004_v23, %v5400_v55  ;;  %v3584_v29 = vsel %vm226_vm0, %v6005_v59, %v5399_v24 }
 0x352   : > { %v5640_v56 = vunpack.i.h.bf16 %v5638_v1  ;;  %v5639_v39 = vunpack.i.l.bf16 %v5638_v1  ;;  %5912 = vrot.lane.b32.xlu1 %v5911_v14, %s6027_s6  ;;  %v5405_v32 = vunpack.i.h.bf16 %v8289_v6  ;;  %v5404_v14 = vunpack.i.l.bf16 %v8289_v6 }
 0x353   : > { %5927 = vrot.lane.b32.xlu0 %v8203_v15, %s6028_s13  ;;  %v3605_v55 = vsel %vm226_vm0, %v2293_v53, %v5625_v47  ;;  %v3604_v59 = vsel %vm226_vm0, %v2292_v46, %v5624_v58  ;;  %v5619_v47 = vunpack.i.l.bf16 %v8536_v37  ;;  %v5434_v23 = vunpack.i.l.bf16 %v8302_v42 }
 0x354   : > { %v8589_v1 = vsel %vm1780_vm6, %v3666_v19, %v5639_v39  ;;  %v8592_v30 = vsel %vm1780_vm6, %v3667_v26, %v5640_v56  ;;  %v5628_v57 = vpop.permute.xlu1 %5627  ;;  %v5615_v26 = vunpack.i.h.bf16 %v8509_v25  ;;  %v5614_v56 = vunpack.i.l.bf16 %v8509_v25 }
 0x355   : > { %9460 = vst [vmem:[#allocation55_spill] sm:$0xff] %v8589_v1  ;;  %v5658_v18 = vpop.permute.xlu0 %5657  ;;  %v5630_v19 = vunpack.i.h.bf16 %v5628_v57  ;;  %v5629_v1 = vunpack.i.l.bf16 %v5628_v57  ;;  %v5620_v25 = vunpack.i.h.bf16 %v8536_v37  ;;  %v5435_v53 = vunpack.i.h.bf16 %v8302_v42 }
 0x356   : > { %v5660_v35 = vunpack.i.h.bf16 %v5658_v18  ;;  %v5659_v39 = vunpack.i.l.bf16 %v5658_v18  ;;  %5922 = vrot.lane.b32.xlu1 %v8492_v28, %s6028_s13 }
 0x357   : > { %5937 = vrot.lane.b32.xlu0 %v5936_v8, %s6029_s14  ;;  %v3636_v57 = vsel %vm1714_vm4, %v3604_v59, %v5629_v1  ;;  %v3637_v24 = vsel %vm1714_vm4, %v3605_v55, %v5630_v19  ;;  %v3617_v1 = vsel %vm1714_vm4, %v3585_v4, %v5405_v32  ;;  %v5380_v32 = vunpack.i.h.bf16 %v8234_v54 }
 0x358   : > { %v3670_v6 = vsel %vm1747_vm5, %v8528_v63, %v5659_v39  ;;  %v3671_v18 = vsel %vm1747_vm5, %v8531_v21, %v5660_v35  ;;  %v3668_v46 = vsel %vm1747_vm5, %v3636_v57, %v5614_v56  ;;  %v3669_v8 = vsel %vm1747_vm5, %v3637_v24, %v5615_v26  ;;  %v8615_v28 = vpop.permute.xlu1 %5642  ;;  %v8649_v56 = vld [vmem:[#allocation2 + $0x1a1] sm:$0xff] }
 0x359   : > { %v5663_v58 = vpop.permute.xlu0 %5662  ;;  %v3616_v63 = vsel %vm1714_vm4, %v3584_v29, %v5404_v14  ;;  %v8626_v37 = vsel %vm1780_vm6, %v3668_v46, %v5619_v47  ;;  %v8629_v39 = vsel %vm1780_vm6, %v3669_v8, %v5620_v25  ;;  %v3646_v29 = vsel %vm1747_vm5, %v8546_v40, %v5409_v38  ;;  %v8647_v38 = vld [vmem:[#allocation2 + $0x199] sm:$0xff] }
 0x35a   : > { %v5665_v35 = vunpack.i.h.bf16 %v5663_v58  ;;  %v5664_v21 = vunpack.i.l.bf16 %v5663_v58  ;;  %5932 = vrot.lane.b32.xlu1 %v8562_v17, %s6029_s14  ;;  %v5374_v14 = vunpack.i.l.bf16 %v8209_v61  ;;  %v3678_v17 = vsel %vm1780_vm6, %v3646_v29, %v5414_v11  ;;  %v9463_v25 = vld [vmem:[#allocation17_spill] sm:$0xff]  ;;  %v2297_v29 = vld [vmem:[#allocation2 + $0x170] sm:$0xff] }
 0x35b   : > { %5947 = vrot.lane.b32.xlu0 %v8203_v15, %s6025_s29  ;;  %v3647_v15 = vsel %vm1747_vm5, %v8549_v52, %v5410_v41  ;;  %v5379_v19 = vunpack.i.l.bf16 %v8234_v54  ;;  %v3710_v11 = vsel %vm1813_vm7, %v3678_v17, %v5434_v23  ;;  %v5389_v41 = vunpack.i.l.bf16 %v8254_v10 }
 0x35c   : > { %v8635_v4 = vsel %vm1780_vm6, %v3670_v6, %v5664_v21  ;;  %v8638_v42 = vsel %vm1780_vm6, %v3671_v18, %v5665_v35  ;;  %v5648_v40 = vpop.permute.xlu1 %5647  ;;  %v3679_v55 = vsel %vm1780_vm6, %v3647_v15, %v5415_v44  ;;  %v3648_v59 = vsel %vm1747_vm5, %v3616_v63, %v5374_v14 }
 0x35d   : > { %v8645_v26 = vpop.permute.xlu0 %5667  ;;  %v9461_v6 = vunpack.i.h.bf16 %v8209_v61  ;;  %v3711_v54 = vsel %vm1813_vm7, %v3679_v55, %v5435_v53  ;;  %v5650_v18 = vunpack.i.h.bf16 %v5648_v40  ;;  %v5649_v57 = vunpack.i.l.bf16 %v5648_v40  ;;  %v2296_v53 = vld [vmem:[#allocation2 + $0x168] sm:$0xff] }
 0x35e   : > { %v9462_v24 = vpack.i.bf16 %v8511_v9, %v8533_v45  ;;  %5942 = vrot.lane.b32.xlu1 %v8540_v5, %s6024_s28  ;;  %v5390_v61 = vunpack.i.h.bf16 %v8254_v10  ;;  %v5395_v44 = vunpack.i.h.bf16 %v8263_v60  ;;  %v9464_v47 = vunpack.c.l.bf16 %v9463_v25 }
 0x35f   : > { %v3649_v52 = vsel %vm1747_vm5, %v3617_v1, %v9461_v6  ;;  %v9465_v46 = vunpack.c.h.bf16 %v9463_v25  ;;  %v5971_v58 = vpack.i.bf16 %v8649_v56, %v8647_v38  ;;  %v5394_v63 = vunpack.i.l.bf16 %v8263_v60 }
 0x360   : > { %5957 = vrot.lane.b32.xlu0 %v9462_v24, %s6026_s30  ;;  %v3742_v9 = vsel %vm1846_vm8, %v3710_v11, %v5389_v41  ;;  %v3680_v45 = vsel %vm1780_vm6, %v3648_v59, %v5379_v19  ;;  %v3681_v23 = vsel %vm1780_vm6, %v3649_v52, %v5380_v32  ;;  %v5653_v10 = vpop.permute.xlu1 %5652  ;;  %v3743_v21 = vsel %vm1846_vm8, %v3711_v54, %v5390_v61  ;;  %v2552_v11 = vld [vmem:[#allocation2 + $0x19a] sm:$0xff]  ;;  %v2553_v41 = vld [vmem:[#allocation2 + $0x1a2] sm:$0xff] }
 0x361   : > { %v5986_v8 = vpack.i.bf16 %v9465_v46, %v9464_v47  ;;  %v5678_v35 = vpop.permute.xlu0 %5677  ;;  %v5479_v1 = vunpack.i.l.bf16 %v8326_v13  ;;  %v5655_v14 = vunpack.i.h.bf16 %v5653_v10  ;;  %v5654_v15 = vunpack.i.l.bf16 %v5653_v10 }
 0x362   : > { %v5645_v17 = vunpack.i.h.bf16 %v8615_v28  ;;  %v5644_v60 = vunpack.i.l.bf16 %v8615_v28  ;;  %v3609_v40 = vsel %vm226_vm0, %v2297_v29, %v5650_v18  ;;  %v3608_v19 = vsel %vm226_vm0, %v2296_v53, %v5649_v57  ;;  %5952 = vrot.lane.b32.xlu1 %v8542_v27, %s6025_s29 }
 0x363   : > { %v5480_v32 = vunpack.i.h.bf16 %v8326_v13  ;;  %v5669_v38 = vunpack.i.l.bf16 %v8645_v26  ;;  %v3640_v56 = vsel %vm1714_vm4, %v3608_v19, %v5654_v15  ;;  %v3641_v55 = vsel %vm1714_vm4, %v3609_v40, %v5655_v14 }
 0x364   : > { %5967 = vrot.lane.b32.xlu0 %v8540_v5, %s6027_s6  ;;  %v5670_v28 = vunpack.i.h.bf16 %v8645_v26  ;;  %v5679_v59 = vunpack.i.l.bf16 %v5678_v35  ;;  %v5673_v52 = vpop.permute.xlu1 %5672  ;;  %v8693_v5 = vsel %vm1747_vm5, %v3640_v56, %v5644_v60  ;;  %v8696_v54 = vsel %vm1747_vm5, %v3641_v55, %v5645_v17  ;;  %v6006_v55 = vld [vmem:[#allocation2 + $0x68] sm:$0xff] }
 0x365   : > { %v5688_v6 = vpop.permute.xlu0 %5687  ;;  %v9466_v13 = vunpack.i.l.bf16 %v8188_v36  ;;  %v9467_v57 = vunpack.i.h.bf16 %v8188_v36  ;;  %v5680_v26 = vunpack.i.h.bf16 %v5678_v35  ;;  %v5675_v46 = vunpack.i.h.bf16 %v5673_v52 }
 0x366   : > { %v5689_v61 = vunpack.i.l.bf16 %v5688_v6  ;;  %v5690_v47 = vunpack.i.h.bf16 %v5688_v6  ;;  %v5674_v10 = vunpack.i.l.bf16 %v5673_v52  ;;  %v9468_v53 = vpack.i.bf16 %v8566_v12, %v8564_v43 }
 0x367   : > { %v3712_v18 = vsel %vm1813_vm7, %v3680_v45, %v9466_v13  ;;  %v3713_v24 = vsel %vm1813_vm7, %v3681_v23, %v9467_v57  ;;  %v3774_v23 = vsel %vm1879_vm9, %v3742_v9, %v5394_v63  ;;  %v5981_v35 = vpack.i.bf16 %v2553_v41, %v2552_v11  ;;  %v9471_v41 = vld [vmem:[#allocation47_spill] sm:$0xff]  ;;  %v6008_v57 = vld [vmem:[#allocation2 + $0x80] sm:$0xff] }
 0x368   : > { %v3744_v25 = vsel %vm1846_vm8, %v3712_v18, %v5479_v1  ;;  %5977 = vrot.lane.b32.xlu0 %v8542_v27, %s6028_s13  ;;  %5962 = vrot.lane.b32.xlu1 %v9468_v53, %s6026_s30  ;;  %v3745_v45 = vsel %vm1846_vm8, %v3713_v24, %v5480_v32  ;;  %v5460_v1 = vunpack.i.h.bf16 %v8328_v7  ;;  %v3775_v27 = vsel %vm1879_vm9, %v3743_v21, %v5395_v44  ;;  %v5683_v17 = vpop.permute.xlu1 %5682  ;;  %s8904_s30 = scalar_lea.vmem %s9059_s5, %s4422_s27 }
 0x369   : > { %v3776_v36 = vsel %vm1879_vm9, %v3744_v25, %v5669_v38  ;;  %v3777_v29 = vsel %vm1879_vm9, %v3745_v45, %v5670_v28  ;;  %v8718_v15 = vpop.permute.xlu0 %5697  ;;  %v5685_v60 = vunpack.i.h.bf16 %v5683_v17  ;;  %v5684_v40 = vunpack.i.l.bf16 %v5683_v17  ;;  %v9472_v25 = vld [vmem:[#allocation18_spill] sm:$0xff] }
 0x36a   : > { %v3808_v14 = vsel %vm1912_vm10, %v3776_v36, %v5679_v59  ;;  %v3809_v43 = vsel %vm1912_vm10, %v3777_v29, %v5680_v26  ;;  %v5459_v63 = vunpack.i.l.bf16 %v8328_v7  ;;  %v3806_v19 = vsel %vm1912_vm10, %v3774_v23, %v5674_v10  ;;  %v6009_v26 = vld [vmem:[#allocation2 + $0x78] sm:$0xff] }
 0x36b   : > { %v3968_v12 = vsel %vm1988_vm11, %v3808_v14, %v5689_v61  ;;  %v3969_v9 = vsel %vm1988_vm11, %v3809_v43, %v5690_v47  ;;  %v3807_v32 = vsel %vm1912_vm10, %v3775_v27, %v5675_v46  ;;  %v5465_v44 = vunpack.i.h.bf16 %v8336_v3 }
 0x36c   : > { %5987 = vrot.lane.b32.xlu0 %v5986_v8, %s6029_s14  ;;  %5972 = vrot.lane.b32.xlu1 %v5971_v58, %s6027_s6  ;;  %v5464_v21 = vunpack.i.l.bf16 %v8336_v3  ;;  %v3966_v38 = vsel %vm1988_vm11, %v3806_v19, %v5684_v40  ;;  %v3967_v56 = vsel %vm1988_vm11, %v3807_v32, %v5685_v60  ;;  %v9469_v7 = vunpack.i.h.bf16 %v9459_v50  ;;  %v8735_v52 = vpop.permute.xlu1 %5692  ;;  %v6007_v8 = vld [vmem:[#allocation2 + $0x60] sm:$0xff] }
 0x36d   : > { %v3996_v59 = vpack.c.bf16 %v3967_v56, %v3966_v38  ;;  %v5708_v6 = vpop.permute.xlu0 %5707  ;;  %v9470_v58 = vunpack.i.l.bf16 %v9459_v50  ;;  %v5370_v3 = vunpack.i.h.bf16 %v9471_v41  ;;  %v5369_v13 = vunpack.i.l.bf16 %v9471_v41 }
 0x36e   : > { %v3587_v28 = vsel %vm226_vm0, %v6006_v55, %v9469_v7  ;;  %v3997_v18 = vpack.c.bf16 %v3969_v9, %v3968_v12  ;;  %v3589_v24 = vsel %vm226_vm0, %v6008_v57, %v5460_v1  ;;  %v3588_v61 = vsel %vm226_vm0, %v6009_v26, %v5459_v63 }
 0x36f   : > { %v3586_v11 = vsel %vm226_vm0, %v6007_v8, %v9470_v58  ;;  %4588 = vmatprep.mubr.msk.bf16.mxu1 %vm4037_vm13, %v3996_v59  ;;  %v9473_v47 = vunpack.c.l.bf16 %v9472_v25  ;;  %v9474_v50 = vunpack.c.h.bf16 %v9472_v25  ;;  %v5470_v10 = vunpack.i.h.bf16 %v8311_v2 }
 0x370   : > { %5982 = vrot.lane.b32.xlu1 %v5981_v35, %s6028_s13  ;;  %v5469_v53 = vunpack.i.l.bf16 %v8311_v2  ;;  %v3620_v45 = vsel %vm1714_vm4, %v3588_v61, %v5464_v21  ;;  %v3621_v36 = vsel %vm1714_vm4, %v3589_v24, %v5465_v44  ;;  %4589 = vmatmul.mubr.msk.bf16.gmra.mxu1 %vm4037_vm13, %v3997_v18  ;;  %v5450_v23 = vunpack.i.h.bf16 %v8313_v20  ;;  %v5703_v27 = vpop.permute.xlu1 %5702 }
 0x371   : > { %v5991_v46 = vpack.i.bf16 %v9474_v50, %v9473_v47  ;;  %v5449_v35 = vunpack.i.l.bf16 %v8313_v20  ;;  %v5475_v1 = vunpack.i.h.bf16 %v8318_v51  ;;  %v5474_v29 = vunpack.i.l.bf16 %v8318_v51  ;;  %v5718_v14 = vpop.permute.xlu0 %5717 }
 0x372   : > { %v3618_v17 = vsel %vm1714_vm4, %v3586_v11, %v5369_v13  ;;  %v3619_v2 = vsel %vm1714_vm4, %v3587_v28, %v5370_v3  ;;  %v3653_v12 = vsel %vm1747_vm5, %v3621_v36, %v5450_v23  ;;  %v5700_v60 = vunpack.i.h.bf16 %v8718_v15 }
 0x373   : > { %v3652_v43 = vsel %vm1747_vm5, %v3620_v45, %v5449_v35  ;;  %v5699_v40 = vunpack.i.l.bf16 %v8718_v15  ;;  %v3650_v20 = vsel %vm1747_vm5, %v3618_v17, %v5469_v53  ;;  %v3651_v51 = vsel %vm1747_vm5, %v3619_v2, %v5470_v10 }
 0x374   : > { %5992 = vrot.lane.b32.xlu1 %v5991_v46, %s6029_s14  ;;  %v5455_v63 = vunpack.i.h.bf16 %v8320_v49  ;;  %v5454_v9 = vunpack.i.l.bf16 %v8320_v49  ;;  %v3682_v19 = vsel %vm1780_vm6, %v3650_v20, %v5474_v29  ;;  %v3683_v32 = vsel %vm1780_vm6, %v3651_v51, %v5475_v1  ;;  %v5713_v21 = vpop.permute.xlu1 %5712 }
 0x375   : > { %v5728_v44 = vpop.permute.xlu0 %5727  ;;  %v5710_v56 = vunpack.i.h.bf16 %v5708_v6  ;;  %v5709_v55 = vunpack.i.l.bf16 %v5708_v6  ;;  %v5505_v7 = vunpack.i.h.bf16 %v8366_v16  ;;  %v5504_v28 = vunpack.i.l.bf16 %v8366_v16 }
 0x376   : > { %v3684_v38 = vsel %vm1780_vm6, %v3652_v43, %v5454_v9  ;;  %v3685_v15 = vsel %vm1780_vm6, %v3653_v12, %v5455_v63  ;;  %v5695_v8 = vunpack.i.h.bf16 %v8735_v52  ;;  %v5694_v58 = vunpack.i.l.bf16 %v8735_v52 }
 0x377   : > { %v3716_v59 = vsel %vm1813_vm7, %v3684_v38, %v5699_v40  ;;  %v3717_v49 = vsel %vm1813_vm7, %v3685_v15, %v5700_v60  ;;  %v5720_v11 = vunpack.i.h.bf16 %v5718_v14  ;;  %v5719_v41 = vunpack.i.l.bf16 %v5718_v14 }
 0x378   : > { %v5705_v3 = vunpack.i.h.bf16 %v5703_v27  ;;  %v5704_v13 = vunpack.i.l.bf16 %v5703_v27  ;;  %v5730_v18 = vunpack.i.h.bf16 %v5728_v44  ;;  %v5729_v57 = vunpack.i.l.bf16 %v5728_v44  ;;  %v5723_v6 = vpop.permute.xlu1 %5722 }
 0x379   : > { %v5738_v24 = vpop.permute.xlu0 %5737  ;;  %v3748_v26 = vsel %vm1846_vm8, %v3716_v59, %v5709_v55  ;;  %v3749_v16 = vsel %vm1846_vm8, %v3717_v49, %v5710_v56  ;;  %v5715_v61 = vunpack.i.h.bf16 %v5713_v21  ;;  %v5714_v25 = vunpack.i.l.bf16 %v5713_v21  ;;  %v6010_v56 = vld [vmem:[#allocation2 + $0xb0] sm:$0xff]  ;;  %v6011_v59 = vld [vmem:[#allocation2 + $0xa8] sm:$0xff] }
 0x37a   : > { %v5740_v47 = vunpack.i.h.bf16 %v5738_v24  ;;  %v5739_v50 = vunpack.i.l.bf16 %v5738_v24  ;;  %v5725_v46 = vunpack.i.h.bf16 %v5723_v6  ;;  %v5724_v10 = vunpack.i.l.bf16 %v5723_v6 }
 0x37b   : > { %v3715_v52 = vsel %vm1813_vm7, %v3683_v32, %v5695_v8  ;;  %v3714_v53 = vsel %vm1813_vm7, %v3682_v19, %v5694_v58  ;;  %v3780_v45 = vsel %vm1879_vm9, %v3748_v26, %v5719_v41  ;;  %v3781_v36 = vsel %vm1879_vm9, %v3749_v16, %v5720_v11 }
 0x37c   : > { %v3746_v23 = vsel %vm1846_vm8, %v3714_v53, %v5704_v13  ;;  %v3747_v35 = vsel %vm1846_vm8, %v3715_v52, %v5705_v3  ;;  %v3812_v1 = vsel %vm1912_vm10, %v3780_v45, %v5729_v57  ;;  %v3813_v29 = vsel %vm1912_vm10, %v3781_v36, %v5730_v18  ;;  %v5733_v27 = vpop.permute.xlu1 %5732 }
 0x37d   : > { %v5748_v14 = vpop.permute.xlu0 %5747  ;;  %v3778_v17 = vsel %vm1879_vm9, %v3746_v23, %v5714_v25  ;;  %v3779_v2 = vsel %vm1879_vm9, %v3747_v35, %v5715_v61  ;;  %v5735_v43 = vunpack.i.h.bf16 %v5733_v27  ;;  %v5734_v12 = vunpack.i.l.bf16 %v5733_v27 }
 0x37e   : > { %v3972_v60 = vsel %vm1988_vm11, %v3812_v1, %v5739_v50  ;;  %v3973_v40 = vsel %vm1988_vm11, %v3813_v29, %v5740_v47  ;;  %v3810_v20 = vsel %vm1912_vm10, %v3778_v17, %v5724_v10  ;;  %v3811_v51 = vsel %vm1912_vm10, %v3779_v2, %v5725_v46 }
 0x37f   : > { %v5510_v63 = vunpack.i.h.bf16 %v8382_v34  ;;  %v5509_v9 = vunpack.i.l.bf16 %v8382_v34  ;;  %v3970_v19 = vsel %vm1988_vm11, %v3810_v20, %v5734_v12  ;;  %v3971_v32 = vsel %vm1988_vm11, %v3811_v51, %v5735_v43 }
 0x380   : > { %v3998_v44 = vpack.c.bf16 %v3971_v32, %v3970_v19  ;;  %v5743_v38 = vpop.permute.xlu1 %5742  ;;  %v3999_v15 = vpack.c.bf16 %v3973_v40, %v3972_v60  ;;  %v3593_v55 = vsel %vm226_vm0, %v6010_v56, %v5505_v7  ;;  %v3592_v49 = vsel %vm226_vm0, %v6011_v59, %v5504_v28 }
 0x381   : > { %v5758_v21 = vpop.permute.xlu0 %5757  ;;  %v3624_v8 = vsel %vm1714_vm4, %v3592_v49, %v5509_v9  ;;  %v3625_v34 = vsel %vm1714_vm4, %v3593_v55, %v5510_v63  ;;  %v5495_v58 = vunpack.i.h.bf16 %v8348_v22  ;;  %v5494_v11 = vunpack.i.l.bf16 %v8348_v22 }
 0x382   : > { %4592 = vmatprep.mubr.msk.bf16.mxu1 %vm4037_vm13, %v3998_v44  ;;  %v5750_v18 = vunpack.i.h.bf16 %v5748_v14  ;;  %v5749_v28 = vunpack.i.l.bf16 %v5748_v14  ;;  %v5500_v57 = vunpack.i.h.bf16 %v8357_v31  ;;  %v5499_v24 = vunpack.i.l.bf16 %v8357_v31 }
 0x383   : > { %4593 = vmatmul.mubr.msk.bf16.gmra.mxu1 %vm4037_vm13, %v3999_v15  ;;  %v3656_v13 = vsel %vm1747_vm5, %v3624_v8, %v5494_v11  ;;  %v3657_v7 = vsel %vm1747_vm5, %v3625_v34, %v5495_v58  ;;  %v5760_v25 = vunpack.i.h.bf16 %v5758_v21  ;;  %v5759_v22 = vunpack.i.l.bf16 %v5758_v21 }
 0x384   : > { %v5753_v3 = vpop.permute.xlu1 %5752  ;;  %v3688_v16 = vsel %vm1780_vm6, %v3656_v13, %v5499_v24  ;;  %v3689_v61 = vsel %vm1780_vm6, %v3657_v7, %v5500_v57  ;;  %v5745_v46 = vunpack.i.h.bf16 %v5743_v38  ;;  %v5744_v10 = vunpack.i.l.bf16 %v5743_v38 }
 0x385   : > { %v5768_v41 = vpop.permute.xlu0 %5767  ;;  %v3720_v47 = vsel %vm1813_vm7, %v3688_v16, %v5749_v28  ;;  %v3721_v50 = vsel %vm1813_vm7, %v3689_v61, %v5750_v18  ;;  %v5755_v45 = vunpack.i.h.bf16 %v5753_v3  ;;  %v5754_v36 = vunpack.i.l.bf16 %v5753_v3 }
 0x386   : > { %v5770_v52 = vunpack.i.h.bf16 %v5768_v41  ;;  %v5769_v53 = vunpack.i.l.bf16 %v5768_v41  ;;  %v3752_v29 = vsel %vm1846_vm8, %v3720_v47, %v5759_v22  ;;  %v3753_v14 = vsel %vm1846_vm8, %v3721_v50, %v5760_v25 }
 0x387   : > { %v3719_v40 = vsel %vm1813_vm7, %v8380_v48, %v5745_v46  ;;  %v3718_v20 = vsel %vm1813_vm7, %v8377_v33, %v5744_v10 }
 0x388   : > { %v5763_v26 = vpop.permute.xlu1 %5762  ;;  %v3784_v51 = vsel %vm1879_vm9, %v3752_v29, %v5769_v53  ;;  %v3785_v63 = vsel %vm1879_vm9, %v3753_v14, %v5770_v52  ;;  %v3750_v9 = vsel %vm1846_vm8, %v3718_v20, %v5754_v36  ;;  %v3751_v19 = vsel %vm1846_vm8, %v3719_v40, %v5755_v45  ;;  %v9476_v20 = vld [vmem:[#allocation48_spill] sm:$0xff] }
 0x389   : > { %v5778_v6 = vpop.permute.xlu0 %5777  ;;  %v5765_v27 = vunpack.i.h.bf16 %v5763_v26  ;;  %v5764_v17 = vunpack.i.l.bf16 %v5763_v26 }
 0x38a   : > { %v5780_v23 = vunpack.i.h.bf16 %v5778_v6  ;;  %v5779_v31 = vunpack.i.l.bf16 %v5778_v6 }
 0x38b   : > { %v3782_v15 = vsel %vm1879_vm9, %v3750_v9, %v5764_v17  ;;  %v3783_v48 = vsel %vm1879_vm9, %v3751_v19, %v5765_v27 }
 0x38c   : > { %v5773_v1 = vpop.permute.xlu1 %5772  ;;  %v3816_v32 = vsel %vm1912_vm10, %v3784_v51, %v5779_v31  ;;  %v3817_v44 = vsel %vm1912_vm10, %v3785_v63, %v5780_v23 }
 0x38d   : > { %v5788_v35 = vpop.permute.xlu0 %5787  ;;  %v5775_v12 = vunpack.i.h.bf16 %v5773_v1  ;;  %v5774_v60 = vunpack.i.l.bf16 %v5773_v1 }
 0x38e   : > { %v5790_v2 = vunpack.i.h.bf16 %v5788_v35  ;;  %v5789_v43 = vunpack.i.l.bf16 %v5788_v35 }
 0x38f   : > { %v3814_v49 = vsel %vm1912_vm10, %v3782_v15, %v5774_v60  ;;  %v3815_v8 = vsel %vm1912_vm10, %v3783_v48, %v5775_v12  ;;  %v9475_v60 = vld [vmem:[#allocation49_spill] sm:$0xff] }
 0x390   : > { %v5783_v38 = vpop.permute.xlu1 %5782  ;;  %v3976_v55 = vsel %vm1988_vm11, %v3816_v32, %v5789_v43  ;;  %v3977_v59 = vsel %vm1988_vm11, %v3817_v44, %v5790_v2 }
 0x391   : > { %v5798_v21 = vpop.permute.xlu0 %5797  ;;  %v5785_v56 = vunpack.i.h.bf16 %v5783_v38  ;;  %v5784_v33 = vunpack.i.l.bf16 %v5783_v38  ;;  %v4001_v13 = vpack.c.bf16 %v3977_v59, %v3976_v55 }
 0x392   : > { %v5800_v28 = vunpack.i.h.bf16 %v5798_v21  ;;  %v5799_v57 = vunpack.i.l.bf16 %v5798_v21 }
 0x393   : > { %v3974_v34 = vsel %vm1988_vm11, %v3814_v49, %v5784_v33  ;;  %v3975_v58 = vsel %vm1988_vm11, %v3815_v8, %v5785_v56 }
 0x394   : > { %v4000_v11 = vpack.c.bf16 %v3975_v58, %v3974_v34  ;;  %v5793_v3 = vpop.permute.xlu1 %5792  ;;  %v3724_v22 = vsel %vm1813_vm7, %v8456_v62, %v5799_v57  ;;  %v3725_v47 = vsel %vm1813_vm7, %v8459_v0, %v5800_v28 }
 0x395   : > { %v5808_v41 = vpop.permute.xlu0 %5807  ;;  %v5795_v53 = vunpack.i.h.bf16 %v5793_v3  ;;  %v5794_v45 = vunpack.i.l.bf16 %v5793_v3 }
 0x396   : > { %4596 = vmatprep.mubr.msk.bf16.mxu1 %vm4037_vm13, %v4000_v11  ;;  %v5810_v24 = vunpack.i.h.bf16 %v5808_v41  ;;  %v5809_v6 = vunpack.i.l.bf16 %v5808_v41 }
 0x397   : > { %4597 = vmatmul.mubr.msk.bf16.gmra.mxu1 %vm4037_vm13, %v4001_v13  ;;  %v3723_v40 = vsel %vm1813_vm7, %v9475_v60, %v5795_v53  ;;  %v3722_v51 = vsel %vm1813_vm7, %v9476_v20, %v5794_v45 }
 0x398   : > { %v5803_v18 = vpop.permute.xlu1 %5802  ;;  %v3756_v10 = vsel %vm1846_vm8, %v3724_v22, %v5809_v6  ;;  %v3757_v52 = vsel %vm1846_vm8, %v3725_v47, %v5810_v24 }
 0x399   : > { %v5818_v7 = vpop.permute.xlu0 %5817  ;;  %v5805_v31 = vunpack.i.h.bf16 %v5803_v18  ;;  %v5804_v35 = vunpack.i.l.bf16 %v5803_v18 }
 0x39a   : > { %v5820_v26 = vunpack.i.h.bf16 %v5818_v7  ;;  %v5819_v16 = vunpack.i.l.bf16 %v5818_v7 }
 0x39b   : > { %v3754_v19 = vsel %vm1846_vm8, %v3722_v51, %v5804_v35  ;;  %v3755_v32 = vsel %vm1846_vm8, %v3723_v40, %v5805_v31  ;;  %v9480_v40 = vld [vmem:[#allocation51_spill] sm:$0xff] }
 0x39c   : > { %v5813_v25 = vpop.permute.xlu1 %5812  ;;  %v3788_v36 = vsel %vm1879_vm9, %v3756_v10, %v5819_v16  ;;  %v3789_v23 = vsel %vm1879_vm9, %v3757_v52, %v5820_v26  ;;  %v9477_v16 = vld [vmem:[#allocation53_spill] sm:$0xff] }
 0x39d   : > { %v5828_v61 = vpop.permute.xlu0 %5827  ;;  %v5815_v62 = vunpack.i.h.bf16 %v5813_v25  ;;  %v5814_v14 = vunpack.i.l.bf16 %v5813_v25  ;;  %v9478_v25 = vld [vmem:[#allocation54_spill] sm:$0xff] }
 0x39e   : > { %v5830_v50 = vunpack.i.h.bf16 %v5828_v61  ;;  %v5829_v46 = vunpack.i.l.bf16 %v5828_v61 }
 0x39f   : > { %v3786_v15 = vsel %vm1879_vm9, %v3754_v19, %v5814_v14  ;;  %v3787_v48 = vsel %vm1879_vm9, %v3755_v32, %v5815_v62 }
 0x3a0   : > { %v5823_v29 = vpop.permute.xlu1 %5822  ;;  %v3820_v17 = vsel %vm1912_vm10, %v3788_v36, %v5829_v46  ;;  %v3821_v2 = vsel %vm1912_vm10, %v3789_v23, %v5830_v50 }
 0x3a1   : > { %v5838_v1 = vpop.permute.xlu0 %5837  ;;  %v5825_v43 = vunpack.i.h.bf16 %v5823_v29  ;;  %v5824_v12 = vunpack.i.l.bf16 %v5823_v29 }
 0x3a2   : > { %v5840_v27 = vunpack.i.h.bf16 %v5838_v1  ;;  %v5839_v0 = vunpack.i.l.bf16 %v5838_v1 }
 0x3a3   : > { %v3818_v55 = vsel %vm1912_vm10, %v3786_v15, %v5824_v12  ;;  %v3819_v59 = vsel %vm1912_vm10, %v3787_v48, %v5825_v43  ;;  %v9479_v12 = vld [vmem:[#allocation52_spill] sm:$0xff] }
 0x3a4   : > { %v3980_v63 = vsel %vm1988_vm11, %v3820_v17, %v5839_v0  ;;  %v3981_v9 = vsel %vm1988_vm11, %v3821_v2, %v5840_v27  ;;  %v5833_v38 = vpop.permute.xlu1 %5832 }
 0x3a5   : > { %v4003_v44 = vpack.c.bf16 %v3981_v9, %v3980_v63  ;;  %v5848_v21 = vpop.permute.xlu0 %5847  ;;  %v5835_v56 = vunpack.i.h.bf16 %v5833_v38  ;;  %v5834_v33 = vunpack.i.l.bf16 %v5833_v38 }
 0x3a6   : > { %v5850_v13 = vunpack.i.h.bf16 %v5848_v21  ;;  %v5849_v7 = vunpack.i.l.bf16 %v5848_v21 }
 0x3a7   : > { %v3978_v49 = vsel %vm1988_vm11, %v3818_v55, %v5834_v33  ;;  %v3979_v8 = vsel %vm1988_vm11, %v3819_v59, %v5835_v56 }
 0x3a8   : > { %v4002_v34 = vpack.c.bf16 %v3979_v8, %v3978_v49  ;;  %v5843_v11 = vpop.permute.xlu1 %5842  ;;  %v3728_v61 = vsel %vm1813_vm7, %v9477_v16, %v5849_v7  ;;  %v3729_v22 = vsel %vm1813_vm7, %v9478_v25, %v5850_v13 }
 0x3a9   : > { %v5858_v58 = vpop.permute.xlu0 %5857  ;;  %v5845_v52 = vunpack.i.h.bf16 %v5843_v11  ;;  %v5844_v53 = vunpack.i.l.bf16 %v5843_v11 }
 0x3aa   : > { %4600 = vmatprep.mubr.msk.bf16.mxu1 %vm4037_vm13, %v4002_v34  ;;  %v5860_v18 = vunpack.i.h.bf16 %v5858_v58  ;;  %v5859_v28 = vunpack.i.l.bf16 %v5858_v58 }
 0x3ab   : > { %4601 = vmatmul.mubr.msk.bf16.gmra.mxu1 %vm4037_vm13, %v4003_v44  ;;  %v3727_v60 = vsel %vm1813_vm7, %v9479_v12, %v5845_v52  ;;  %v3726_v20 = vsel %vm1813_vm7, %v9480_v40, %v5844_v53 }
 0x3ac   : > { %v5853_v3 = vpop.permute.xlu1 %5852  ;;  %v3760_v46 = vsel %vm1846_vm8, %v3728_v61, %v5859_v28  ;;  %v3761_v10 = vsel %vm1846_vm8, %v3729_v22, %v5860_v18  ;;  %v8893_v28 = vld [vmem:[%s9058_s4] ss:$0 sm:$0xff] }
 0x3ad   : > { %v5868_v41 = vpop.permute.xlu0 %5867  ;;  %v5855_v23 = vunpack.i.h.bf16 %v5853_v3  ;;  %v5854_v31 = vunpack.i.l.bf16 %v5853_v3 }
 0x3ae   : > { %v5870_v57 = vunpack.i.h.bf16 %v5868_v41  ;;  %v5869_v24 = vunpack.i.l.bf16 %v5868_v41 }
 0x3af   : > { %v3758_v9 = vsel %vm1846_vm8, %v3726_v20, %v5854_v31  ;;  %v3759_v19 = vsel %vm1846_vm8, %v3727_v60, %v5855_v23 }
 0x3b0   : > { %v5863_v26 = vpop.permute.xlu1 %5862  ;;  %v3792_v45 = vsel %vm1879_vm9, %v3760_v46, %v5869_v24  ;;  %v3793_v36 = vsel %vm1879_vm9, %v3761_v10, %v5870_v57 }
 0x3b1   : > { %v5878_v6 = vpop.permute.xlu0 %5877  ;;  %v5865_v29 = vunpack.i.h.bf16 %v5863_v26  ;;  %v5864_v62 = vunpack.i.l.bf16 %v5863_v26 }
 0x3b2   : > { %v5880_v47 = vunpack.i.h.bf16 %v5878_v6  ;;  %v5879_v50 = vunpack.i.l.bf16 %v5878_v6 }
 0x3b3   : > { %v3790_v38 = vsel %vm1879_vm9, %v3758_v9, %v5864_v62  ;;  %v3791_v15 = vsel %vm1879_vm9, %v3759_v19, %v5865_v29 }
 0x3b4   : > { %v5873_v1 = vpop.permute.xlu1 %5872  ;;  %v3824_v0 = vsel %vm1912_vm10, %v3792_v45, %v5879_v50  ;;  %v3825_v17 = vsel %vm1912_vm10, %v3793_v36, %v5880_v47 }
 0x3b5   : > { %v5888_v35 = vpop.permute.xlu0 %5887  ;;  %v5875_v2 = vunpack.i.h.bf16 %v5873_v1  ;;  %v5874_v43 = vunpack.i.l.bf16 %v5873_v1 }
 0x3b6   : > { %v5890_v14 = vunpack.i.h.bf16 %v5888_v35  ;;  %v5889_v27 = vunpack.i.l.bf16 %v5888_v35 }
 0x3b7   : > { %v3822_v33 = vsel %vm1912_vm10, %v3790_v38, %v5874_v43  ;;  %v3823_v55 = vsel %vm1912_vm10, %v3791_v15, %v5875_v2 }
 0x3b8   : > { %v3984_v51 = vsel %vm1988_vm11, %v3824_v0, %v5889_v27  ;;  %v3985_v63 = vsel %vm1988_vm11, %v3825_v17, %v5890_v14  ;;  %v5883_v21 = vpop.permute.xlu1 %5882 }
 0x3b9   : > { %v4005_v32 = vpack.c.bf16 %v3985_v63, %v3984_v51  ;;  %v5898_v44 = vpop.permute.xlu0 %5897  ;;  %v5885_v48 = vunpack.i.h.bf16 %v5883_v21  ;;  %v5884_v56 = vunpack.i.l.bf16 %v5883_v21  ;;  %v9481_v21 = vld [vmem:[#allocation55_spill] sm:$0xff] }
 0x3ba   : > { %v5899_v11 = vunpack.i.l.bf16 %v5898_v44  ;;  %v5900_v13 = vunpack.i.h.bf16 %v5898_v44 }
 0x3bb   : > { %v3982_v59 = vsel %vm1988_vm11, %v3822_v33, %v5884_v56  ;;  %v3983_v49 = vsel %vm1988_vm11, %v3823_v55, %v5885_v48 }
 0x3bc   : > { %v4004_v8 = vpack.c.bf16 %v3983_v49, %v3982_v59  ;;  %v5893_v58 = vpop.permute.xlu1 %5892  ;;  %v3732_v57 = vsel %vm1813_vm7, %v8626_v37, %v5899_v11  ;;  %v3733_v61 = vsel %vm1813_vm7, %v8629_v39, %v5900_v13 }
 0x3bd   : > { %v5908_v34 = vpop.permute.xlu0 %5907  ;;  %v5895_v25 = vunpack.i.h.bf16 %v5893_v58  ;;  %v5894_v22 = vunpack.i.l.bf16 %v5893_v58 }
 0x3be   : > { %4604 = vmatprep.mubr.msk.bf16.mxu1 %vm4037_vm13, %v4004_v8  ;;  %v5910_v7 = vunpack.i.h.bf16 %v5908_v34  ;;  %v5909_v18 = vunpack.i.l.bf16 %v5908_v34 }
 0x3bf   : > { %4605 = vmatmul.mubr.msk.bf16.gmra.mxu1 %vm4037_vm13, %v4005_v32  ;;  %v3731_v44 = vsel %vm1813_vm7, %v8592_v30, %v5895_v25  ;;  %v3730_v38 = vsel %vm1813_vm7, %v9481_v21, %v5894_v22 }
 0x3c0   : > { %v5903_v3 = vpop.permute.xlu1 %5902  ;;  %v3764_v37 = vsel %vm1846_vm8, %v3732_v57, %v5909_v18  ;;  %v3765_v46 = vsel %vm1846_vm8, %v3733_v61, %v5910_v7 }
 0x3c1   : > { %v5918_v41 = vpop.permute.xlu0 %5917  ;;  %v5905_v45 = vunpack.i.h.bf16 %v5903_v3  ;;  %v5904_v39 = vunpack.i.l.bf16 %v5903_v3 }
 0x3c2   : > { %v5920_v24 = vunpack.i.h.bf16 %v5918_v41  ;;  %v5919_v6 = vunpack.i.l.bf16 %v5918_v41 }
 0x3c3   : > { %v3762_v56 = vsel %vm1846_vm8, %v3730_v38, %v5904_v39  ;;  %v3763_v33 = vsel %vm1846_vm8, %v3731_v44, %v5905_v45 }
 0x3c4   : > { %v4586_v26 = vpop.f32.mrf.mxu1  ;;  %v5913_v50 = vpop.permute.xlu1 %5912  ;;  %v3796_v31 = vsel %vm1879_vm9, %v3764_v37, %v5919_v6  ;;  %v3797_v35 = vsel %vm1879_vm9, %v3765_v46, %v5920_v24 }
 0x3c5   : > { %v5928_v16 = vpop.permute.xlu0 %5927  ;;  %v4133_v47 = vadd.f32 %v4586_v26, %v8893_v28  ;;  %v5915_v1 = vunpack.i.h.bf16 %v5913_v50  ;;  %v5914_v29 = vunpack.i.l.bf16 %v5913_v50 }
 0x3c6   : > { %v5930_v10 = vunpack.i.h.bf16 %v5928_v16  ;;  %v5929_v52 = vunpack.i.l.bf16 %v5928_v16  ;;  %v4124_v53 = vpop.f32.mrf.mxu1 }
 0x3c7   : > { %v4253_v36 = vmax.f32 %v4133_v47, 0.0  ;;  %v4125_v23 = vadd.f32 %v8893_v28, %v4124_v53  ;;  %v3794_v49 = vsel %vm1879_vm9, %v3762_v56, %v5914_v29  ;;  %v3795_v8 = vsel %vm1879_vm9, %v3763_v33, %v5915_v1 }
 0x3c8   : > { %v4587_v62 = vpop.f32.mrf.mxu1  ;;  %v5923_v43 = vpop.permute.xlu1 %5922  ;;  %v3828_v12 = vsel %vm1912_vm10, %v3796_v31, %v5929_v52  ;;  %v3829_v60 = vsel %vm1912_vm10, %v3797_v35, %v5930_v10 }
 0x3c9   : > { %v5938_v14 = vpop.permute.xlu0 %5937  ;;  %4285 = vst.msk [vmem:[%s8904_s30 + $0x10] sm:$0xff] %vm1714_vm4, %v4253_v36  ;;  %v4251_v27 = vmax.f32 %v4125_v23, 0.0  ;;  %v4136_v0 = vadd.f32 %v4587_v62, %v8893_v28  ;;  %v5925_v40 = vunpack.i.h.bf16 %v5923_v43  ;;  %v5924_v20 = vunpack.i.l.bf16 %v5923_v43 }
 0x3ca   : > { %v5940_v17 = vunpack.i.h.bf16 %v5938_v14  ;;  %v5939_v2 = vunpack.i.l.bf16 %v5938_v14  ;;  %v4127_v51 = vpop.f32.mrf.mxu1 }
 0x3cb   : > { %4283 = vst.msk [vmem:[%s8904_s30] sm:$0xff] %vm1714_vm4, %v4251_v27  ;;  %v4254_v63 = vmax.f32 %v4136_v0, 0.0  ;;  %v4128_v32 = vadd.f32 %v8893_v28, %v4127_v51  ;;  %v3826_v30 = vsel %vm1912_vm10, %v3794_v49, %v5924_v20  ;;  %v3827_v11 = vsel %vm1912_vm10, %v3795_v8, %v5925_v40 }
 0x3cc   : > { %v3988_v9 = vsel %vm1988_vm11, %v3828_v12, %v5939_v2  ;;  %v3989_v19 = vsel %vm1988_vm11, %v3829_v60, %v5940_v17  ;;  %v5933_v59 = vpop.permute.xlu1 %5932 }
 0x3cd   : > { %v4007_v15 = vpack.c.bf16 %v3989_v19, %v3988_v9  ;;  %v5948_v48 = vpop.permute.xlu0 %5947  ;;  %4286 = vst.msk [vmem:[%s8904_s30 + $0x18] sm:$0xff] %vm1714_vm4, %v4254_v63  ;;  %v4252_v55 = vmax.f32 %v4128_v32, 0.0  ;;  %v5935_v34 = vunpack.i.h.bf16 %v5933_v59  ;;  %v5934_v58 = vunpack.i.l.bf16 %v5933_v59 }
 0x3ce   : > { %v5950_v6 = vunpack.i.h.bf16 %v5948_v48  ;;  %v5949_v26 = vunpack.i.l.bf16 %v5948_v48 }
 0x3cf   : > { %4284 = vst.msk [vmem:[%s8904_s30 + $0x8] sm:$0xff] %vm1714_vm4, %v4252_v55  ;;  %v3986_v41 = vsel %vm1988_vm11, %v3826_v30, %v5934_v58  ;;  %v3987_v3 = vsel %vm1988_vm11, %v3827_v11, %v5935_v34 }
 0x3d0   : > { %v4006_v7 = vpack.c.bf16 %v3987_v3, %v3986_v41  ;;  %v5943_v18 = vpop.permute.xlu1 %5942  ;;  %v3734_v10 = vsel %vm1813_vm7, %v8635_v4, %v5949_v26  ;;  %v3735_v52 = vsel %vm1813_vm7, %v8638_v42, %v5950_v6 }
 0x3d1   : > { %v5945_v4 = vunpack.i.h.bf16 %v5943_v18  ;;  %v5944_v14 = vunpack.i.l.bf16 %v5943_v18 }
 0x3d2   : > { %v5958_v13 = vpop.permute.xlu0 %5957  ;;  %4608 = vmatprep.mubr.msk.bf16.mxu1 %vm4037_vm13, %v4006_v7 }
 0x3d3   : > { %4609 = vmatmul.mubr.msk.bf16.gmra.mxu1 %vm4037_vm13, %v4007_v15  ;;  %v5960_v16 = vunpack.i.h.bf16 %v5958_v13  ;;  %v5959_v61 = vunpack.i.l.bf16 %v5958_v13  ;;  %v3704_v51 = vsel %vm1780_vm6, %v8693_v5, %v5944_v14  ;;  %v3705_v63 = vsel %vm1780_vm6, %v8696_v54, %v5945_v4 }
 0x3d4   : > { %v5953_v24 = vpop.permute.xlu1 %5952 }
 0x3d5   : > { %v3766_v53 = vsel %vm1846_vm8, %v3734_v10, %v5959_v61  ;;  %v3767_v45 = vsel %vm1846_vm8, %v3735_v52, %v5960_v16  ;;  %v5955_v0 = vunpack.i.h.bf16 %v5953_v24  ;;  %v5954_v17 = vunpack.i.l.bf16 %v5953_v24 }
 0x3d6   : > { %v5968_v57 = vpop.permute.xlu0 %5967 }
 0x3d7   : > { %v5970_v22 = vunpack.i.h.bf16 %v5968_v57  ;;  %v5969_v47 = vunpack.i.l.bf16 %v5968_v57  ;;  %v3736_v32 = vsel %vm1813_vm7, %v3704_v51, %v5954_v17  ;;  %v3737_v44 = vsel %vm1813_vm7, %v3705_v63, %v5955_v0 }
 0x3d9   : > { %v3798_v36 = vsel %vm1879_vm9, %v3766_v53, %v5969_v47  ;;  %v3799_v23 = vsel %vm1879_vm9, %v3767_v45, %v5970_v22 }
 0x3da   : > { %v5978_v25 = vpop.permute.xlu0 %5977  ;;  %v5963_v50 = vpop.permute.xlu1 %5962 }
 0x3db   : > { %v5980_v37 = vunpack.i.h.bf16 %v5978_v25  ;;  %v5979_v46 = vunpack.i.l.bf16 %v5978_v25  ;;  %v5965_v43 = vunpack.i.h.bf16 %v5963_v50  ;;  %v5964_v12 = vunpack.i.l.bf16 %v5963_v50 }
 0x3dd   : > { %v3830_v29 = vsel %vm1912_vm10, %v3798_v36, %v5979_v46  ;;  %v3831_v62 = vsel %vm1912_vm10, %v3799_v23, %v5980_v37  ;;  %v3768_v21 = vsel %vm1846_vm8, %v3736_v32, %v5964_v12  ;;  %v3769_v38 = vsel %vm1846_vm8, %v3737_v44, %v5965_v43 }
 0x3de   : > { %v5988_v39 = vpop.permute.xlu0 %5987  ;;  %v5973_v1 = vpop.permute.xlu1 %5972 }
 0x3df   : > { %v5990_v31 = vunpack.i.h.bf16 %v5988_v39  ;;  %v5989_v35 = vunpack.i.l.bf16 %v5988_v39  ;;  %v5975_v40 = vunpack.i.h.bf16 %v5973_v1  ;;  %v5974_v20 = vunpack.i.l.bf16 %v5973_v1 }
 0x3e1   : > { %v3990_v42 = vsel %vm1988_vm11, %v3830_v29, %v5989_v35  ;;  %v3991_v27 = vsel %vm1988_vm11, %v3831_v62, %v5990_v31  ;;  %v3800_v48 = vsel %vm1879_vm9, %v3768_v21, %v5974_v20  ;;  %v3801_v56 = vsel %vm1879_vm9, %v3769_v38, %v5975_v40 }
 0x3e2   : > { %v4008_v2 = vpack.c.bf16 %v3991_v27, %v3990_v42  ;;  %v5983_v60 = vpop.permute.xlu1 %5982 }
 0x3e3   : > { %v5985_v9 = vunpack.i.h.bf16 %v5983_v60  ;;  %v5984_v19 = vunpack.i.l.bf16 %v5983_v60 }
 0x3e4   : > { %4612 = vmatprep.mubr.msk.bf16.mxu1 %vm4037_vm13, %v4008_v2 }
 0x3e5   : > { %v3832_v54 = vsel %vm1912_vm10, %v3800_v48, %v5984_v19  ;;  %v3833_v55 = vsel %vm1912_vm10, %v3801_v56, %v5985_v9 }
 0x3e6   : > { %v5993_v15 = vpop.permute.xlu1 %5992 }
 0x3e7   : > { %v5995_v5 = vunpack.i.h.bf16 %v5993_v15  ;;  %v5994_v33 = vunpack.i.l.bf16 %v5993_v15 }
 0x3e9   : > { %v3992_v59 = vsel %vm1988_vm11, %v3832_v54, %v5994_v33  ;;  %v3993_v49 = vsel %vm1988_vm11, %v3833_v55, %v5995_v5 }
 0x3ea   : > { %v4009_v8 = vpack.c.bf16 %v3993_v49, %v3992_v59 }
 0x3ec   : > { %4613 = vmatmul.mubr.msk.bf16.gmra.mxu1 %vm4037_vm13, %v4009_v8 }
 0x430   : > { %v4590_v34 = vpop.f32.mrf.mxu1 }
 0x431   : > { %v4149_v58 = vadd.f32 %v4590_v34, %v8893_v28 }
 0x432   : > { %v4140_v30 = vpop.f32.mrf.mxu1 }
 0x433   : > { %v4257_v11 = vmax.f32 %v4149_v58, 0.0  ;;  %v4141_v41 = vadd.f32 %v8893_v28, %v4140_v30 }
 0x434   : > { %v4591_v3 = vpop.f32.mrf.mxu1 }
 0x435   : > { %4289 = vst.msk [vmem:[%s8904_s30 + $0x30] sm:$0xff] %vm1714_vm4, %v4257_v11  ;;  %v4255_v13 = vmax.f32 %v4141_v41, 0.0  ;;  %v4152_v7 = vadd.f32 %v4591_v3, %v8893_v28 }
 0x436   : > { %v4143_v18 = vpop.f32.mrf.mxu1 }
 0x437   : > { %4287 = vst.msk [vmem:[%s8904_s30 + $0x20] sm:$0xff] %vm1714_vm4, %v4255_v13  ;;  %v4258_v57 = vmax.f32 %v4152_v7, 0.0  ;;  %v4144_v24 = vadd.f32 %v8893_v28, %v4143_v18 }
 0x439   : > { %4290 = vst.msk [vmem:[%s8904_s30 + $0x38] sm:$0xff] %vm1714_vm4, %v4258_v57  ;;  %v4256_v6 = vmax.f32 %v4144_v24, 0.0 }
 0x43b   : > { %4288 = vst.msk [vmem:[%s8904_s30 + $0x28] sm:$0xff] %vm1714_vm4, %v4256_v6 }
 0x443   : > { %v4594_v26 = vpop.f32.mrf.mxu1 }
 0x444   : > { %v4165_v16 = vadd.f32 %v4594_v26, %v8893_v28 }
 0x445   : > { %v4156_v61 = vpop.f32.mrf.mxu1 }
 0x446   : > { %v4261_v25 = vmax.f32 %v4165_v16, 0.0  ;;  %v4157_v22 = vadd.f32 %v8893_v28, %v4156_v61 }
 0x447   : > { %v4595_v47 = vpop.f32.mrf.mxu1 }
 0x448   : > { %4293 = vst.msk [vmem:[%s8904_s30 + $0x50] sm:$0xff] %vm1714_vm4, %v4261_v25  ;;  %v4259_v50 = vmax.f32 %v4157_v22, 0.0  ;;  %v4168_v37 = vadd.f32 %v4595_v47, %v8893_v28 }
 0x449   : > { %v4159_v46 = vpop.f32.mrf.mxu1 }
 0x44a   : > { %4291 = vst.msk [vmem:[%s8904_s30 + $0x40] sm:$0xff] %vm1714_vm4, %v4259_v50  ;;  %v4262_v10 = vmax.f32 %v4168_v37, 0.0  ;;  %v4160_v52 = vadd.f32 %v8893_v28, %v4159_v46 }
 0x44c   : > { %4294 = vst.msk [vmem:[%s8904_s30 + $0x58] sm:$0xff] %vm1714_vm4, %v4262_v10  ;;  %v4260_v53 = vmax.f32 %v4160_v52, 0.0 }
 0x44e   : > { %4292 = vst.msk [vmem:[%s8904_s30 + $0x48] sm:$0xff] %vm1714_vm4, %v4260_v53 }
 0x457   : > { %v4598_v45 = vpop.f32.mrf.mxu1 }
 0x458   : > { %v4181_v39 = vadd.f32 %v4598_v45, %v8893_v28 }
 0x459   : > { %v4172_v36 = vpop.f32.mrf.mxu1 }
 0x45a   : > { %v4265_v23 = vmax.f32 %v4181_v39, 0.0  ;;  %v4173_v31 = vadd.f32 %v8893_v28, %v4172_v36 }
 0x45b   : > { %v4599_v35 = vpop.f32.mrf.mxu1 }
 0x45c   : > { %4297 = vst.msk [vmem:[%s8904_s30 + $0x70] sm:$0xff] %vm1714_vm4, %v4265_v23  ;;  %v4263_v1 = vmax.f32 %v4173_v31, 0.0  ;;  %v4184_v29 = vadd.f32 %v4599_v35, %v8893_v28 }
 0x45d   : > { %v4175_v62 = vpop.f32.mrf.mxu1 }
 0x45e   : > { %4295 = vst.msk [vmem:[%s8904_s30 + $0x60] sm:$0xff] %vm1714_vm4, %v4263_v1  ;;  %v4266_v4 = vmax.f32 %v4184_v29, 0.0  ;;  %v4176_v14 = vadd.f32 %v8893_v28, %v4175_v62 }
 0x460   : > { %4298 = vst.msk [vmem:[%s8904_s30 + $0x78] sm:$0xff] %vm1714_vm4, %v4266_v4  ;;  %v4264_v42 = vmax.f32 %v4176_v14, 0.0 }
 0x462   : > { %4296 = vst.msk [vmem:[%s8904_s30 + $0x68] sm:$0xff] %vm1714_vm4, %v4264_v42 }
 0x46b   : > { %v4602_v27 = vpop.f32.mrf.mxu1 }
 0x46c   : > { %v4197_v0 = vadd.f32 %v4602_v27, %v8893_v28 }
 0x46d   : > { %v4188_v17 = vpop.f32.mrf.mxu1 }
 0x46e   : > { %v4269_v2 = vmax.f32 %v4197_v0, 0.0  ;;  %v4189_v43 = vadd.f32 %v8893_v28, %v4188_v17 }
 0x46f   : > { %v4603_v12 = vpop.f32.mrf.mxu1 }
 0x470   : > { %4301 = vst.msk [vmem:[%s8904_s30 + $0x90] sm:$0xff] %vm1714_vm4, %v4269_v2  ;;  %v4267_v60 = vmax.f32 %v4189_v43, 0.0  ;;  %v4200_v40 = vadd.f32 %v4603_v12, %v8893_v28 }
 0x471   : > { %v4191_v20 = vpop.f32.mrf.mxu1 }
 0x472   : > { %4299 = vst.msk [vmem:[%s8904_s30 + $0x80] sm:$0xff] %vm1714_vm4, %v4267_v60  ;;  %v4270_v51 = vmax.f32 %v4200_v40, 0.0  ;;  %v4192_v63 = vadd.f32 %v8893_v28, %v4191_v20 }
 0x474   : > { %4302 = vst.msk [vmem:[%s8904_s30 + $0x98] sm:$0xff] %vm1714_vm4, %v4270_v51  ;;  %v4268_v9 = vmax.f32 %v4192_v63, 0.0 }
 0x476   : > { %4300 = vst.msk [vmem:[%s8904_s30 + $0x88] sm:$0xff] %vm1714_vm4, %v4268_v9 }
 0x47f   : > { %v4606_v19 = vpop.f32.mrf.mxu1 }
 0x480   : > { %v4213_v32 = vadd.f32 %v4606_v19, %v8893_v28 }
 0x481   : > { %v4204_v44 = vpop.f32.mrf.mxu1 }
 0x482   : > { %v4273_v21 = vmax.f32 %v4213_v32, 0.0  ;;  %v4205_v38 = vadd.f32 %v8893_v28, %v4204_v44 }
 0x483   : > { %v4607_v15 = vpop.f32.mrf.mxu1 }
 0x484   : > { %4305 = vst.msk [vmem:[%s8904_s30 + $0xb0] sm:$0xff] %vm1714_vm4, %v4273_v21  ;;  %v4271_v48 = vmax.f32 %v4205_v38, 0.0  ;;  %v4216_v56 = vadd.f32 %v4607_v15, %v8893_v28 }
 0x485   : > { %v4207_v5 = vpop.f32.mrf.mxu1 }
 0x486   : > { %4303 = vst.msk [vmem:[%s8904_s30 + $0xa0] sm:$0xff] %vm1714_vm4, %v4271_v48  ;;  %v4274_v33 = vmax.f32 %v4216_v56, 0.0  ;;  %v4208_v54 = vadd.f32 %v8893_v28, %v4207_v5 }
 0x488   : > { %4306 = vst.msk [vmem:[%s8904_s30 + $0xb8] sm:$0xff] %vm1714_vm4, %v4274_v33  ;;  %v4272_v55 = vmax.f32 %v4208_v54, 0.0 }
 0x48a   : > { %4304 = vst.msk [vmem:[%s8904_s30 + $0xa8] sm:$0xff] %vm1714_vm4, %v4272_v55 }
 0x493   : > { %v4610_v59 = vpop.f32.mrf.mxu1 }
 0x494   : > { %v4229_v49 = vadd.f32 %v4610_v59, %v8893_v28 }
 0x495   : > { %v4220_v8 = vpop.f32.mrf.mxu1 }
 0x496   : > { %v4277_v34 = vmax.f32 %v4229_v49, 0.0  ;;  %v4221_v58 = vadd.f32 %v8893_v28, %v4220_v8 }
 0x497   : > { %v4611_v30 = vpop.f32.mrf.mxu1 }
 0x498   : > { %4309 = vst.msk [vmem:[%s8904_s30 + $0xd0] sm:$0xff] %vm1714_vm4, %v4277_v34  ;;  %v4275_v11 = vmax.f32 %v4221_v58, 0.0  ;;  %v4232_v41 = vadd.f32 %v4611_v30, %v8893_v28 }
 0x499   : > { %v4223_v3 = vpop.f32.mrf.mxu1 }
 0x49a   : > { %4307 = vst.msk [vmem:[%s8904_s30 + $0xc0] sm:$0xff] %vm1714_vm4, %v4275_v11  ;;  %v4278_v13 = vmax.f32 %v4232_v41, 0.0  ;;  %v4224_v7 = vadd.f32 %v8893_v28, %v4223_v3 }
 0x49c   : > { %4310 = vst.msk [vmem:[%s8904_s30 + $0xd8] sm:$0xff] %vm1714_vm4, %v4278_v13  ;;  %v4276_v18 = vmax.f32 %v4224_v7, 0.0 }
 0x49e   : > { %4308 = vst.msk [vmem:[%s8904_s30 + $0xc8] sm:$0xff] %vm1714_vm4, %v4276_v18 }
 0x4ac   : > { %v4614_v57 = vpop.f32.mrf.mxu1 }
 0x4ad   : > { %v4245_v24 = vadd.f32 %v4614_v57, %v8893_v28 }
 0x4ae   : > { %v4236_v6 = vpop.f32.mrf.mxu1 }
 0x4af   : > { %v4281_v26 = vmax.f32 %v4245_v24, 0.0  ;;  %v4237_v16 = vadd.f32 %v8893_v28, %v4236_v6 }
 0x4b0   : > { %v4615_v61 = vpop.f32.mrf.mxu1 }
 0x4b1   : > { %4313 = vst.msk [vmem:[%s8904_s30 + $0xf0] sm:$0xff] %vm1714_vm4, %v4281_v26  ;;  %v4279_v25 = vmax.f32 %v4237_v16, 0.0  ;;  %v4248_v22 = vadd.f32 %v4615_v61, %v8893_v28 }
 0x4b2   : > { %v4239_v47 = vpop.f32.mrf.mxu1 }
 0x4b3   : > { %4311 = vst.msk [vmem:[%s8904_s30 + $0xe0] sm:$0xff] %vm1714_vm4, %v4279_v25  ;;  %v4282_v50 = vmax.f32 %v4248_v22, 0.0  ;;  %v4240_v37 = vadd.f32 %v8893_v28, %v4239_v47 }
 0x4b5   : > { %4314 = vst.msk [vmem:[%s8904_s30 + $0xf8] sm:$0xff] %vm1714_vm4, %v4282_v50  ;;  %v4280_v46 = vmax.f32 %v4240_v37, 0.0 }
 0x4b7   : > { %4312 = vst.msk [vmem:[%s8904_s30 + $0xe8] sm:$0xff] %vm1714_vm4, %v4280_v46 }
 0x4b8 PF: > { %s15_s18 = sadd.s32 1, %s6018_s18  }
 0x4b9   : > { %p12_p4 = scmp.ge.s32.totalorder %s15_s18, 4  }
 0x4bb   :  { %14 = sbr.rel (!%p12_p4) target bundleno = 1 (0x1), region = 73 }

</bundles_post_ra>
